<compile_context>
chip_gen: v6e
topology: v6e:2x2x1
jax: 0.10.0
libtpu: 0.0.40
codegen_flags: <defaults>
</compile_context>

<pallas_src>
import functools

import jax
import jax.numpy as jnp
from jax.experimental import pallas as pl
from jax.experimental.pallas import tpu as pltpu

NEG = -1e9  # additive mask value (keeps fully-masked rows finite)


# ---------------------------------------------------------------------------
# In-kernel helpers (traced inside Pallas kernels)
# ---------------------------------------------------------------------------
def _ln(x, g, b, eps=1e-5):
    mu = jnp.mean(x, axis=-1, keepdims=True)
    var = jnp.mean(jnp.square(x - mu), axis=-1, keepdims=True)
    return (x - mu) * jax.lax.rsqrt(var + eps) * g + b


def _mm(x, w):
    # bf16 MXU feed, f32 accumulate
    return jnp.dot(x.astype(jnp.bfloat16), w.astype(jnp.bfloat16),
                   preferred_element_type=jnp.float32)


def _mha_outproj(q, k, v, bias, wo_ref, bo_ref, head_num):
    # q: (Lq, D), k/v: (Lk, D), bias: broadcastable to (Lq, Lk) f32
    Lq, D = q.shape
    hd = D // head_num
    scale = 1.0 / float(hd) ** 0.5
    wo = wo_ref[...].astype(jnp.float32)
    acc = jnp.zeros((Lq, D), jnp.float32)
    for h in range(head_num):           # static unroll over heads
        lo, hi = h * hd, (h + 1) * hd
        qh = q[:, lo:hi].astype(jnp.bfloat16)
        kh = k[:, lo:hi].astype(jnp.bfloat16)
        vh = v[:, lo:hi].astype(jnp.bfloat16)
        s = jax.lax.dot_general(qh, kh, (((1,), (1,)), ((), ())),
                                preferred_element_type=jnp.float32) * scale + bias
        s = s - jnp.max(s, axis=-1, keepdims=True)
        p = jnp.exp(s)
        p = p * pl.reciprocal(jnp.sum(p, axis=-1, keepdims=True), approx=True)
        oh = jnp.dot(p.astype(jnp.bfloat16), vh, preferred_element_type=jnp.float32)
        acc = acc + jnp.dot(oh.astype(jnp.bfloat16), wo[lo:hi, :].astype(jnp.bfloat16),
                            preferred_element_type=jnp.float32)
    return acc + bo_ref[...].astype(jnp.float32)


def _ffn(y, ln2_g, ln2_b, w1, b1, w2, b2):
    yn = _ln(y, ln2_g[...].astype(jnp.float32), ln2_b[...].astype(jnp.float32))
    h = jnp.maximum(_mm(yn, w1[...]) + b1[...].astype(jnp.float32), 0.0)
    return _mm(h, w2[...]) + b2[...].astype(jnp.float32)


# ---------------------------------------------------------------------------
# Fused Pallas kernels
# ---------------------------------------------------------------------------
def _self_att_kernel(x_ref, km_ref, pm_ref,
                     ln1_g, ln1_b, wq, bq, wk, bk, wv, bv, wo, bo,
                     ln2_g, ln2_b, w1, b1, w2, b2, o_ref, *, head_num):
    # x_ref: (1, L, D); km_ref: (1, 1, Lk) key validity; pm_ref: (Lq, Lk) pair validity
    x = x_ref[0].astype(jnp.float32)
    xn = _ln(x, ln1_g[...].astype(jnp.float32), ln1_b[...].astype(jnp.float32))
    q = _mm(xn, wq[...]) + bq[...].astype(jnp.float32)
    k = _mm(xn, wk[...]) + bk[...].astype(jnp.float32)
    v = _mm(xn, wv[...]) + bv[...].astype(jnp.float32)
    valid = (km_ref[0] > 0.5) & (pm_ref[...] > 0.5)        # (1,Lk) & (Lq,Lk) -> (Lq,Lk)
    bias = jnp.where(valid, 0.0, NEG).astype(jnp.float32)
    y = x + _mha_outproj(q, k, v, bias, wo, bo, head_num)
    o_ref[0] = (y + _ffn(y, ln2_g, ln2_b, w1, b1, w2, b2)).astype(o_ref.dtype)


def _cross_att_kernel(x_ref, k_ref, v_ref, km_ref,
                      ln1_g, ln1_b, wq, bq, wo, bo,
                      ln2_g, ln2_b, w1, b1, w2, b2, o_ref, *, head_num):
    # x_ref: (1, T, D) queries; k_ref/v_ref: shared pre-projected road K/V (G, D)
    x = x_ref[0].astype(jnp.float32)
    xn = _ln(x, ln1_g[...].astype(jnp.float32), ln1_b[...].astype(jnp.float32))
    q = _mm(xn, wq[...]) + bq[...].astype(jnp.float32)
    k = k_ref[...].astype(jnp.float32)
    v = v_ref[...].astype(jnp.float32)
    bias = jnp.where(km_ref[0] > 0.5, 0.0, NEG).astype(jnp.float32)   # (1, G)
    y = x + _mha_outproj(q, k, v, bias, wo, bo, head_num)
    o_ref[0] = (y + _ffn(y, ln2_g, ln2_b, w1, b1, w2, b2)).astype(o_ref.dtype)


def _road_kv_kernel(r_ref, lnr_g, lnr_b, wk, bk, wv, bv, k_out, v_out):
    r = r_ref[...].astype(jnp.float32)
    rn = _ln(r, lnr_g[...], lnr_b[...])
    k_out[...] = (_mm(rn, wk[...]) + bk[...].astype(jnp.float32)).astype(k_out.dtype)
    v_out[...] = (_mm(rn, wv[...]) + bv[...].astype(jnp.float32)).astype(v_out.dtype)


def _layer_a_kernel(x_ref, m_ref, w_ref, b_ref, g_ref, beta_ref, o_ref, *, eps):
    # hidden_mask fill + Linear + ReLU + training-mode BatchNorm1d (per-channel stats)
    x = jnp.where(m_ref[...] > 0.5, x_ref[...].astype(jnp.float32), -1.0)
    h = jnp.maximum(_mm(x, w_ref[...]) + b_ref[...].astype(jnp.float32), 0.0)
    mu = jnp.mean(h, axis=0, keepdims=True)
    var = jnp.mean(jnp.square(h - mu), axis=0, keepdims=True)
    o_ref[...] = ((h - mu) * jax.lax.rsqrt(var + eps)
                  * g_ref[...] + beta_ref[...]).astype(o_ref.dtype)


# ---------------------------------------------------------------------------
# Wrappers (pallas_call plumbing)
# ---------------------------------------------------------------------------
def _const_spec(shape):
    return pl.BlockSpec(shape, lambda b: (0,) * len(shape))


def att_block(p, x, key_mask, pair_mask, head_num):
    # x: (B, L, D) f32; key_mask: (B, Lk); pair_mask: (Lq, Lk) shared across batch
    B, L, D = x.shape
    Lk = pair_mask.shape[1]
    km = key_mask.reshape(B, 1, Lk).astype(jnp.float32)
    pm = pair_mask.astype(jnp.float32)
    weights = [p["ln1_g"], p["ln1_b"], p["wq"], p["bq"], p["wk"], p["bk"],
               p["wv"], p["bv"], p["wo"], p["bo"], p["ln2_g"], p["ln2_b"],
               p["w1"], p["b1"], p["w2"], p["b2"]]
    in_specs = ([pl.BlockSpec((1, L, D), lambda b: (b, 0, 0)),
                 pl.BlockSpec((1, 1, Lk), lambda b: (b, 0, 0)),
                 _const_spec(pm.shape)]
                + [_const_spec(w.shape) for w in weights])
    return pl.pallas_call(
        functools.partial(_self_att_kernel, head_num=head_num),
        grid=(B,),
        in_specs=in_specs,
        out_specs=pl.BlockSpec((1, L, D), lambda b: (b, 0, 0)),
        out_shape=jax.ShapeDtypeStruct((B, L, D), jnp.float32),
        compiler_params=pltpu.CompilerParams(dimension_semantics=("parallel",)),
    )(x, km, pm, *weights)


def cross_block(p, x, k_road, v_road, key_mask, head_num):
    # x: (A, T, D); k_road/v_road: (G, D) shared; key_mask: (A, G)
    A, T, D = x.shape
    G = k_road.shape[0]
    km = key_mask.reshape(A, 1, G).astype(jnp.float32)
    weights = [p["ln1_g"], p["ln1_b"], p["wq"], p["bq"], p["wo"], p["bo"],
               p["ln2_g"], p["ln2_b"], p["w1"], p["b1"], p["w2"], p["b2"]]
    in_specs = ([pl.BlockSpec((1, T, D), lambda a: (a, 0, 0)),
                 _const_spec((G, D)),        # shared K: stays resident across grid steps
                 _const_spec((G, D)),        # shared V
                 pl.BlockSpec((1, 1, G), lambda a: (a, 0, 0))]
                + [_const_spec(w.shape) for w in weights])
    return pl.pallas_call(
        functools.partial(_cross_att_kernel, head_num=head_num),
        grid=(A,),
        in_specs=in_specs,
        out_specs=pl.BlockSpec((1, T, D), lambda a: (a, 0, 0)),
        out_shape=jax.ShapeDtypeStruct((A, T, D), jnp.float32),
        compiler_params=pltpu.CompilerParams(dimension_semantics=("parallel",)),
    )(x, k_road, v_road, km, *weights)


def road_kv(road_feat, p):
    G = road_feat.shape[0]
    D = p["wk"].shape[1]
    return pl.pallas_call(
        _road_kv_kernel,
        out_shape=(jax.ShapeDtypeStruct((G, D), jnp.bfloat16),
                   jax.ShapeDtypeStruct((G, D), jnp.bfloat16)),
    )(road_feat, p["lnr_g"], p["lnr_b"], p["wk"], p["bk"], p["wv"], p["bv"])


def layer_a(x_flat, mask_flat, p, eps=1e-5):
    M = x_flat.shape[0]
    D = p["w"].shape[1]
    return pl.pallas_call(
        functools.partial(_layer_a_kernel, eps=eps),
        out_shape=jax.ShapeDtypeStruct((M, D), jnp.float32),
    )(x_flat, mask_flat, p["w"], p["b"], p["bn_g"], p["bn_b"])


# ---------------------------------------------------------------------------
# Encoder forward
# ---------------------------------------------------------------------------
def encoder_forward(params, state_feat, agent_batch_mask, padding_mask, hidden_mask,
                    road_feat, roadgraph_valid, traffic_light_feat, traffic_light_valid,
                    agent_rg_mask, agent_traffic_mask, *, head_num):
    del traffic_light_feat, traffic_light_valid, agent_traffic_mask  # unused by this Encoder
    A, T, Fin = state_feat.shape
    D = params["A"]["w"].shape[1]

    # layer_A: (mask fill + Linear + ReLU + BatchNorm1d over feature channel), fused
    h = layer_a(state_feat.reshape(A * T, Fin).astype(jnp.float32),
                hidden_mask.reshape(A * T, 1).astype(jnp.float32),
                params["A"]).reshape(A, T, D)

    pm = padding_mask.astype(jnp.float32)                        # (A, T)

    # layer_D: self-attention across time (batch = agent, keys masked by padding)
    out = att_block(params["D"], h, pm, jnp.ones((T, T), jnp.float32), head_num)

    # layer_E: self-attention across agents (batch = time step)
    # TODO(synk): the (A,T,D)<->(T,A,D) transposes could be folded into BlockSpec index_maps.
    xt = out.transpose(1, 0, 2)                                  # (T, A, D)
    out = att_block(params["E"], xt, pm.T,                       # key_mask: (T, A)
                    agent_batch_mask.astype(jnp.float32),        # pair_mask: (A, A)
                    head_num).transpose(1, 0, 2)

    # layer_J: cross-attention to roadgraph; road K/V pre-projected once and shared
    k_road, v_road = road_kv(road_feat.astype(jnp.float32), params["J"])
    km = (agent_rg_mask & roadgraph_valid[None, :]).astype(jnp.float32)   # (A, G)
    out = cross_block(params["J"], out, k_road, v_road, km, head_num)
    return out


# ---------------------------------------------------------------------------
# Deterministic parameter initialization (matmul weights in bf16, norms/biases f32)
# ---------------------------------------------------------------------------
def init_params(key, in_feat_dim, feature_dim, k):
    D = feature_dim
    kD = k * feature_dim
    keys = iter(jax.random.split(key, 64))

    def w(shape, scale=0.02):
        return (scale * jax.random.normal(next(keys), shape)).astype(jnp.bfloat16)

    zeros = lambda s: jnp.zeros(s, jnp.float32)
    ones = lambda s: jnp.ones(s, jnp.float32)

    def att_block_params():
        return dict(
            ln1_g=ones((1, D)), ln1_b=zeros((1, D)),
            wq=w((D, D)), bq=zeros((1, D)),
            wk=w((D, D)), bk=zeros((1, D)),
            wv=w((D, D)), bv=zeros((1, D)),
            wo=w((D, D)), bo=zeros((1, D)),
            ln2_g=ones((1, D)), ln2_b=zeros((1, D)),
            w1=w((D, kD)), b1=zeros((1, kD)),
            w2=w((kD, D)), b2=zeros((1, D)),
        )

    return dict(
        A=dict(w=w((in_feat_dim, D)), b=zeros((1, D)),
               bn_g=ones((1, D)), bn_b=zeros((1, D))),
        D=att_block_params(),
        E=att_block_params(),
        J=dict(**att_block_params(), lnr_g=ones((1, D)), lnr_b=zeros((1, D))),
    )


# ---------------------------------------------------------------------------
if __name__ == "__main__":
    key = jax.random.PRNGKey(0)
    in_feat_dim = 8
    feature_dim = 32
    head_num = 4
    k = 4
    A_agents = 8      # agents
    T = 16            # time steps (small stand-in for 91)
    G = 16            # roadgraph elements (small stand-in for 1400)

    k_param, k_x, k_road, k_m = jax.random.split(key, 4)
    params = init_params(k_param, in_feat_dim, feature_dim, k)

    state_feat = jax.random.normal(k_x, (A_agents, T, in_feat_dim), jnp.float32)
    road_feat = jax.random.normal(k_road, (G, feature_dim), jnp.float32)

    scene_id = jnp.repeat(jnp.arange(2), A_agents // 2)
    agent_batch_mask = scene_id[:, None] == scene_id[None, :]                 # (A, A)
    padding_mask = jnp.ones((A_agents, T), bool).at[:, -2:].set(False)        # (A, T)
    hidden_mask = jnp.ones((A_agents, T), bool).at[:, T // 2:].set(False)     # (A, T)
    roadgraph_valid = jnp.ones((G,), bool).at[-3:].set(False)                 # (G,)
    agent_rg_mask = jax.random.bernoulli(k_m, 0.8, (A_agents, G)).at[:, 0].set(True)

    # unused by this Encoder's forward (passed through for signature parity)
    traffic_light_feat = jnp.zeros((1, T, 4), jnp.float32)
    traffic_light_valid = jnp.zeros((1, T), bool)
    agent_traffic_mask = jnp.zeros((A_agents, 1), bool)

    fwd = jax.jit(functools.partial(encoder_forward, head_num=head_num))
    out = fwd(params, state_feat, agent_batch_mask, padding_mask, hidden_mask,
              road_feat, roadgraph_valid, traffic_light_feat, traffic_light_valid,
              agent_rg_mask, agent_traffic_mask)
    jax.block_until_ready(out)
    assert out.shape == (A_agents, T, feature_dim), out.shape
    assert bool(jnp.all(jnp.isfinite(out)))
    print("KERNEL_OK")
</pallas_src>

<mosaic_0001>
module attributes {stable_mosaic.version = 11 : i64} {
  func.func @_layer_a_kernel(%arg0: memref<128x8xf32, #tpu.memory_space<vmem>>, %arg1: memref<128x1xf32, #tpu.memory_space<vmem>>, %arg2: memref<8x32xbf16, #tpu.memory_space<vmem>>, %arg3: memref<1x32xf32, #tpu.memory_space<vmem>>, %arg4: memref<1x32xf32, #tpu.memory_space<vmem>>, %arg5: memref<1x32xf32, #tpu.memory_space<vmem>>, %arg6: memref<128x32xf32, #tpu.memory_space<vmem>>) attributes {dimension_semantics = [], scalar_prefetch = 0 : i64, scratch_operands = 0 : i64, tpu.core_type = #tpu.core_type<tc>} {
    %c0 = arith.constant 0 : index
    %c0_0 = arith.constant 0 : index
    %0 = vector.load %arg1[%c0, %c0_0] : memref<128x1xf32, #tpu.memory_space<vmem>>, vector<128x1xf32>
    %cst = arith.constant 5.000000e-01 : f32
    %1 = vector.broadcast %cst : f32 to vector<128x1xf32>
    %2 = arith.cmpf ogt, %0, %1 : vector<128x1xf32>
    %c0_1 = arith.constant 0 : index
    %c0_2 = arith.constant 0 : index
    %3 = vector.load %arg0[%c0_1, %c0_2] : memref<128x8xf32, #tpu.memory_space<vmem>>, vector<128x8xf32>
    %cst_3 = arith.constant -1.000000e+00 : f32
    %4 = vector.shape_cast %2 : vector<128x1xi1> to vector<128x1xi1>
    %5 = vector.broadcast %4 : vector<128x1xi1> to vector<128x8xi1>
    %6 = vector.broadcast %cst_3 : f32 to vector<128x8xf32>
    %7 = arith.select %5, %3, %6 : vector<128x8xi1>, vector<128x8xf32>
    %c0_4 = arith.constant 0 : index
    %c0_5 = arith.constant 0 : index
    %8 = vector.load %arg2[%c0_4, %c0_5] : memref<8x32xbf16, #tpu.memory_space<vmem>>, vector<8x32xbf16>
    %9 = arith.truncf %7 : vector<128x8xf32> to vector<128x8xbf16>
    %cst_6 = arith.constant dense<0.000000e+00> : vector<128x32xf32>
    %10 = tpu.matmul %9, %8, %cst_6 {dimension_numbers = #tpu.dot_dimension_numbers<[1], [0], [0], [1], [0, 0, 1, 1], [], []>} : vector<128x8xbf16>, vector<8x32xbf16>, vector<128x32xf32> -> vector<128x32xf32>
    %c0_7 = arith.constant 0 : index
    %c0_8 = arith.constant 0 : index
    %11 = vector.load %arg3[%c0_7, %c0_8] : memref<1x32xf32, #tpu.memory_space<vmem>>, vector<1x32xf32>
    %12 = vector.broadcast %11 : vector<1x32xf32> to vector<128x32xf32>
    %13 = arith.addf %10, %12 : vector<128x32xf32>
    %cst_9 = arith.constant 0.000000e+00 : f32
    %14 = vector.broadcast %cst_9 : f32 to vector<128x32xf32>
    %15 = arith.maximumf %13, %14 : vector<128x32xf32>
    %cst_10 = arith.constant dense<0.000000e+00> : vector<32xf32>
    %16 = vector.multi_reduction <add>, %15, %cst_10 [0] : vector<128x32xf32> to vector<32xf32>
    %17 = vector.shape_cast %16 : vector<32xf32> to vector<1x32xf32>
    %cst_11 = arith.constant 1.280000e+02 : f32
    %18 = vector.broadcast %cst_11 : f32 to vector<1x32xf32>
    %19 = arith.divf %17, %18 : vector<1x32xf32>
    %20 = vector.broadcast %19 : vector<1x32xf32> to vector<128x32xf32>
    %21 = arith.subf %15, %20 : vector<128x32xf32>
    %22 = arith.mulf %21, %21 : vector<128x32xf32>
    %cst_12 = arith.constant dense<0.000000e+00> : vector<32xf32>
    %23 = vector.multi_reduction <add>, %22, %cst_12 [0] : vector<128x32xf32> to vector<32xf32>
    %24 = vector.shape_cast %23 : vector<32xf32> to vector<1x32xf32>
    %cst_13 = arith.constant 1.280000e+02 : f32
    %25 = vector.broadcast %cst_13 : f32 to vector<1x32xf32>
    %26 = arith.divf %24, %25 : vector<1x32xf32>
    %27 = vector.broadcast %19 : vector<1x32xf32> to vector<128x32xf32>
    %28 = arith.subf %15, %27 : vector<128x32xf32>
    %cst_14 = arith.constant 9.99999974E-6 : f32
    %29 = vector.broadcast %cst_14 : f32 to vector<1x32xf32>
    %30 = arith.addf %26, %29 : vector<1x32xf32>
    %31 = math.rsqrt %30 : vector<1x32xf32>
    %32 = vector.broadcast %31 : vector<1x32xf32> to vector<128x32xf32>
    %33 = arith.mulf %28, %32 : vector<128x32xf32>
    %c0_15 = arith.constant 0 : index
    %c0_16 = arith.constant 0 : index
    %34 = vector.load %arg4[%c0_15, %c0_16] : memref<1x32xf32, #tpu.memory_space<vmem>>, vector<1x32xf32>
    %35 = vector.broadcast %34 : vector<1x32xf32> to vector<128x32xf32>
    %36 = arith.mulf %33, %35 : vector<128x32xf32>
    %c0_17 = arith.constant 0 : index
    %c0_18 = arith.constant 0 : index
    %37 = vector.load %arg5[%c0_17, %c0_18] : memref<1x32xf32, #tpu.memory_space<vmem>>, vector<1x32xf32>
    %38 = vector.broadcast %37 : vector<1x32xf32> to vector<128x32xf32>
    %39 = arith.addf %36, %38 : vector<128x32xf32>
    %c0_19 = arith.constant 0 : index
    %c0_20 = arith.constant 0 : index
    %40 = vector.load %arg6[%c0_19, %c0_20] : memref<128x32xf32, #tpu.memory_space<vmem>>, vector<128x32xf32>
    tpu.vector_store %arg6[%c0_19, %c0_20], %39 {strides = array<i32>} : memref<128x32xf32, #tpu.memory_space<vmem>>, vector<128x32xf32>,
    return
  }
}

module attributes {stable_mosaic.version = 11 : i64} {
  func.func @_road_kv_kernel(%arg0: memref<16x32xf32, #tpu.memory_space<vmem>>, %arg1: memref<1x32xf32, #tpu.memory_space<vmem>>, %arg2: memref<1x32xf32, #tpu.memory_space<vmem>>, %arg3: memref<32x32xbf16, #tpu.memory_space<vmem>>, %arg4: memref<1x32xf32, #tpu.memory_space<vmem>>, %arg5: memref<32x32xbf16, #tpu.memory_space<vmem>>, %arg6: memref<1x32xf32, #tpu.memory_space<vmem>>, %arg7: memref<16x32xbf16, #tpu.memory_space<vmem>>, %arg8: memref<16x32xbf16, #tpu.memory_space<vmem>>) attributes {dimension_semantics = [], scalar_prefetch = 0 : i64, scratch_operands = 0 : i64, tpu.core_type = #tpu.core_type<tc>} {
    %c0 = arith.constant 0 : index
    %c0_0 = arith.constant 0 : index
    %0 = vector.load %arg0[%c0, %c0_0] : memref<16x32xf32, #tpu.memory_space<vmem>>, vector<16x32xf32>
    %c0_1 = arith.constant 0 : index
    %c0_2 = arith.constant 0 : index
    %1 = vector.load %arg1[%c0_1, %c0_2] : memref<1x32xf32, #tpu.memory_space<vmem>>, vector<1x32xf32>
    %c0_3 = arith.constant 0 : index
    %c0_4 = arith.constant 0 : index
    %2 = vector.load %arg2[%c0_3, %c0_4] : memref<1x32xf32, #tpu.memory_space<vmem>>, vector<1x32xf32>
    %cst = arith.constant dense<0.000000e+00> : vector<16xf32>
    %3 = vector.multi_reduction <add>, %0, %cst [1] : vector<16x32xf32> to vector<16xf32>
    %4 = vector.shape_cast %3 : vector<16xf32> to vector<16x1xf32>
    %cst_5 = arith.constant 3.200000e+01 : f32
    %5 = vector.broadcast %cst_5 : f32 to vector<16x1xf32>
    %6 = arith.divf %4, %5 : vector<16x1xf32>
    %7 = vector.broadcast %6 : vector<16x1xf32> to vector<16x32xf32>
    %8 = arith.subf %0, %7 : vector<16x32xf32>
    %9 = arith.mulf %8, %8 : vector<16x32xf32>
    %cst_6 = arith.constant dense<0.000000e+00> : vector<16xf32>
    %10 = vector.multi_reduction <add>, %9, %cst_6 [1] : vector<16x32xf32> to vector<16xf32>
    %11 = vector.shape_cast %10 : vector<16xf32> to vector<16x1xf32>
    %cst_7 = arith.constant 3.200000e+01 : f32
    %12 = vector.broadcast %cst_7 : f32 to vector<16x1xf32>
    %13 = arith.divf %11, %12 : vector<16x1xf32>
    %14 = vector.broadcast %6 : vector<16x1xf32> to vector<16x32xf32>
    %15 = arith.subf %0, %14 : vector<16x32xf32>
    %cst_8 = arith.constant 9.99999974E-6 : f32
    %16 = vector.broadcast %cst_8 : f32 to vector<16x1xf32>
    %17 = arith.addf %13, %16 : vector<16x1xf32>
    %18 = math.rsqrt %17 : vector<16x1xf32>
    %19 = vector.broadcast %18 : vector<16x1xf32> to vector<16x32xf32>
    %20 = arith.mulf %15, %19 : vector<16x32xf32>
    %21 = vector.broadcast %1 : vector<1x32xf32> to vector<16x32xf32>
    %22 = arith.mulf %20, %21 : vector<16x32xf32>
    %23 = vector.broadcast %2 : vector<1x32xf32> to vector<16x32xf32>
    %24 = arith.addf %22, %23 : vector<16x32xf32>
    %c0_9 = arith.constant 0 : index
    %c0_10 = arith.constant 0 : index
    %25 = vector.load %arg3[%c0_9, %c0_10] : memref<32x32xbf16, #tpu.memory_space<vmem>>, vector<32x32xbf16>
    %26 = arith.truncf %24 : vector<16x32xf32> to vector<16x32xbf16>
    %cst_11 = arith.constant dense<0.000000e+00> : vector<16x32xf32>
    %27 = tpu.matmul %26, %25, %cst_11 {dimension_numbers = #tpu.dot_dimension_numbers<[1], [0], [0], [1], [0, 0, 1, 1], [], []>} : vector<16x32xbf16>, vector<32x32xbf16>, vector<16x32xf32> -> vector<16x32xf32>
    %c0_12 = arith.constant 0 : index
    %c0_13 = arith.constant 0 : index
    %28 = vector.load %arg4[%c0_12, %c0_13] : memref<1x32xf32, #tpu.memory_space<vmem>>, vector<1x32xf32>
    %29 = vector.broadcast %28 : vector<1x32xf32> to vector<16x32xf32>
    %30 = arith.addf %27, %29 : vector<16x32xf32>
    %31 = arith.truncf %30 : vector<16x32xf32> to vector<16x32xbf16>
    %c0_14 = arith.constant 0 : index
    %c0_15 = arith.constant 0 : index
    %32 = vector.load %arg7[%c0_14, %c0_15] : memref<16x32xbf16, #tpu.memory_space<vmem>>, vector<16x32xbf16>
    tpu.vector_store %arg7[%c0_14, %c0_15], %31 {strides = array<i32>} : memref<16x32xbf16, #tpu.memory_space<vmem>>, vector<16x32xbf16>,
    %c0_16 = arith.constant 0 : index
    %c0_17 = arith.constant 0 : index
    %33 = vector.load %arg5[%c0_16, %c0_17] : memref<32x32xbf16, #tpu.memory_space<vmem>>, vector<32x32xbf16>
    %34 = arith.truncf %24 : vector<16x32xf32> to vector<16x32xbf16>
    %cst_18 = arith.constant dense<0.000000e+00> : vector<16x32xf32>
    %35 = tpu.matmul %34, %33, %cst_18 {dimension_numbers = #tpu.dot_dimension_numbers<[1], [0], [0], [1], [0, 0, 1, 1], [], []>} : vector<16x32xbf16>, vector<32x32xbf16>, vector<16x32xf32> -> vector<16x32xf32>
    %c0_19 = arith.constant 0 : index
    %c0_20 = arith.constant 0 : index
    %36 = vector.load %arg6[%c0_19, %c0_20] : memref<1x32xf32, #tpu.memory_space<vmem>>, vector<1x32xf32>
    %37 = vector.broadcast %36 : vector<1x32xf32> to vector<16x32xf32>
    %38 = arith.addf %35, %37 : vector<16x32xf32>
    %39 = arith.truncf %38 : vector<16x32xf32> to vector<16x32xbf16>
    %c0_21 = arith.constant 0 : index
    %c0_22 = arith.constant 0 : index
    %40 = vector.load %arg8[%c0_21, %c0_22] : memref<16x32xbf16, #tpu.memory_space<vmem>>, vector<16x32xbf16>
    tpu.vector_store %arg8[%c0_21, %c0_22], %39 {strides = array<i32>} : memref<16x32xbf16, #tpu.memory_space<vmem>>, vector<16x32xbf16>,
    return
  }
}

module attributes {stable_mosaic.version = 11 : i64} {
  func.func @_self_att_kernel(%arg0: i32, %arg1: memref<1x16x32xf32, #tpu.memory_space<vmem>>, %arg2: memref<1x1x16xf32, #tpu.memory_space<vmem>>, %arg3: memref<16x16xf32, #tpu.memory_space<vmem>>, %arg4: memref<1x32xf32, #tpu.memory_space<vmem>>, %arg5: memref<1x32xf32, #tpu.memory_space<vmem>>, %arg6: memref<32x32xbf16, #tpu.memory_space<vmem>>, %arg7: memref<1x32xf32, #tpu.memory_space<vmem>>, %arg8: memref<32x32xbf16, #tpu.memory_space<vmem>>, %arg9: memref<1x32xf32, #tpu.memory_space<vmem>>, %arg10: memref<32x32xbf16, #tpu.memory_space<vmem>>, %arg11: memref<1x32xf32, #tpu.memory_space<vmem>>, %arg12: memref<32x32xbf16, #tpu.memory_space<vmem>>, %arg13: memref<1x32xf32, #tpu.memory_space<vmem>>, %arg14: memref<1x32xf32, #tpu.memory_space<vmem>>, %arg15: memref<1x32xf32, #tpu.memory_space<vmem>>, %arg16: memref<32x128xbf16, #tpu.memory_space<vmem>>, %arg17: memref<1x128xf32, #tpu.memory_space<vmem>>, %arg18: memref<128x32xbf16, #tpu.memory_space<vmem>>, %arg19: memref<1x32xf32, #tpu.memory_space<vmem>>, %arg20: memref<1x16x32xf32, #tpu.memory_space<vmem>>) attributes {dimension_semantics = [#tpu.dimension_semantics<parallel>], iteration_bounds = array<i64: 8>, scalar_prefetch = 0 : i64, scratch_operands = 0 : i64, tpu.core_type = #tpu.core_type<tc>, window_params = [{transform_indices = @transform_0, window_bounds = array<i64: 1, 16, 32>}, {transform_indices = @transform_1, window_bounds = array<i64: 1, 1, 16>}, {pipeline_mode = #tpu.pipeline_mode<synchronous>, transform_indices = @transform_2, window_bounds = array<i64: 16, 16>}, {pipeline_mode = #tpu.pipeline_mode<synchronous>, transform_indices = @transform_3, window_bounds = array<i64: 1, 32>}, {pipeline_mode = #tpu.pipeline_mode<synchronous>, transform_indices = @transform_4, window_bounds = array<i64: 1, 32>}, {pipeline_mode = #tpu.pipeline_mode<synchronous>, transform_indices = @transform_5, window_bounds = array<i64: 32, 32>}, {pipeline_mode = #tpu.pipeline_mode<synchronous>, transform_indices = @transform_6, window_bounds = array<i64: 1, 32>}, {pipeline_mode = #tpu.pipeline_mode<synchronous>, transform_indices = @transform_7, window_bounds = array<i64: 32, 32>}, {pipeline_mode = #tpu.pipeline_mode<synchronous>, transform_indices = @transform_8, window_bounds = array<i64: 1, 32>}, {pipeline_mode = #tpu.pipeline_mode<synchronous>, transform_indices = @transform_9, window_bounds = array<i64: 32, 32>}, {pipeline_mode = #tpu.pipeline_mode<synchronous>, transform_indices = @transform_10, window_bounds = array<i64: 1, 32>}, {pipeline_mode = #tpu.pipeline_mode<synchronous>, transform_indices = @transform_11, window_bounds = array<i64: 32, 32>}, {pipeline_mode = #tpu.pipeline_mode<synchronous>, transform_indices = @transform_12, window_bounds = array<i64: 1, 32>}, {pipeline_mode = #tpu.pipeline_mode<synchronous>, transform_indices = @transform_13, window_bounds = array<i64: 1, 32>}, {pipeline_mode = #tpu.pipeline_mode<synchronous>, transform_indices = @transform_14, window_bounds = array<i64: 1, 32>}, {pipeline_mode = #tpu.pipeline_mode<synchronous>, transform_indices = @transform_15, window_bounds = array<i64: 32, 128>}, {pipeline_mode = #tpu.pipeline_mode<synchronous>, transform_indices = @transform_16, window_bounds = array<i64: 1, 128>}, {pipeline_mode = #tpu.pipeline_mode<synchronous>, transform_indices = @transform_17, window_bounds = array<i64: 128, 32>}, {pipeline_mode = #tpu.pipeline_mode<synchronous>, transform_indices = @transform_18, window_bounds = array<i64: 1, 32>}, {transform_indices = @transform_19, window_bounds = array<i64: 1, 16, 32>}]} {
    %c0 = arith.constant 0 : index
    %c0_0 = arith.constant 0 : index
    %c0_1 = arith.constant 0 : index
    %0 = vector.load %arg1[%c0, %c0_0, %c0_1] : memref<1x16x32xf32, #tpu.memory_space<vmem>>, vector<1x16x32xf32>
    %1 = vector.shape_cast %0 : vector<1x16x32xf32> to vector<16x32xf32>
    %c0_2 = arith.constant 0 : index
    %c0_3 = arith.constant 0 : index
    %2 = vector.load %arg4[%c0_2, %c0_3] : memref<1x32xf32, #tpu.memory_space<vmem>>, vector<1x32xf32>
    %c0_4 = arith.constant 0 : index
    %c0_5 = arith.constant 0 : index
    %3 = vector.load %arg5[%c0_4, %c0_5] : memref<1x32xf32, #tpu.memory_space<vmem>>, vector<1x32xf32>
    %cst = arith.constant dense<0.000000e+00> : vector<16xf32>
    %4 = vector.multi_reduction <add>, %1, %cst [1] : vector<16x32xf32> to vector<16xf32>
    %5 = vector.shape_cast %4 : vector<16xf32> to vector<16x1xf32>
    %cst_6 = arith.constant 3.200000e+01 : f32
    %6 = vector.broadcast %cst_6 : f32 to vector<16x1xf32>
    %7 = arith.divf %5, %6 : vector<16x1xf32>
    %8 = vector.broadcast %7 : vector<16x1xf32> to vector<16x32xf32>
    %9 = arith.subf %1, %8 : vector<16x32xf32>
    %10 = arith.mulf %9, %9 : vector<16x32xf32>
    %cst_7 = arith.constant dense<0.000000e+00> : vector<16xf32>
    %11 = vector.multi_reduction <add>, %10, %cst_7 [1] : vector<16x32xf32> to vector<16xf32>
    %12 = vector.shape_cast %11 : vector<16xf32> to vector<16x1xf32>
    %cst_8 = arith.constant 3.200000e+01 : f32
    %13 = vector.broadcast %cst_8 : f32 to vector<16x1xf32>
    %14 = arith.divf %12, %13 : vector<16x1xf32>
    %15 = vector.broadcast %7 : vector<16x1xf32> to vector<16x32xf32>
    %16 = arith.subf %1, %15 : vector<16x32xf32>
    %cst_9 = arith.constant 9.99999974E-6 : f32
    %17 = vector.broadcast %cst_9 : f32 to vector<16x1xf32>
    %18 = arith.addf %14, %17 : vector<16x1xf32>
    %19 = math.rsqrt %18 : vector<16x1xf32>
    %20 = vector.broadcast %19 : vector<16x1xf32> to vector<16x32xf32>
    %21 = arith.mulf %16, %20 : vector<16x32xf32>
    %22 = vector.broadcast %2 : vector<1x32xf32> to vector<16x32xf32>
    %23 = arith.mulf %21, %22 : vector<16x32xf32>
    %24 = vector.broadcast %3 : vector<1x32xf32> to vector<16x32xf32>
    %25 = arith.addf %23, %24 : vector<16x32xf32>
    %c0_10 = arith.constant 0 : index
    %c0_11 = arith.constant 0 : index
    %26 = vector.load %arg6[%c0_10, %c0_11] : memref<32x32xbf16, #tpu.memory_space<vmem>>, vector<32x32xbf16>
    %27 = arith.truncf %25 : vector<16x32xf32> to vector<16x32xbf16>
    %cst_12 = arith.constant dense<0.000000e+00> : vector<16x32xf32>
    %28 = tpu.matmul %27, %26, %cst_12 {dimension_numbers = #tpu.dot_dimension_numbers<[1], [0], [0], [1], [0, 0, 1, 1], [], []>} : vector<16x32xbf16>, vector<32x32xbf16>, vector<16x32xf32> -> vector<16x32xf32>
    %c0_13 = arith.constant 0 : index
    %c0_14 = arith.constant 0 : index
    %29 = vector.load %arg7[%c0_13, %c0_14] : memref<1x32xf32, #tpu.memory_space<vmem>>, vector<1x32xf32>
    %30 = vector.broadcast %29 : vector<1x32xf32> to vector<16x32xf32>
    %31 = arith.addf %28, %30 : vector<16x32xf32>
    %c0_15 = arith.constant 0 : index
    %c0_16 = arith.constant 0 : index
    %32 = vector.load %arg8[%c0_15, %c0_16] : memref<32x32xbf16, #tpu.memory_space<vmem>>, vector<32x32xbf16>
    %33 = arith.truncf %25 : vector<16x32xf32> to vector<16x32xbf16>
    %cst_17 = arith.constant dense<0.000000e+00> : vector<16x32xf32>
    %34 = tpu.matmul %33, %32, %cst_17 {dimension_numbers = #tpu.dot_dimension_numbers<[1], [0], [0], [1], [0, 0, 1, 1], [], []>} : vector<16x32xbf16>, vector<32x32xbf16>, vector<16x32xf32> -> vector<16x32xf32>
    %c0_18 = arith.constant 0 : index
    %c0_19 = arith.constant 0 : index
    %35 = vector.load %arg9[%c0_18, %c0_19] : memref<1x32xf32, #tpu.memory_space<vmem>>, vector<1x32xf32>
    %36 = vector.broadcast %35 : vector<1x32xf32> to vector<16x32xf32>
    %37 = arith.addf %34, %36 : vector<16x32xf32>
    %c0_20 = arith.constant 0 : index
    %c0_21 = arith.constant 0 : index
    %38 = vector.load %arg10[%c0_20, %c0_21] : memref<32x32xbf16, #tpu.memory_space<vmem>>, vector<32x32xbf16>
    %39 = arith.truncf %25 : vector<16x32xf32> to vector<16x32xbf16>
    %cst_22 = arith.constant dense<0.000000e+00> : vector<16x32xf32>
    %40 = tpu.matmul %39, %38, %cst_22 {dimension_numbers = #tpu.dot_dimension_numbers<[1], [0], [0], [1], [0, 0, 1, 1], [], []>} : vector<16x32xbf16>, vector<32x32xbf16>, vector<16x32xf32> -> vector<16x32xf32>
    %c0_23 = arith.constant 0 : index
    %c0_24 = arith.constant 0 : index
    %41 = vector.load %arg11[%c0_23, %c0_24] : memref<1x32xf32, #tpu.memory_space<vmem>>, vector<1x32xf32>
    %42 = vector.broadcast %41 : vector<1x32xf32> to vector<16x32xf32>
    %43 = arith.addf %40, %42 : vector<16x32xf32>
    %c0_25 = arith.constant 0 : index
    %c0_26 = arith.constant 0 : index
    %c0_27 = arith.constant 0 : index
    %44 = vector.load %arg2[%c0_25, %c0_26, %c0_27] : memref<1x1x16xf32, #tpu.memory_space<vmem>>, vector<1x1x16xf32>
    %45 = vector.shape_cast %44 : vector<1x1x16xf32> to vector<1x16xf32>
    %cst_28 = arith.constant 5.000000e-01 : f32
    %46 = vector.broadcast %cst_28 : f32 to vector<1x16xf32>
    %47 = arith.cmpf ogt, %45, %46 : vector<1x16xf32>
    %c0_29 = arith.constant 0 : index
    %c0_30 = arith.constant 0 : index
    %48 = vector.load %arg3[%c0_29, %c0_30] : memref<16x16xf32, #tpu.memory_space<vmem>>, vector<16x16xf32>
    %cst_31 = arith.constant 5.000000e-01 : f32
    %49 = vector.broadcast %cst_31 : f32 to vector<16x16xf32>
    %50 = arith.cmpf ogt, %48, %49 : vector<16x16xf32>
    %51 = vector.broadcast %47 : vector<1x16xi1> to vector<16x16xi1>
    %52 = arith.andi %51, %50 : vector<16x16xi1>
    %cst_32 = arith.constant 0.000000e+00 : f32
    %cst_33 = arith.constant -1.000000e+09 : f32
    %53 = vector.broadcast %cst_32 : f32 to vector<16x16xf32>
    %54 = vector.broadcast %cst_33 : f32 to vector<16x16xf32>
    %55 = arith.select %52, %53, %54 : vector<16x16xi1>, vector<16x16xf32>
    %c0_34 = arith.constant 0 : index
    %c0_35 = arith.constant 0 : index
    %56 = vector.load %arg12[%c0_34, %c0_35] : memref<32x32xbf16, #tpu.memory_space<vmem>>, vector<32x32xbf16>
    %57 = arith.extf %56 : vector<32x32xbf16> to vector<32x32xf32>
    %cst_36 = arith.constant 0.000000e+00 : f32
    %58 = vector.broadcast %cst_36 : f32 to vector<16x32xf32>
    %59 = vector.extract_strided_slice %31 {offsets = [0, 0], sizes = [16, 8], strides = [1, 1]} : vector<16x32xf32> to vector<16x8xf32>
    %60 = arith.truncf %59 : vector<16x8xf32> to vector<16x8xbf16>
    %61 = vector.extract_strided_slice %37 {offsets = [0, 0], sizes = [16, 8], strides = [1, 1]} : vector<16x32xf32> to vector<16x8xf32>
    %62 = arith.truncf %61 : vector<16x8xf32> to vector<16x8xbf16>
    %63 = vector.extract_strided_slice %43 {offsets = [0, 0], sizes = [16, 8], strides = [1, 1]} : vector<16x32xf32> to vector<16x8xf32>
    %64 = arith.truncf %63 : vector<16x8xf32> to vector<16x8xbf16>
    %cst_37 = arith.constant dense<0.000000e+00> : vector<16x16xf32>
    %65 = tpu.matmul %60, %62, %cst_37 {dimension_numbers = #tpu.dot_dimension_numbers<[1], [1], [0], [0], [0, 0, 1, 0], [], []>} : vector<16x8xbf16>, vector<16x8xbf16>, vector<16x16xf32> -> vector<16x16xf32>
    %cst_38 = arith.constant 0.353553385 : f32
    %66 = vector.broadcast %cst_38 : f32 to vector<16x16xf32>
    %67 = arith.mulf %65, %66 : vector<16x16xf32>
    %68 = arith.addf %67, %55 : vector<16x16xf32>
    %cst_39 = arith.constant dense<0xFF800000> : vector<16xf32>
    %69 = vector.multi_reduction <maximumf>, %68, %cst_39 [1] : vector<16x16xf32> to vector<16xf32>
    %70 = vector.shape_cast %69 : vector<16xf32> to vector<16x1xf32>
    %71 = vector.broadcast %70 : vector<16x1xf32> to vector<16x16xf32>
    %72 = arith.subf %68, %71 : vector<16x16xf32>
    %73 = math.exp %72 : vector<16x16xf32>
    %cst_40 = arith.constant dense<0.000000e+00> : vector<16xf32>
    %74 = vector.multi_reduction <add>, %73, %cst_40 [1] : vector<16x16xf32> to vector<16xf32>
    %75 = vector.shape_cast %74 : vector<16xf32> to vector<16x1xf32>
    %76 = tpu.reciprocal %75 {approx = true} : vector<16x1xf32> -> vector<16x1xf32>
    %77 = vector.broadcast %76 : vector<16x1xf32> to vector<16x16xf32>
    %78 = arith.mulf %73, %77 : vector<16x16xf32>
    %79 = arith.truncf %78 : vector<16x16xf32> to vector<16x16xbf16>
    %cst_41 = arith.constant dense<0.000000e+00> : vector<16x8xf32>
    %80 = tpu.matmul %79, %64, %cst_41 {dimension_numbers = #tpu.dot_dimension_numbers<[1], [0], [0], [1], [0, 0, 1, 1], [], []>} : vector<16x16xbf16>, vector<16x8xbf16>, vector<16x8xf32> -> vector<16x8xf32>
    %81 = arith.truncf %80 : vector<16x8xf32> to vector<16x8xbf16>
    %82 = vector.extract_strided_slice %57 {offsets = [0, 0], sizes = [8, 32], strides = [1, 1]} : vector<32x32xf32> to vector<8x32xf32>
    %83 = arith.truncf %82 : vector<8x32xf32> to vector<8x32xbf16>
    %cst_42 = arith.constant dense<0.000000e+00> : vector<16x32xf32>
    %84 = tpu.matmul %81, %83, %cst_42 {dimension_numbers = #tpu.dot_dimension_numbers<[1], [0], [0], [1], [0, 0, 1, 1], [], []>} : vector<16x8xbf16>, vector<8x32xbf16>, vector<16x32xf32> -> vector<16x32xf32>
    %85 = arith.addf %58, %84 : vector<16x32xf32>
    %86 = vector.extract_strided_slice %31 {offsets = [0, 8], sizes = [16, 8], strides = [1, 1]} : vector<16x32xf32> to vector<16x8xf32>
    %87 = arith.truncf %86 : vector<16x8xf32> to vector<16x8xbf16>
    %88 = vector.extract_strided_slice %37 {offsets = [0, 8], sizes = [16, 8], strides = [1, 1]} : vector<16x32xf32> to vector<16x8xf32>
    %89 = arith.truncf %88 : vector<16x8xf32> to vector<16x8xbf16>
    %90 = vector.extract_strided_slice %43 {offsets = [0, 8], sizes = [16, 8], strides = [1, 1]} : vector<16x32xf32> to vector<16x8xf32>
    %91 = arith.truncf %90 : vector<16x8xf32> to vector<16x8xbf16>
    %cst_43 = arith.constant dense<0.000000e+00> : vector<16x16xf32>
    %92 = tpu.matmul %87, %89, %cst_43 {dimension_numbers = #tpu.dot_dimension_numbers<[1], [1], [0], [0], [0, 0, 1, 0], [], []>} : vector<16x8xbf16>, vector<16x8xbf16>, vector<16x16xf32> -> vector<16x16xf32>
    %cst_44 = arith.constant 0.353553385 : f32
    %93 = vector.broadcast %cst_44 : f32 to vector<16x16xf32>
    %94 = arith.mulf %92, %93 : vector<16x16xf32>
    %95 = arith.addf %94, %55 : vector<16x16xf32>
    %cst_45 = arith.constant dense<0xFF800000> : vector<16xf32>
    %96 = vector.multi_reduction <maximumf>, %95, %cst_45 [1] : vector<16x16xf32> to vector<16xf32>
    %97 = vector.shape_cast %96 : vector<16xf32> to vector<16x1xf32>
    %98 = vector.broadcast %97 : vector<16x1xf32> to vector<16x16xf32>
    %99 = arith.subf %95, %98 : vector<16x16xf32>
    %100 = math.exp %99 : vector<16x16xf32>
    %cst_46 = arith.constant dense<0.000000e+00> : vector<16xf32>
    %101 = vector.multi_reduction <add>, %100, %cst_46 [1] : vector<16x16xf32> to vector<16xf32>
    %102 = vector.shape_cast %101 : vector<16xf32> to vector<16x1xf32>
    %103 = tpu.reciprocal %102 {approx = true} : vector<16x1xf32> -> vector<16x1xf32>
    %104 = vector.broadcast %103 : vector<16x1xf32> to vector<16x16xf32>
    %105 = arith.mulf %100, %104 : vector<16x16xf32>
    %106 = arith.truncf %105 : vector<16x16xf32> to vector<16x16xbf16>
    %cst_47 = arith.constant dense<0.000000e+00> : vector<16x8xf32>
    %107 = tpu.matmul %106, %91, %cst_47 {dimension_numbers = #tpu.dot_dimension_numbers<[1], [0], [0], [1], [0, 0, 1, 1], [], []>} : vector<16x16xbf16>, vector<16x8xbf16>, vector<16x8xf32> -> vector<16x8xf32>
    %108 = arith.truncf %107 : vector<16x8xf32> to vector<16x8xbf16>
    %109 = vector.extract_strided_slice %57 {offsets = [8, 0], sizes = [8, 32], strides = [1, 1]} : vector<32x32xf32> to vector<8x32xf32>
    %110 = arith.truncf %109 : vector<8x32xf32> to vector<8x32xbf16>
    %cst_48 = arith.constant dense<0.000000e+00> : vector<16x32xf32>
    %111 = tpu.matmul %108, %110, %cst_48 {dimension_numbers = #tpu.dot_dimension_numbers<[1], [0], [0], [1], [0, 0, 1, 1], [], []>} : vector<16x8xbf16>, vector<8x32xbf16>, vector<16x32xf32> -> vector<16x32xf32>
    %112 = arith.addf %85, %111 : vector<16x32xf32>
    %113 = vector.extract_strided_slice %31 {offsets = [0, 16], sizes = [16, 8], strides = [1, 1]} : vector<16x32xf32> to vector<16x8xf32>
    %114 = arith.truncf %113 : vector<16x8xf32> to vector<16x8xbf16>
    %115 = vector.extract_strided_slice %37 {offsets = [0, 16], sizes = [16, 8], strides = [1, 1]} : vector<16x32xf32> to vector<16x8xf32>
    %116 = arith.truncf %115 : vector<16x8xf32> to vector<16x8xbf16>
    %117 = vector.extract_strided_slice %43 {offsets = [0, 16], sizes = [16, 8], strides = [1, 1]} : vector<16x32xf32> to vector<16x8xf32>
    %118 = arith.truncf %117 : vector<16x8xf32> to vector<16x8xbf16>
    %cst_49 = arith.constant dense<0.000000e+00> : vector<16x16xf32>
    %119 = tpu.matmul %114, %116, %cst_49 {dimension_numbers = #tpu.dot_dimension_numbers<[1], [1], [0], [0], [0, 0, 1, 0], [], []>} : vector<16x8xbf16>, vector<16x8xbf16>, vector<16x16xf32> -> vector<16x16xf32>
    %cst_50 = arith.constant 0.353553385 : f32
    %120 = vector.broadcast %cst_50 : f32 to vector<16x16xf32>
    %121 = arith.mulf %119, %120 : vector<16x16xf32>
    %122 = arith.addf %121, %55 : vector<16x16xf32>
    %cst_51 = arith.constant dense<0xFF800000> : vector<16xf32>
    %123 = vector.multi_reduction <maximumf>, %122, %cst_51 [1] : vector<16x16xf32> to vector<16xf32>
    %124 = vector.shape_cast %123 : vector<16xf32> to vector<16x1xf32>
    %125 = vector.broadcast %124 : vector<16x1xf32> to vector<16x16xf32>
    %126 = arith.subf %122, %125 : vector<16x16xf32>
    %127 = math.exp %126 : vector<16x16xf32>
    %cst_52 = arith.constant dense<0.000000e+00> : vector<16xf32>
    %128 = vector.multi_reduction <add>, %127, %cst_52 [1] : vector<16x16xf32> to vector<16xf32>
    %129 = vector.shape_cast %128 : vector<16xf32> to vector<16x1xf32>
    %130 = tpu.reciprocal %129 {approx = true} : vector<16x1xf32> -> vector<16x1xf32>
    %131 = vector.broadcast %130 : vector<16x1xf32> to vector<16x16xf32>
    %132 = arith.mulf %127, %131 : vector<16x16xf32>
    %133 = arith.truncf %132 : vector<16x16xf32> to vector<16x16xbf16>
    %cst_53 = arith.constant dense<0.000000e+00> : vector<16x8xf32>
    %134 = tpu.matmul %133, %118, %cst_53 {dimension_numbers = #tpu.dot_dimension_numbers<[1], [0], [0], [1], [0, 0, 1, 1], [], []>} : vector<16x16xbf16>, vector<16x8xbf16>, vector<16x8xf32> -> vector<16x8xf32>
    %135 = arith.truncf %134 : vector<16x8xf32> to vector<16x8xbf16>
    %136 = vector.extract_strided_slice %57 {offsets = [16, 0], sizes = [8, 32], strides = [1, 1]} : vector<32x32xf32> to vector<8x32xf32>
    %137 = arith.truncf %136 : vector<8x32xf32> to vector<8x32xbf16>
    %cst_54 = arith.constant dense<0.000000e+00> : vector<16x32xf32>
    %138 = tpu.matmul %135, %137, %cst_54 {dimension_numbers = #tpu.dot_dimension_numbers<[1], [0], [0], [1], [0, 0, 1, 1], [], []>} : vector<16x8xbf16>, vector<8x32xbf16>, vector<16x32xf32> -> vector<16x32xf32>
    %139 = arith.addf %112, %138 : vector<16x32xf32>
    %140 = vector.extract_strided_slice %31 {offsets = [0, 24], sizes = [16, 8], strides = [1, 1]} : vector<16x32xf32> to vector<16x8xf32>
    %141 = arith.truncf %140 : vector<16x8xf32> to vector<16x8xbf16>
    %142 = vector.extract_strided_slice %37 {offsets = [0, 24], sizes = [16, 8], strides = [1, 1]} : vector<16x32xf32> to vector<16x8xf32>
    %143 = arith.truncf %142 : vector<16x8xf32> to vector<16x8xbf16>
    %144 = vector.extract_strided_slice %43 {offsets = [0, 24], sizes = [16, 8], strides = [1, 1]} : vector<16x32xf32> to vector<16x8xf32>
    %145 = arith.truncf %144 : vector<16x8xf32> to vector<16x8xbf16>
    %cst_55 = arith.constant dense<0.000000e+00> : vector<16x16xf32>
    %146 = tpu.matmul %141, %143, %cst_55 {dimension_numbers = #tpu.dot_dimension_numbers<[1], [1], [0], [0], [0, 0, 1, 0], [], []>} : vector<16x8xbf16>, vector<16x8xbf16>, vector<16x16xf32> -> vector<16x16xf32>
    %cst_56 = arith.constant 0.353553385 : f32
    %147 = vector.broadcast %cst_56 : f32 to vector<16x16xf32>
    %148 = arith.mulf %146, %147 : vector<16x16xf32>
    %149 = arith.addf %148, %55 : vector<16x16xf32>
    %cst_57 = arith.constant dense<0xFF800000> : vector<16xf32>
    %150 = vector.multi_reduction <maximumf>, %149, %cst_57 [1] : vector<16x16xf32> to vector<16xf32>
    %151 = vector.shape_cast %150 : vector<16xf32> to vector<16x1xf32>
    %152 = vector.broadcast %151 : vector<16x1xf32> to vector<16x16xf32>
    %153 = arith.subf %149, %152 : vector<16x16xf32>
    %154 = math.exp %153 : vector<16x16xf32>
    %cst_58 = arith.constant dense<0.000000e+00> : vector<16xf32>
    %155 = vector.multi_reduction <add>, %154, %cst_58 [1] : vector<16x16xf32> to vector<16xf32>
    %156 = vector.shape_cast %155 : vector<16xf32> to vector<16x1xf32>
    %157 = tpu.reciprocal %156 {approx = true} : vector<16x1xf32> -> vector<16x1xf32>
    %158 = vector.broadcast %157 : vector<16x1xf32> to vector<16x16xf32>
    %159 = arith.mulf %154, %158 : vector<16x16xf32>
    %160 = arith.truncf %159 : vector<16x16xf32> to vector<16x16xbf16>
    %cst_59 = arith.constant dense<0.000000e+00> : vector<16x8xf32>
    %161 = tpu.matmul %160, %145, %cst_59 {dimension_numbers = #tpu.dot_dimension_numbers<[1], [0], [0], [1], [0, 0, 1, 1], [], []>} : vector<16x16xbf16>, vector<16x8xbf16>, vector<16x8xf32> -> vector<16x8xf32>
    %162 = arith.truncf %161 : vector<16x8xf32> to vector<16x8xbf16>
    %163 = vector.extract_strided_slice %57 {offsets = [24, 0], sizes = [8, 32], strides = [1, 1]} : vector<32x32xf32> to vector<8x32xf32>
    %164 = arith.truncf %163 : vector<8x32xf32> to vector<8x32xbf16>
    %cst_60 = arith.constant dense<0.000000e+00> : vector<16x32xf32>
    %165 = tpu.matmul %162, %164, %cst_60 {dimension_numbers = #tpu.dot_dimension_numbers<[1], [0], [0], [1], [0, 0, 1, 1], [], []>} : vector<16x8xbf16>, vector<8x32xbf16>, vector<16x32xf32> -> vector<16x32xf32>
    %166 = arith.addf %139, %165 : vector<16x32xf32>
    %c0_61 = arith.constant 0 : index
    %c0_62 = arith.constant 0 : index
    %167 = vector.load %arg13[%c0_61, %c0_62] : memref<1x32xf32, #tpu.memory_space<vmem>>, vector<1x32xf32>
    %168 = vector.broadcast %167 : vector<1x32xf32> to vector<16x32xf32>
    %169 = arith.addf %166, %168 : vector<16x32xf32>
    %170 = arith.addf %1, %169 : vector<16x32xf32>
    %c0_63 = arith.constant 0 : index
    %c0_64 = arith.constant 0 : index
    %171 = vector.load %arg14[%c0_63, %c0_64] : memref<1x32xf32, #tpu.memory_space<vmem>>, vector<1x32xf32>
    %c0_65 = arith.constant 0 : index
    %c0_66 = arith.constant 0 : index
    %172 = vector.load %arg15[%c0_65, %c0_66] : memref<1x32xf32, #tpu.memory_space<vmem>>, vector<1x32xf32>
    %cst_67 = arith.constant dense<0.000000e+00> : vector<16xf32>
    %173 = vector.multi_reduction <add>, %170, %cst_67 [1] : vector<16x32xf32> to vector<16xf32>
    %174 = vector.shape_cast %173 : vector<16xf32> to vector<16x1xf32>
    %cst_68 = arith.constant 3.200000e+01 : f32
    %175 = vector.broadcast %cst_68 : f32 to vector<16x1xf32>
    %176 = arith.divf %174, %175 : vector<16x1xf32>
    %177 = vector.broadcast %176 : vector<16x1xf32> to vector<16x32xf32>
    %178 = arith.subf %170, %177 : vector<16x32xf32>
    %179 = arith.mulf %178, %178 : vector<16x32xf32>
    %cst_69 = arith.constant dense<0.000000e+00> : vector<16xf32>
    %180 = vector.multi_reduction <add>, %179, %cst_69 [1] : vector<16x32xf32> to vector<16xf32>
    %181 = vector.shape_cast %180 : vector<16xf32> to vector<16x1xf32>
    %cst_70 = arith.constant 3.200000e+01 : f32
    %182 = vector.broadcast %cst_70 : f32 to vector<16x1xf32>
    %183 = arith.divf %181, %182 : vector<16x1xf32>
    %184 = vector.broadcast %176 : vector<16x1xf32> to vector<16x32xf32>
    %185 = arith.subf %170, %184 : vector<16x32xf32>
    %cst_71 = arith.constant 9.99999974E-6 : f32
    %186 = vector.broadcast %cst_71 : f32 to vector<16x1xf32>
    %187 = arith.addf %183, %186 : vector<16x1xf32>
    %188 = math.rsqrt %187 : vector<16x1xf32>
    %189 = vector.broadcast %188 : vector<16x1xf32> to vector<16x32xf32>
    %190 = arith.mulf %185, %189 : vector<16x32xf32>
    %191 = vector.broadcast %171 : vector<1x32xf32> to vector<16x32xf32>
    %192 = arith.mulf %190, %191 : vector<16x32xf32>
    %193 = vector.broadcast %172 : vector<1x32xf32> to vector<16x32xf32>
    %194 = arith.addf %192, %193 : vector<16x32xf32>
    %c0_72 = arith.constant 0 : index
    %c0_73 = arith.constant 0 : index
    %195 = vector.load %arg16[%c0_72, %c0_73] : memref<32x128xbf16, #tpu.memory_space<vmem>>, vector<32x128xbf16>
    %196 = arith.truncf %194 : vector<16x32xf32> to vector<16x32xbf16>
    %cst_74 = arith.constant dense<0.000000e+00> : vector<16x128xf32>
    %197 = tpu.matmul %196, %195, %cst_74 {dimension_numbers = #tpu.dot_dimension_numbers<[1], [0], [0], [1], [0, 0, 1, 1], [], []>} : vector<16x32xbf16>, vector<32x128xbf16>, vector<16x128xf32> -> vector<16x128xf32>
    %c0_75 = arith.constant 0 : index
    %c0_76 = arith.constant 0 : index
    %198 = vector.load %arg17[%c0_75, %c0_76] : memref<1x128xf32, #tpu.memory_space<vmem>>, vector<1x128xf32>
    %199 = vector.broadcast %198 : vector<1x128xf32> to vector<16x128xf32>
    %200 = arith.addf %197, %199 : vector<16x128xf32>
    %cst_77 = arith.constant 0.000000e+00 : f32
    %201 = vector.broadcast %cst_77 : f32 to vector<16x128xf32>
    %202 = arith.maximumf %200, %201 : vector<16x128xf32>
    %c0_78 = arith.constant 0 : index
    %c0_79 = arith.constant 0 : index
    %203 = vector.load %arg18[%c0_78, %c0_79] : memref<128x32xbf16, #tpu.memory_space<vmem>>, vector<128x32xbf16>
    %204 = arith.truncf %202 : vector<16x128xf32> to vector<16x128xbf16>
    %cst_80 = arith.constant dense<0.000000e+00> : vector<16x32xf32>
    %205 = tpu.matmul %204, %203, %cst_80 {dimension_numbers = #tpu.dot_dimension_numbers<[1], [0], [0], [1], [0, 0, 1, 1], [], []>} : vector<16x128xbf16>, vector<128x32xbf16>, vector<16x32xf32> -> vector<16x32xf32>
    %c0_81 = arith.constant 0 : index
    %c0_82 = arith.constant 0 : index
    %206 = vector.load %arg19[%c0_81, %c0_82] : memref<1x32xf32, #tpu.memory_space<vmem>>, vector<1x32xf32>
    %207 = vector.broadcast %206 : vector<1x32xf32> to vector<16x32xf32>
    %208 = arith.addf %205, %207 : vector<16x32xf32>
    %209 = arith.addf %170, %208 : vector<16x32xf32>
    %c0_83 = arith.constant 0 : index
    %c0_84 = arith.constant 0 : index
    %c0_85 = arith.constant 0 : index
    %210 = vector.load %arg20[%c0_83, %c0_84, %c0_85] : memref<1x16x32xf32, #tpu.memory_space<vmem>>, vector<1x16x32xf32>
    %211 = vector.shape_cast %210 : vector<1x16x32xf32> to vector<16x32xf32>
    %212 = vector.shape_cast %209 : vector<16x32xf32> to vector<1x16x32xf32>
    tpu.vector_store %arg20[%c0_83, %c0_84, %c0_85], %212 {strides = array<i32>} : memref<1x16x32xf32, #tpu.memory_space<vmem>>, vector<1x16x32xf32>,
    return
  }
  func.func @transform_0(%arg0: i32) -> (i32, i32, i32) {
    %c0_i32 = arith.constant 0 : i32
    %c0_i32_0 = arith.constant 0 : i32
    %c0_i32_1 = arith.constant 0 : i32
    return %arg0, %c0_i32, %c0_i32_0 : i32, i32, i32
  }
  func.func @transform_1(%arg0: i32) -> (i32, i32, i32) {
    %c0_i32 = arith.constant 0 : i32
    %c0_i32_0 = arith.constant 0 : i32
    %c0_i32_1 = arith.constant 0 : i32
    return %arg0, %c0_i32, %c0_i32_0 : i32, i32, i32
  }
  func.func @transform_2(%arg0: i32) -> (i32, i32) {
    %c0_i32 = arith.constant 0 : i32
    %c0_i32_0 = arith.constant 0 : i32
    %c0_i32_1 = arith.constant 0 : i32
    return %c0_i32, %c0_i32_0 : i32, i32
  }
  func.func @transform_3(%arg0: i32) -> (i32, i32) {
    %c0_i32 = arith.constant 0 : i32
    %c0_i32_0 = arith.constant 0 : i32
    %c0_i32_1 = arith.constant 0 : i32
    return %c0_i32, %c0_i32_0 : i32, i32
  }
  func.func @transform_4(%arg0: i32) -> (i32, i32) {
    %c0_i32 = arith.constant 0 : i32
    %c0_i32_0 = arith.constant 0 : i32
    %c0_i32_1 = arith.constant 0 : i32
    return %c0_i32, %c0_i32_0 : i32, i32
  }
  func.func @transform_5(%arg0: i32) -> (i32, i32) {
    %c0_i32 = arith.constant 0 : i32
    %c0_i32_0 = arith.constant 0 : i32
    %c0_i32_1 = arith.constant 0 : i32
    return %c0_i32, %c0_i32_0 : i32, i32
  }
  func.func @transform_6(%arg0: i32) -> (i32, i32) {
    %c0_i32 = arith.constant 0 : i32
    %c0_i32_0 = arith.constant 0 : i32
    %c0_i32_1 = arith.constant 0 : i32
    return %c0_i32, %c0_i32_0 : i32, i32
  }
  func.func @transform_7(%arg0: i32) -> (i32, i32) {
    %c0_i32 = arith.constant 0 : i32
    %c0_i32_0 = arith.constant 0 : i32
    %c0_i32_1 = arith.constant 0 : i32
    return %c0_i32, %c0_i32_0 : i32, i32
  }
  func.func @transform_8(%arg0: i32) -> (i32, i32) {
    %c0_i32 = arith.constant 0 : i32
    %c0_i32_0 = arith.constant 0 : i32
    %c0_i32_1 = arith.constant 0 : i32
    return %c0_i32, %c0_i32_0 : i32, i32
  }
  func.func @transform_9(%arg0: i32) -> (i32, i32) {
    %c0_i32 = arith.constant 0 : i32
    %c0_i32_0 = arith.constant 0 : i32
    %c0_i32_1 = arith.constant 0 : i32
    return %c0_i32, %c0_i32_0 : i32, i32
  }
  func.func @transform_10(%arg0: i32) -> (i32, i32) {
    %c0_i32 = arith.constant 0 : i32
    %c0_i32_0 = arith.constant 0 : i32
    %c0_i32_1 = arith.constant 0 : i32
    return %c0_i32, %c0_i32_0 : i32, i32
  }
  func.func @transform_11(%arg0: i32) -> (i32, i32) {
    %c0_i32 = arith.constant 0 : i32
    %c0_i32_0 = arith.constant 0 : i32
    %c0_i32_1 = arith.constant 0 : i32
    return %c0_i32, %c0_i32_0 : i32, i32
  }
  func.func @transform_12(%arg0: i32) -> (i32, i32) {
    %c0_i32 = arith.constant 0 : i32
    %c0_i32_0 = arith.constant 0 : i32
    %c0_i32_1 = arith.constant 0 : i32
    return %c0_i32, %c0_i32_0 : i32, i32
  }
  func.func @transform_13(%arg0: i32) -> (i32, i32) {
    %c0_i32 = arith.constant 0 : i32
    %c0_i32_0 = arith.constant 0 : i32
    %c0_i32_1 = arith.constant 0 : i32
    return %c0_i32, %c0_i32_0 : i32, i32
  }
  func.func @transform_14(%arg0: i32) -> (i32, i32) {
    %c0_i32 = arith.constant 0 : i32
    %c0_i32_0 = arith.constant 0 : i32
    %c0_i32_1 = arith.constant 0 : i32
    return %c0_i32, %c0_i32_0 : i32, i32
  }
  func.func @transform_15(%arg0: i32) -> (i32, i32) {
    %c0_i32 = arith.constant 0 : i32
    %c0_i32_0 = arith.constant 0 : i32
    %c0_i32_1 = arith.constant 0 : i32
    return %c0_i32, %c0_i32_0 : i32, i32
  }
  func.func @transform_16(%arg0: i32) -> (i32, i32) {
    %c0_i32 = arith.constant 0 : i32
    %c0_i32_0 = arith.constant 0 : i32
    %c0_i32_1 = arith.constant 0 : i32
    return %c0_i32, %c0_i32_0 : i32, i32
  }
  func.func @transform_17(%arg0: i32) -> (i32, i32) {
    %c0_i32 = arith.constant 0 : i32
    %c0_i32_0 = arith.constant 0 : i32
    %c0_i32_1 = arith.constant 0 : i32
    return %c0_i32, %c0_i32_0 : i32, i32
  }
  func.func @transform_18(%arg0: i32) -> (i32, i32) {
    %c0_i32 = arith.constant 0 : i32
    %c0_i32_0 = arith.constant 0 : i32
    %c0_i32_1 = arith.constant 0 : i32
    return %c0_i32, %c0_i32_0 : i32, i32
  }
  func.func @transform_19(%arg0: i32) -> (i32, i32, i32) {
    %c0_i32 = arith.constant 0 : i32
    %c0_i32_0 = arith.constant 0 : i32
    %c0_i32_1 = arith.constant 0 : i32
    return %arg0, %c0_i32, %c0_i32_0 : i32, i32, i32
  }
}

module attributes {stable_mosaic.version = 11 : i64} {
  func.func @_self_att_kernel(%arg0: i32, %arg1: memref<1x8x32xf32, #tpu.memory_space<vmem>>, %arg2: memref<1x1x8xf32, #tpu.memory_space<vmem>>, %arg3: memref<8x8xf32, #tpu.memory_space<vmem>>, %arg4: memref<1x32xf32, #tpu.memory_space<vmem>>, %arg5: memref<1x32xf32, #tpu.memory_space<vmem>>, %arg6: memref<32x32xbf16, #tpu.memory_space<vmem>>, %arg7: memref<1x32xf32, #tpu.memory_space<vmem>>, %arg8: memref<32x32xbf16, #tpu.memory_space<vmem>>, %arg9: memref<1x32xf32, #tpu.memory_space<vmem>>, %arg10: memref<32x32xbf16, #tpu.memory_space<vmem>>, %arg11: memref<1x32xf32, #tpu.memory_space<vmem>>, %arg12: memref<32x32xbf16, #tpu.memory_space<vmem>>, %arg13: memref<1x32xf32, #tpu.memory_space<vmem>>, %arg14: memref<1x32xf32, #tpu.memory_space<vmem>>, %arg15: memref<1x32xf32, #tpu.memory_space<vmem>>, %arg16: memref<32x128xbf16, #tpu.memory_space<vmem>>, %arg17: memref<1x128xf32, #tpu.memory_space<vmem>>, %arg18: memref<128x32xbf16, #tpu.memory_space<vmem>>, %arg19: memref<1x32xf32, #tpu.memory_space<vmem>>, %arg20: memref<1x8x32xf32, #tpu.memory_space<vmem>>) attributes {dimension_semantics = [#tpu.dimension_semantics<parallel>], iteration_bounds = array<i64: 16>, scalar_prefetch = 0 : i64, scratch_operands = 0 : i64, tpu.core_type = #tpu.core_type<tc>, window_params = [{transform_indices = @transform_0, window_bounds = array<i64: 1, 8, 32>}, {transform_indices = @transform_1, window_bounds = array<i64: 1, 1, 8>}, {pipeline_mode = #tpu.pipeline_mode<synchronous>, transform_indices = @transform_2, window_bounds = array<i64: 8, 8>}, {pipeline_mode = #tpu.pipeline_mode<synchronous>, transform_indices = @transform_3, window_bounds = array<i64: 1, 32>}, {pipeline_mode = #tpu.pipeline_mode<synchronous>, transform_indices = @transform_4, window_bounds = array<i64: 1, 32>}, {pipeline_mode = #tpu.pipeline_mode<synchronous>, transform_indices = @transform_5, window_bounds = array<i64: 32, 32>}, {pipeline_mode = #tpu.pipeline_mode<synchronous>, transform_indices = @transform_6, window_bounds = array<i64: 1, 32>}, {pipeline_mode = #tpu.pipeline_mode<synchronous>, transform_indices = @transform_7, window_bounds = array<i64: 32, 32>}, {pipeline_mode = #tpu.pipeline_mode<synchronous>, transform_indices = @transform_8, window_bounds = array<i64: 1, 32>}, {pipeline_mode = #tpu.pipeline_mode<synchronous>, transform_indices = @transform_9, window_bounds = array<i64: 32, 32>}, {pipeline_mode = #tpu.pipeline_mode<synchronous>, transform_indices = @transform_10, window_bounds = array<i64: 1, 32>}, {pipeline_mode = #tpu.pipeline_mode<synchronous>, transform_indices = @transform_11, window_bounds = array<i64: 32, 32>}, {pipeline_mode = #tpu.pipeline_mode<synchronous>, transform_indices = @transform_12, window_bounds = array<i64: 1, 32>}, {pipeline_mode = #tpu.pipeline_mode<synchronous>, transform_indices = @transform_13, window_bounds = array<i64: 1, 32>}, {pipeline_mode = #tpu.pipeline_mode<synchronous>, transform_indices = @transform_14, window_bounds = array<i64: 1, 32>}, {pipeline_mode = #tpu.pipeline_mode<synchronous>, transform_indices = @transform_15, window_bounds = array<i64: 32, 128>}, {pipeline_mode = #tpu.pipeline_mode<synchronous>, transform_indices = @transform_16, window_bounds = array<i64: 1, 128>}, {pipeline_mode = #tpu.pipeline_mode<synchronous>, transform_indices = @transform_17, window_bounds = array<i64: 128, 32>}, {pipeline_mode = #tpu.pipeline_mode<synchronous>, transform_indices = @transform_18, window_bounds = array<i64: 1, 32>}, {transform_indices = @transform_19, window_bounds = array<i64: 1, 8, 32>}]} {
    %c0 = arith.constant 0 : index
    %c0_0 = arith.constant 0 : index
    %c0_1 = arith.constant 0 : index
    %0 = vector.load %arg1[%c0, %c0_0, %c0_1] : memref<1x8x32xf32, #tpu.memory_space<vmem>>, vector<1x8x32xf32>
    %1 = vector.shape_cast %0 : vector<1x8x32xf32> to vector<8x32xf32>
    %c0_2 = arith.constant 0 : index
    %c0_3 = arith.constant 0 : index
    %2 = vector.load %arg4[%c0_2, %c0_3] : memref<1x32xf32, #tpu.memory_space<vmem>>, vector<1x32xf32>
    %c0_4 = arith.constant 0 : index
    %c0_5 = arith.constant 0 : index
    %3 = vector.load %arg5[%c0_4, %c0_5] : memref<1x32xf32, #tpu.memory_space<vmem>>, vector<1x32xf32>
    %cst = arith.constant dense<0.000000e+00> : vector<8xf32>
    %4 = vector.multi_reduction <add>, %1, %cst [1] : vector<8x32xf32> to vector<8xf32>
    %5 = vector.shape_cast %4 : vector<8xf32> to vector<8x1xf32>
    %cst_6 = arith.constant 3.200000e+01 : f32
    %6 = vector.broadcast %cst_6 : f32 to vector<8x1xf32>
    %7 = arith.divf %5, %6 : vector<8x1xf32>
    %8 = vector.broadcast %7 : vector<8x1xf32> to vector<8x32xf32>
    %9 = arith.subf %1, %8 : vector<8x32xf32>
    %10 = arith.mulf %9, %9 : vector<8x32xf32>
    %cst_7 = arith.constant dense<0.000000e+00> : vector<8xf32>
    %11 = vector.multi_reduction <add>, %10, %cst_7 [1] : vector<8x32xf32> to vector<8xf32>
    %12 = vector.shape_cast %11 : vector<8xf32> to vector<8x1xf32>
    %cst_8 = arith.constant 3.200000e+01 : f32
    %13 = vector.broadcast %cst_8 : f32 to vector<8x1xf32>
    %14 = arith.divf %12, %13 : vector<8x1xf32>
    %15 = vector.broadcast %7 : vector<8x1xf32> to vector<8x32xf32>
    %16 = arith.subf %1, %15 : vector<8x32xf32>
    %cst_9 = arith.constant 9.99999974E-6 : f32
    %17 = vector.broadcast %cst_9 : f32 to vector<8x1xf32>
    %18 = arith.addf %14, %17 : vector<8x1xf32>
    %19 = math.rsqrt %18 : vector<8x1xf32>
    %20 = vector.broadcast %19 : vector<8x1xf32> to vector<8x32xf32>
    %21 = arith.mulf %16, %20 : vector<8x32xf32>
    %22 = vector.broadcast %2 : vector<1x32xf32> to vector<8x32xf32>
    %23 = arith.mulf %21, %22 : vector<8x32xf32>
    %24 = vector.broadcast %3 : vector<1x32xf32> to vector<8x32xf32>
    %25 = arith.addf %23, %24 : vector<8x32xf32>
    %c0_10 = arith.constant 0 : index
    %c0_11 = arith.constant 0 : index
    %26 = vector.load %arg6[%c0_10, %c0_11] : memref<32x32xbf16, #tpu.memory_space<vmem>>, vector<32x32xbf16>
    %27 = arith.truncf %25 : vector<8x32xf32> to vector<8x32xbf16>
    %cst_12 = arith.constant dense<0.000000e+00> : vector<8x32xf32>
    %28 = tpu.matmul %27, %26, %cst_12 {dimension_numbers = #tpu.dot_dimension_numbers<[1], [0], [0], [1], [0, 0, 1, 1], [], []>} : vector<8x32xbf16>, vector<32x32xbf16>, vector<8x32xf32> -> vector<8x32xf32>
    %c0_13 = arith.constant 0 : index
    %c0_14 = arith.constant 0 : index
    %29 = vector.load %arg7[%c0_13, %c0_14] : memref<1x32xf32, #tpu.memory_space<vmem>>, vector<1x32xf32>
    %30 = vector.broadcast %29 : vector<1x32xf32> to vector<8x32xf32>
    %31 = arith.addf %28, %30 : vector<8x32xf32>
    %c0_15 = arith.constant 0 : index
    %c0_16 = arith.constant 0 : index
    %32 = vector.load %arg8[%c0_15, %c0_16] : memref<32x32xbf16, #tpu.memory_space<vmem>>, vector<32x32xbf16>
    %33 = arith.truncf %25 : vector<8x32xf32> to vector<8x32xbf16>
    %cst_17 = arith.constant dense<0.000000e+00> : vector<8x32xf32>
    %34 = tpu.matmul %33, %32, %cst_17 {dimension_numbers = #tpu.dot_dimension_numbers<[1], [0], [0], [1], [0, 0, 1, 1], [], []>} : vector<8x32xbf16>, vector<32x32xbf16>, vector<8x32xf32> -> vector<8x32xf32>
    %c0_18 = arith.constant 0 : index
    %c0_19 = arith.constant 0 : index
    %35 = vector.load %arg9[%c0_18, %c0_19] : memref<1x32xf32, #tpu.memory_space<vmem>>, vector<1x32xf32>
    %36 = vector.broadcast %35 : vector<1x32xf32> to vector<8x32xf32>
    %37 = arith.addf %34, %36 : vector<8x32xf32>
    %c0_20 = arith.constant 0 : index
    %c0_21 = arith.constant 0 : index
    %38 = vector.load %arg10[%c0_20, %c0_21] : memref<32x32xbf16, #tpu.memory_space<vmem>>, vector<32x32xbf16>
    %39 = arith.truncf %25 : vector<8x32xf32> to vector<8x32xbf16>
    %cst_22 = arith.constant dense<0.000000e+00> : vector<8x32xf32>
    %40 = tpu.matmul %39, %38, %cst_22 {dimension_numbers = #tpu.dot_dimension_numbers<[1], [0], [0], [1], [0, 0, 1, 1], [], []>} : vector<8x32xbf16>, vector<32x32xbf16>, vector<8x32xf32> -> vector<8x32xf32>
    %c0_23 = arith.constant 0 : index
    %c0_24 = arith.constant 0 : index
    %41 = vector.load %arg11[%c0_23, %c0_24] : memref<1x32xf32, #tpu.memory_space<vmem>>, vector<1x32xf32>
    %42 = vector.broadcast %41 : vector<1x32xf32> to vector<8x32xf32>
    %43 = arith.addf %40, %42 : vector<8x32xf32>
    %c0_25 = arith.constant 0 : index
    %c0_26 = arith.constant 0 : index
    %c0_27 = arith.constant 0 : index
    %44 = vector.load %arg2[%c0_25, %c0_26, %c0_27] : memref<1x1x8xf32, #tpu.memory_space<vmem>>, vector<1x1x8xf32>
    %45 = vector.shape_cast %44 : vector<1x1x8xf32> to vector<1x8xf32>
    %cst_28 = arith.constant 5.000000e-01 : f32
    %46 = vector.broadcast %cst_28 : f32 to vector<1x8xf32>
    %47 = arith.cmpf ogt, %45, %46 : vector<1x8xf32>
    %c0_29 = arith.constant 0 : index
    %c0_30 = arith.constant 0 : index
    %48 = vector.load %arg3[%c0_29, %c0_30] : memref<8x8xf32, #tpu.memory_space<vmem>>, vector<8x8xf32>
    %cst_31 = arith.constant 5.000000e-01 : f32
    %49 = vector.broadcast %cst_31 : f32 to vector<8x8xf32>
    %50 = arith.cmpf ogt, %48, %49 : vector<8x8xf32>
    %51 = vector.broadcast %47 : vector<1x8xi1> to vector<8x8xi1>
    %52 = arith.andi %51, %50 : vector<8x8xi1>
    %cst_32 = arith.constant 0.000000e+00 : f32
    %cst_33 = arith.constant -1.000000e+09 : f32
    %53 = vector.broadcast %cst_32 : f32 to vector<8x8xf32>
    %54 = vector.broadcast %cst_33 : f32 to vector<8x8xf32>
    %55 = arith.select %52, %53, %54 : vector<8x8xi1>, vector<8x8xf32>
    %c0_34 = arith.constant 0 : index
    %c0_35 = arith.constant 0 : index
    %56 = vector.load %arg12[%c0_34, %c0_35] : memref<32x32xbf16, #tpu.memory_space<vmem>>, vector<32x32xbf16>
    %57 = arith.extf %56 : vector<32x32xbf16> to vector<32x32xf32>
    %cst_36 = arith.constant 0.000000e+00 : f32
    %58 = vector.broadcast %cst_36 : f32 to vector<8x32xf32>
    %59 = vector.extract_strided_slice %31 {offsets = [0, 0], sizes = [8, 8], strides = [1, 1]} : vector<8x32xf32> to vector<8x8xf32>
    %60 = arith.truncf %59 : vector<8x8xf32> to vector<8x8xbf16>
    %61 = vector.extract_strided_slice %37 {offsets = [0, 0], sizes = [8, 8], strides = [1, 1]} : vector<8x32xf32> to vector<8x8xf32>
    %62 = arith.truncf %61 : vector<8x8xf32> to vector<8x8xbf16>
    %63 = vector.extract_strided_slice %43 {offsets = [0, 0], sizes = [8, 8], strides = [1, 1]} : vector<8x32xf32> to vector<8x8xf32>
    %64 = arith.truncf %63 : vector<8x8xf32> to vector<8x8xbf16>
    %cst_37 = arith.constant dense<0.000000e+00> : vector<8x8xf32>
    %65 = tpu.matmul %60, %62, %cst_37 {dimension_numbers = #tpu.dot_dimension_numbers<[1], [1], [0], [0], [0, 0, 1, 0], [], []>} : vector<8x8xbf16>, vector<8x8xbf16>, vector<8x8xf32> -> vector<8x8xf32>
    %cst_38 = arith.constant 0.353553385 : f32
    %66 = vector.broadcast %cst_38 : f32 to vector<8x8xf32>
    %67 = arith.mulf %65, %66 : vector<8x8xf32>
    %68 = arith.addf %67, %55 : vector<8x8xf32>
    %cst_39 = arith.constant dense<0xFF800000> : vector<8xf32>
    %69 = vector.multi_reduction <maximumf>, %68, %cst_39 [1] : vector<8x8xf32> to vector<8xf32>
    %70 = vector.shape_cast %69 : vector<8xf32> to vector<8x1xf32>
    %71 = vector.broadcast %70 : vector<8x1xf32> to vector<8x8xf32>
    %72 = arith.subf %68, %71 : vector<8x8xf32>
    %73 = math.exp %72 : vector<8x8xf32>
    %cst_40 = arith.constant dense<0.000000e+00> : vector<8xf32>
    %74 = vector.multi_reduction <add>, %73, %cst_40 [1] : vector<8x8xf32> to vector<8xf32>
    %75 = vector.shape_cast %74 : vector<8xf32> to vector<8x1xf32>
    %76 = tpu.reciprocal %75 {approx = true} : vector<8x1xf32> -> vector<8x1xf32>
    %77 = vector.broadcast %76 : vector<8x1xf32> to vector<8x8xf32>
    %78 = arith.mulf %73, %77 : vector<8x8xf32>
    %79 = arith.truncf %78 : vector<8x8xf32> to vector<8x8xbf16>
    %cst_41 = arith.constant dense<0.000000e+00> : vector<8x8xf32>
    %80 = tpu.matmul %79, %64, %cst_41 {dimension_numbers = #tpu.dot_dimension_numbers<[1], [0], [0], [1], [0, 0, 1, 1], [], []>} : vector<8x8xbf16>, vector<8x8xbf16>, vector<8x8xf32> -> vector<8x8xf32>
    %81 = arith.truncf %80 : vector<8x8xf32> to vector<8x8xbf16>
    %82 = vector.extract_strided_slice %57 {offsets = [0, 0], sizes = [8, 32], strides = [1, 1]} : vector<32x32xf32> to vector<8x32xf32>
    %83 = arith.truncf %82 : vector<8x32xf32> to vector<8x32xbf16>
    %cst_42 = arith.constant dense<0.000000e+00> : vector<8x32xf32>
    %84 = tpu.matmul %81, %83, %cst_42 {dimension_numbers = #tpu.dot_dimension_numbers<[1], [0], [0], [1], [0, 0, 1, 1], [], []>} : vector<8x8xbf16>, vector<8x32xbf16>, vector<8x32xf32> -> vector<8x32xf32>
    %85 = arith.addf %58, %84 : vector<8x32xf32>
    %86 = vector.extract_strided_slice %31 {offsets = [0, 8], sizes = [8, 8], strides = [1, 1]} : vector<8x32xf32> to vector<8x8xf32>
    %87 = arith.truncf %86 : vector<8x8xf32> to vector<8x8xbf16>
    %88 = vector.extract_strided_slice %37 {offsets = [0, 8], sizes = [8, 8], strides = [1, 1]} : vector<8x32xf32> to vector<8x8xf32>
    %89 = arith.truncf %88 : vector<8x8xf32> to vector<8x8xbf16>
    %90 = vector.extract_strided_slice %43 {offsets = [0, 8], sizes = [8, 8], strides = [1, 1]} : vector<8x32xf32> to vector<8x8xf32>
    %91 = arith.truncf %90 : vector<8x8xf32> to vector<8x8xbf16>
    %cst_43 = arith.constant dense<0.000000e+00> : vector<8x8xf32>
    %92 = tpu.matmul %87, %89, %cst_43 {dimension_numbers = #tpu.dot_dimension_numbers<[1], [1], [0], [0], [0, 0, 1, 0], [], []>} : vector<8x8xbf16>, vector<8x8xbf16>, vector<8x8xf32> -> vector<8x8xf32>
    %cst_44 = arith.constant 0.353553385 : f32
    %93 = vector.broadcast %cst_44 : f32 to vector<8x8xf32>
    %94 = arith.mulf %92, %93 : vector<8x8xf32>
    %95 = arith.addf %94, %55 : vector<8x8xf32>
    %cst_45 = arith.constant dense<0xFF800000> : vector<8xf32>
    %96 = vector.multi_reduction <maximumf>, %95, %cst_45 [1] : vector<8x8xf32> to vector<8xf32>
    %97 = vector.shape_cast %96 : vector<8xf32> to vector<8x1xf32>
    %98 = vector.broadcast %97 : vector<8x1xf32> to vector<8x8xf32>
    %99 = arith.subf %95, %98 : vector<8x8xf32>
    %100 = math.exp %99 : vector<8x8xf32>
    %cst_46 = arith.constant dense<0.000000e+00> : vector<8xf32>
    %101 = vector.multi_reduction <add>, %100, %cst_46 [1] : vector<8x8xf32> to vector<8xf32>
    %102 = vector.shape_cast %101 : vector<8xf32> to vector<8x1xf32>
    %103 = tpu.reciprocal %102 {approx = true} : vector<8x1xf32> -> vector<8x1xf32>
    %104 = vector.broadcast %103 : vector<8x1xf32> to vector<8x8xf32>
    %105 = arith.mulf %100, %104 : vector<8x8xf32>
    %106 = arith.truncf %105 : vector<8x8xf32> to vector<8x8xbf16>
    %cst_47 = arith.constant dense<0.000000e+00> : vector<8x8xf32>
    %107 = tpu.matmul %106, %91, %cst_47 {dimension_numbers = #tpu.dot_dimension_numbers<[1], [0], [0], [1], [0, 0, 1, 1], [], []>} : vector<8x8xbf16>, vector<8x8xbf16>, vector<8x8xf32> -> vector<8x8xf32>
    %108 = arith.truncf %107 : vector<8x8xf32> to vector<8x8xbf16>
    %109 = vector.extract_strided_slice %57 {offsets = [8, 0], sizes = [8, 32], strides = [1, 1]} : vector<32x32xf32> to vector<8x32xf32>
    %110 = arith.truncf %109 : vector<8x32xf32> to vector<8x32xbf16>
    %cst_48 = arith.constant dense<0.000000e+00> : vector<8x32xf32>
    %111 = tpu.matmul %108, %110, %cst_48 {dimension_numbers = #tpu.dot_dimension_numbers<[1], [0], [0], [1], [0, 0, 1, 1], [], []>} : vector<8x8xbf16>, vector<8x32xbf16>, vector<8x32xf32> -> vector<8x32xf32>
    %112 = arith.addf %85, %111 : vector<8x32xf32>
    %113 = vector.extract_strided_slice %31 {offsets = [0, 16], sizes = [8, 8], strides = [1, 1]} : vector<8x32xf32> to vector<8x8xf32>
    %114 = arith.truncf %113 : vector<8x8xf32> to vector<8x8xbf16>
    %115 = vector.extract_strided_slice %37 {offsets = [0, 16], sizes = [8, 8], strides = [1, 1]} : vector<8x32xf32> to vector<8x8xf32>
    %116 = arith.truncf %115 : vector<8x8xf32> to vector<8x8xbf16>
    %117 = vector.extract_strided_slice %43 {offsets = [0, 16], sizes = [8, 8], strides = [1, 1]} : vector<8x32xf32> to vector<8x8xf32>
    %118 = arith.truncf %117 : vector<8x8xf32> to vector<8x8xbf16>
    %cst_49 = arith.constant dense<0.000000e+00> : vector<8x8xf32>
    %119 = tpu.matmul %114, %116, %cst_49 {dimension_numbers = #tpu.dot_dimension_numbers<[1], [1], [0], [0], [0, 0, 1, 0], [], []>} : vector<8x8xbf16>, vector<8x8xbf16>, vector<8x8xf32> -> vector<8x8xf32>
    %cst_50 = arith.constant 0.353553385 : f32
    %120 = vector.broadcast %cst_50 : f32 to vector<8x8xf32>
    %121 = arith.mulf %119, %120 : vector<8x8xf32>
    %122 = arith.addf %121, %55 : vector<8x8xf32>
    %cst_51 = arith.constant dense<0xFF800000> : vector<8xf32>
    %123 = vector.multi_reduction <maximumf>, %122, %cst_51 [1] : vector<8x8xf32> to vector<8xf32>
    %124 = vector.shape_cast %123 : vector<8xf32> to vector<8x1xf32>
    %125 = vector.broadcast %124 : vector<8x1xf32> to vector<8x8xf32>
    %126 = arith.subf %122, %125 : vector<8x8xf32>
    %127 = math.exp %126 : vector<8x8xf32>
    %cst_52 = arith.constant dense<0.000000e+00> : vector<8xf32>
    %128 = vector.multi_reduction <add>, %127, %cst_52 [1] : vector<8x8xf32> to vector<8xf32>
    %129 = vector.shape_cast %128 : vector<8xf32> to vector<8x1xf32>
    %130 = tpu.reciprocal %129 {approx = true} : vector<8x1xf32> -> vector<8x1xf32>
    %131 = vector.broadcast %130 : vector<8x1xf32> to vector<8x8xf32>
    %132 = arith.mulf %127, %131 : vector<8x8xf32>
    %133 = arith.truncf %132 : vector<8x8xf32> to vector<8x8xbf16>
    %cst_53 = arith.constant dense<0.000000e+00> : vector<8x8xf32>
    %134 = tpu.matmul %133, %118, %cst_53 {dimension_numbers = #tpu.dot_dimension_numbers<[1], [0], [0], [1], [0, 0, 1, 1], [], []>} : vector<8x8xbf16>, vector<8x8xbf16>, vector<8x8xf32> -> vector<8x8xf32>
    %135 = arith.truncf %134 : vector<8x8xf32> to vector<8x8xbf16>
    %136 = vector.extract_strided_slice %57 {offsets = [16, 0], sizes = [8, 32], strides = [1, 1]} : vector<32x32xf32> to vector<8x32xf32>
    %137 = arith.truncf %136 : vector<8x32xf32> to vector<8x32xbf16>
    %cst_54 = arith.constant dense<0.000000e+00> : vector<8x32xf32>
    %138 = tpu.matmul %135, %137, %cst_54 {dimension_numbers = #tpu.dot_dimension_numbers<[1], [0], [0], [1], [0, 0, 1, 1], [], []>} : vector<8x8xbf16>, vector<8x32xbf16>, vector<8x32xf32> -> vector<8x32xf32>
    %139 = arith.addf %112, %138 : vector<8x32xf32>
    %140 = vector.extract_strided_slice %31 {offsets = [0, 24], sizes = [8, 8], strides = [1, 1]} : vector<8x32xf32> to vector<8x8xf32>
    %141 = arith.truncf %140 : vector<8x8xf32> to vector<8x8xbf16>
    %142 = vector.extract_strided_slice %37 {offsets = [0, 24], sizes = [8, 8], strides = [1, 1]} : vector<8x32xf32> to vector<8x8xf32>
    %143 = arith.truncf %142 : vector<8x8xf32> to vector<8x8xbf16>
    %144 = vector.extract_strided_slice %43 {offsets = [0, 24], sizes = [8, 8], strides = [1, 1]} : vector<8x32xf32> to vector<8x8xf32>
    %145 = arith.truncf %144 : vector<8x8xf32> to vector<8x8xbf16>
    %cst_55 = arith.constant dense<0.000000e+00> : vector<8x8xf32>
    %146 = tpu.matmul %141, %143, %cst_55 {dimension_numbers = #tpu.dot_dimension_numbers<[1], [1], [0], [0], [0, 0, 1, 0], [], []>} : vector<8x8xbf16>, vector<8x8xbf16>, vector<8x8xf32> -> vector<8x8xf32>
    %cst_56 = arith.constant 0.353553385 : f32
    %147 = vector.broadcast %cst_56 : f32 to vector<8x8xf32>
    %148 = arith.mulf %146, %147 : vector<8x8xf32>
    %149 = arith.addf %148, %55 : vector<8x8xf32>
    %cst_57 = arith.constant dense<0xFF800000> : vector<8xf32>
    %150 = vector.multi_reduction <maximumf>, %149, %cst_57 [1] : vector<8x8xf32> to vector<8xf32>
    %151 = vector.shape_cast %150 : vector<8xf32> to vector<8x1xf32>
    %152 = vector.broadcast %151 : vector<8x1xf32> to vector<8x8xf32>
    %153 = arith.subf %149, %152 : vector<8x8xf32>
    %154 = math.exp %153 : vector<8x8xf32>
    %cst_58 = arith.constant dense<0.000000e+00> : vector<8xf32>
    %155 = vector.multi_reduction <add>, %154, %cst_58 [1] : vector<8x8xf32> to vector<8xf32>
    %156 = vector.shape_cast %155 : vector<8xf32> to vector<8x1xf32>
    %157 = tpu.reciprocal %156 {approx = true} : vector<8x1xf32> -> vector<8x1xf32>
    %158 = vector.broadcast %157 : vector<8x1xf32> to vector<8x8xf32>
    %159 = arith.mulf %154, %158 : vector<8x8xf32>
    %160 = arith.truncf %159 : vector<8x8xf32> to vector<8x8xbf16>
    %cst_59 = arith.constant dense<0.000000e+00> : vector<8x8xf32>
    %161 = tpu.matmul %160, %145, %cst_59 {dimension_numbers = #tpu.dot_dimension_numbers<[1], [0], [0], [1], [0, 0, 1, 1], [], []>} : vector<8x8xbf16>, vector<8x8xbf16>, vector<8x8xf32> -> vector<8x8xf32>
    %162 = arith.truncf %161 : vector<8x8xf32> to vector<8x8xbf16>
    %163 = vector.extract_strided_slice %57 {offsets = [24, 0], sizes = [8, 32], strides = [1, 1]} : vector<32x32xf32> to vector<8x32xf32>
    %164 = arith.truncf %163 : vector<8x32xf32> to vector<8x32xbf16>
    %cst_60 = arith.constant dense<0.000000e+00> : vector<8x32xf32>
    %165 = tpu.matmul %162, %164, %cst_60 {dimension_numbers = #tpu.dot_dimension_numbers<[1], [0], [0], [1], [0, 0, 1, 1], [], []>} : vector<8x8xbf16>, vector<8x32xbf16>, vector<8x32xf32> -> vector<8x32xf32>
    %166 = arith.addf %139, %165 : vector<8x32xf32>
    %c0_61 = arith.constant 0 : index
    %c0_62 = arith.constant 0 : index
    %167 = vector.load %arg13[%c0_61, %c0_62] : memref<1x32xf32, #tpu.memory_space<vmem>>, vector<1x32xf32>
    %168 = vector.broadcast %167 : vector<1x32xf32> to vector<8x32xf32>
    %169 = arith.addf %166, %168 : vector<8x32xf32>
    %170 = arith.addf %1, %169 : vector<8x32xf32>
    %c0_63 = arith.constant 0 : index
    %c0_64 = arith.constant 0 : index
    %171 = vector.load %arg14[%c0_63, %c0_64] : memref<1x32xf32, #tpu.memory_space<vmem>>, vector<1x32xf32>
    %c0_65 = arith.constant 0 : index
    %c0_66 = arith.constant 0 : index
    %172 = vector.load %arg15[%c0_65, %c0_66] : memref<1x32xf32, #tpu.memory_space<vmem>>, vector<1x32xf32>
    %cst_67 = arith.constant dense<0.000000e+00> : vector<8xf32>
    %173 = vector.multi_reduction <add>, %170, %cst_67 [1] : vector<8x32xf32> to vector<8xf32>
    %174 = vector.shape_cast %173 : vector<8xf32> to vector<8x1xf32>
    %cst_68 = arith.constant 3.200000e+01 : f32
    %175 = vector.broadcast %cst_68 : f32 to vector<8x1xf32>
    %176 = arith.divf %174, %175 : vector<8x1xf32>
    %177 = vector.broadcast %176 : vector<8x1xf32> to vector<8x32xf32>
    %178 = arith.subf %170, %177 : vector<8x32xf32>
    %179 = arith.mulf %178, %178 : vector<8x32xf32>
    %cst_69 = arith.constant dense<0.000000e+00> : vector<8xf32>
    %180 = vector.multi_reduction <add>, %179, %cst_69 [1] : vector<8x32xf32> to vector<8xf32>
    %181 = vector.shape_cast %180 : vector<8xf32> to vector<8x1xf32>
    %cst_70 = arith.constant 3.200000e+01 : f32
    %182 = vector.broadcast %cst_70 : f32 to vector<8x1xf32>
    %183 = arith.divf %181, %182 : vector<8x1xf32>
    %184 = vector.broadcast %176 : vector<8x1xf32> to vector<8x32xf32>
    %185 = arith.subf %170, %184 : vector<8x32xf32>
    %cst_71 = arith.constant 9.99999974E-6 : f32
    %186 = vector.broadcast %cst_71 : f32 to vector<8x1xf32>
    %187 = arith.addf %183, %186 : vector<8x1xf32>
    %188 = math.rsqrt %187 : vector<8x1xf32>
    %189 = vector.broadcast %188 : vector<8x1xf32> to vector<8x32xf32>
    %190 = arith.mulf %185, %189 : vector<8x32xf32>
    %191 = vector.broadcast %171 : vector<1x32xf32> to vector<8x32xf32>
    %192 = arith.mulf %190, %191 : vector<8x32xf32>
    %193 = vector.broadcast %172 : vector<1x32xf32> to vector<8x32xf32>
    %194 = arith.addf %192, %193 : vector<8x32xf32>
    %c0_72 = arith.constant 0 : index
    %c0_73 = arith.constant 0 : index
    %195 = vector.load %arg16[%c0_72, %c0_73] : memref<32x128xbf16, #tpu.memory_space<vmem>>, vector<32x128xbf16>
    %196 = arith.truncf %194 : vector<8x32xf32> to vector<8x32xbf16>
    %cst_74 = arith.constant dense<0.000000e+00> : vector<8x128xf32>
    %197 = tpu.matmul %196, %195, %cst_74 {dimension_numbers = #tpu.dot_dimension_numbers<[1], [0], [0], [1], [0, 0, 1, 1], [], []>} : vector<8x32xbf16>, vector<32x128xbf16>, vector<8x128xf32> -> vector<8x128xf32>
    %c0_75 = arith.constant 0 : index
    %c0_76 = arith.constant 0 : index
    %198 = vector.load %arg17[%c0_75, %c0_76] : memref<1x128xf32, #tpu.memory_space<vmem>>, vector<1x128xf32>
    %199 = vector.broadcast %198 : vector<1x128xf32> to vector<8x128xf32>
    %200 = arith.addf %197, %199 : vector<8x128xf32>
    %cst_77 = arith.constant 0.000000e+00 : f32
    %201 = vector.broadcast %cst_77 : f32 to vector<8x128xf32>
    %202 = arith.maximumf %200, %201 : vector<8x128xf32>
    %c0_78 = arith.constant 0 : index
    %c0_79 = arith.constant 0 : index
    %203 = vector.load %arg18[%c0_78, %c0_79] : memref<128x32xbf16, #tpu.memory_space<vmem>>, vector<128x32xbf16>
    %204 = arith.truncf %202 : vector<8x128xf32> to vector<8x128xbf16>
    %cst_80 = arith.constant dense<0.000000e+00> : vector<8x32xf32>
    %205 = tpu.matmul %204, %203, %cst_80 {dimension_numbers = #tpu.dot_dimension_numbers<[1], [0], [0], [1], [0, 0, 1, 1], [], []>} : vector<8x128xbf16>, vector<128x32xbf16>, vector<8x32xf32> -> vector<8x32xf32>
    %c0_81 = arith.constant 0 : index
    %c0_82 = arith.constant 0 : index
    %206 = vector.load %arg19[%c0_81, %c0_82] : memref<1x32xf32, #tpu.memory_space<vmem>>, vector<1x32xf32>
    %207 = vector.broadcast %206 : vector<1x32xf32> to vector<8x32xf32>
    %208 = arith.addf %205, %207 : vector<8x32xf32>
    %209 = arith.addf %170, %208 : vector<8x32xf32>
    %c0_83 = arith.constant 0 : index
    %c0_84 = arith.constant 0 : index
    %c0_85 = arith.constant 0 : index
    %210 = vector.load %arg20[%c0_83, %c0_84, %c0_85] : memref<1x8x32xf32, #tpu.memory_space<vmem>>, vector<1x8x32xf32>
    %211 = vector.shape_cast %210 : vector<1x8x32xf32> to vector<8x32xf32>
    %212 = vector.shape_cast %209 : vector<8x32xf32> to vector<1x8x32xf32>
    tpu.vector_store %arg20[%c0_83, %c0_84, %c0_85], %212 {strides = array<i32>} : memref<1x8x32xf32, #tpu.memory_space<vmem>>, vector<1x8x32xf32>,
    return
  }
  func.func @transform_0(%arg0: i32) -> (i32, i32, i32) {
    %c0_i32 = arith.constant 0 : i32
    %c0_i32_0 = arith.constant 0 : i32
    %c0_i32_1 = arith.constant 0 : i32
    return %arg0, %c0_i32, %c0_i32_0 : i32, i32, i32
  }
  func.func @transform_1(%arg0: i32) -> (i32, i32, i32) {
    %c0_i32 = arith.constant 0 : i32
    %c0_i32_0 = arith.constant 0 : i32
    %c0_i32_1 = arith.constant 0 : i32
    return %arg0, %c0_i32, %c0_i32_0 : i32, i32, i32
  }
  func.func @transform_2(%arg0: i32) -> (i32, i32) {
    %c0_i32 = arith.constant 0 : i32
    %c0_i32_0 = arith.constant 0 : i32
    %c0_i32_1 = arith.constant 0 : i32
    return %c0_i32, %c0_i32_0 : i32, i32
  }
  func.func @transform_3(%arg0: i32) -> (i32, i32) {
    %c0_i32 = arith.constant 0 : i32
    %c0_i32_0 = arith.constant 0 : i32
    %c0_i32_1 = arith.constant 0 : i32
    return %c0_i32, %c0_i32_0 : i32, i32
  }
  func.func @transform_4(%arg0: i32) -> (i32, i32) {
    %c0_i32 = arith.constant 0 : i32
    %c0_i32_0 = arith.constant 0 : i32
    %c0_i32_1 = arith.constant 0 : i32
    return %c0_i32, %c0_i32_0 : i32, i32
  }
  func.func @transform_5(%arg0: i32) -> (i32, i32) {
    %c0_i32 = arith.constant 0 : i32
    %c0_i32_0 = arith.constant 0 : i32
    %c0_i32_1 = arith.constant 0 : i32
    return %c0_i32, %c0_i32_0 : i32, i32
  }
  func.func @transform_6(%arg0: i32) -> (i32, i32) {
    %c0_i32 = arith.constant 0 : i32
    %c0_i32_0 = arith.constant 0 : i32
    %c0_i32_1 = arith.constant 0 : i32
    return %c0_i32, %c0_i32_0 : i32, i32
  }
  func.func @transform_7(%arg0: i32) -> (i32, i32) {
    %c0_i32 = arith.constant 0 : i32
    %c0_i32_0 = arith.constant 0 : i32
    %c0_i32_1 = arith.constant 0 : i32
    return %c0_i32, %c0_i32_0 : i32, i32
  }
  func.func @transform_8(%arg0: i32) -> (i32, i32) {
    %c0_i32 = arith.constant 0 : i32
    %c0_i32_0 = arith.constant 0 : i32
    %c0_i32_1 = arith.constant 0 : i32
    return %c0_i32, %c0_i32_0 : i32, i32
  }
  func.func @transform_9(%arg0: i32) -> (i32, i32) {
    %c0_i32 = arith.constant 0 : i32
    %c0_i32_0 = arith.constant 0 : i32
    %c0_i32_1 = arith.constant 0 : i32
    return %c0_i32, %c0_i32_0 : i32, i32
  }
  func.func @transform_10(%arg0: i32) -> (i32, i32) {
    %c0_i32 = arith.constant 0 : i32
    %c0_i32_0 = arith.constant 0 : i32
    %c0_i32_1 = arith.constant 0 : i32
    return %c0_i32, %c0_i32_0 : i32, i32
  }
  func.func @transform_11(%arg0: i32) -> (i32, i32) {
    %c0_i32 = arith.constant 0 : i32
    %c0_i32_0 = arith.constant 0 : i32
    %c0_i32_1 = arith.constant 0 : i32
    return %c0_i32, %c0_i32_0 : i32, i32
  }
  func.func @transform_12(%arg0: i32) -> (i32, i32) {
    %c0_i32 = arith.constant 0 : i32
    %c0_i32_0 = arith.constant 0 : i32
    %c0_i32_1 = arith.constant 0 : i32
    return %c0_i32, %c0_i32_0 : i32, i32
  }
  func.func @transform_13(%arg0: i32) -> (i32, i32) {
    %c0_i32 = arith.constant 0 : i32
    %c0_i32_0 = arith.constant 0 : i32
    %c0_i32_1 = arith.constant 0 : i32
    return %c0_i32, %c0_i32_0 : i32, i32
  }
  func.func @transform_14(%arg0: i32) -> (i32, i32) {
    %c0_i32 = arith.constant 0 : i32
    %c0_i32_0 = arith.constant 0 : i32
    %c0_i32_1 = arith.constant 0 : i32
    return %c0_i32, %c0_i32_0 : i32, i32
  }
  func.func @transform_15(%arg0: i32) -> (i32, i32) {
    %c0_i32 = arith.constant 0 : i32
    %c0_i32_0 = arith.constant 0 : i32
    %c0_i32_1 = arith.constant 0 : i32
    return %c0_i32, %c0_i32_0 : i32, i32
  }
  func.func @transform_16(%arg0: i32) -> (i32, i32) {
    %c0_i32 = arith.constant 0 : i32
    %c0_i32_0 = arith.constant 0 : i32
    %c0_i32_1 = arith.constant 0 : i32
    return %c0_i32, %c0_i32_0 : i32, i32
  }
  func.func @transform_17(%arg0: i32) -> (i32, i32) {
    %c0_i32 = arith.constant 0 : i32
    %c0_i32_0 = arith.constant 0 : i32
    %c0_i32_1 = arith.constant 0 : i32
    return %c0_i32, %c0_i32_0 : i32, i32
  }
  func.func @transform_18(%arg0: i32) -> (i32, i32) {
    %c0_i32 = arith.constant 0 : i32
    %c0_i32_0 = arith.constant 0 : i32
    %c0_i32_1 = arith.constant 0 : i32
    return %c0_i32, %c0_i32_0 : i32, i32
  }
  func.func @transform_19(%arg0: i32) -> (i32, i32, i32) {
    %c0_i32 = arith.constant 0 : i32
    %c0_i32_0 = arith.constant 0 : i32
    %c0_i32_1 = arith.constant 0 : i32
    return %arg0, %c0_i32, %c0_i32_0 : i32, i32, i32
  }
}

module attributes {stable_mosaic.version = 11 : i64} {
  func.func @_cross_att_kernel(%arg0: i32, %arg1: memref<1x16x32xf32, #tpu.memory_space<vmem>>, %arg2: memref<16x32xbf16, #tpu.memory_space<vmem>>, %arg3: memref<16x32xbf16, #tpu.memory_space<vmem>>, %arg4: memref<1x1x16xf32, #tpu.memory_space<vmem>>, %arg5: memref<1x32xf32, #tpu.memory_space<vmem>>, %arg6: memref<1x32xf32, #tpu.memory_space<vmem>>, %arg7: memref<32x32xbf16, #tpu.memory_space<vmem>>, %arg8: memref<1x32xf32, #tpu.memory_space<vmem>>, %arg9: memref<32x32xbf16, #tpu.memory_space<vmem>>, %arg10: memref<1x32xf32, #tpu.memory_space<vmem>>, %arg11: memref<1x32xf32, #tpu.memory_space<vmem>>, %arg12: memref<1x32xf32, #tpu.memory_space<vmem>>, %arg13: memref<32x128xbf16, #tpu.memory_space<vmem>>, %arg14: memref<1x128xf32, #tpu.memory_space<vmem>>, %arg15: memref<128x32xbf16, #tpu.memory_space<vmem>>, %arg16: memref<1x32xf32, #tpu.memory_space<vmem>>, %arg17: memref<1x16x32xf32, #tpu.memory_space<vmem>>) attributes {dimension_semantics = [#tpu.dimension_semantics<parallel>], iteration_bounds = array<i64: 8>, scalar_prefetch = 0 : i64, scratch_operands = 0 : i64, tpu.core_type = #tpu.core_type<tc>, window_params = [{transform_indices = @transform_0, window_bounds = array<i64: 1, 16, 32>}, {pipeline_mode = #tpu.pipeline_mode<synchronous>, transform_indices = @transform_1, window_bounds = array<i64: 16, 32>}, {pipeline_mode = #tpu.pipeline_mode<synchronous>, transform_indices = @transform_2, window_bounds = array<i64: 16, 32>}, {transform_indices = @transform_3, window_bounds = array<i64: 1, 1, 16>}, {pipeline_mode = #tpu.pipeline_mode<synchronous>, transform_indices = @transform_4, window_bounds = array<i64: 1, 32>}, {pipeline_mode = #tpu.pipeline_mode<synchronous>, transform_indices = @transform_5, window_bounds = array<i64: 1, 32>}, {pipeline_mode = #tpu.pipeline_mode<synchronous>, transform_indices = @transform_6, window_bounds = array<i64: 32, 32>}, {pipeline_mode = #tpu.pipeline_mode<synchronous>, transform_indices = @transform_7, window_bounds = array<i64: 1, 32>}, {pipeline_mode = #tpu.pipeline_mode<synchronous>, transform_indices = @transform_8, window_bounds = array<i64: 32, 32>}, {pipeline_mode = #tpu.pipeline_mode<synchronous>, transform_indices = @transform_9, window_bounds = array<i64: 1, 32>}, {pipeline_mode = #tpu.pipeline_mode<synchronous>, transform_indices = @transform_10, window_bounds = array<i64: 1, 32>}, {pipeline_mode = #tpu.pipeline_mode<synchronous>, transform_indices = @transform_11, window_bounds = array<i64: 1, 32>}, {pipeline_mode = #tpu.pipeline_mode<synchronous>, transform_indices = @transform_12, window_bounds = array<i64: 32, 128>}, {pipeline_mode = #tpu.pipeline_mode<synchronous>, transform_indices = @transform_13, window_bounds = array<i64: 1, 128>}, {pipeline_mode = #tpu.pipeline_mode<synchronous>, transform_indices = @transform_14, window_bounds = array<i64: 128, 32>}, {pipeline_mode = #tpu.pipeline_mode<synchronous>, transform_indices = @transform_15, window_bounds = array<i64: 1, 32>}, {transform_indices = @transform_16, window_bounds = array<i64: 1, 16, 32>}]} {
    %c0 = arith.constant 0 : index
    %c0_0 = arith.constant 0 : index
    %c0_1 = arith.constant 0 : index
    %0 = vector.load %arg1[%c0, %c0_0, %c0_1] : memref<1x16x32xf32, #tpu.memory_space<vmem>>, vector<1x16x32xf32>
    %1 = vector.shape_cast %0 : vector<1x16x32xf32> to vector<16x32xf32>
    %c0_2 = arith.constant 0 : index
    %c0_3 = arith.constant 0 : index
    %2 = vector.load %arg5[%c0_2, %c0_3] : memref<1x32xf32, #tpu.memory_space<vmem>>, vector<1x32xf32>
    %c0_4 = arith.constant 0 : index
    %c0_5 = arith.constant 0 : index
    %3 = vector.load %arg6[%c0_4, %c0_5] : memref<1x32xf32, #tpu.memory_space<vmem>>, vector<1x32xf32>
    %cst = arith.constant dense<0.000000e+00> : vector<16xf32>
    %4 = vector.multi_reduction <add>, %1, %cst [1] : vector<16x32xf32> to vector<16xf32>
    %5 = vector.shape_cast %4 : vector<16xf32> to vector<16x1xf32>
    %cst_6 = arith.constant 3.200000e+01 : f32
    %6 = vector.broadcast %cst_6 : f32 to vector<16x1xf32>
    %7 = arith.divf %5, %6 : vector<16x1xf32>
    %8 = vector.broadcast %7 : vector<16x1xf32> to vector<16x32xf32>
    %9 = arith.subf %1, %8 : vector<16x32xf32>
    %10 = arith.mulf %9, %9 : vector<16x32xf32>
    %cst_7 = arith.constant dense<0.000000e+00> : vector<16xf32>
    %11 = vector.multi_reduction <add>, %10, %cst_7 [1] : vector<16x32xf32> to vector<16xf32>
    %12 = vector.shape_cast %11 : vector<16xf32> to vector<16x1xf32>
    %cst_8 = arith.constant 3.200000e+01 : f32
    %13 = vector.broadcast %cst_8 : f32 to vector<16x1xf32>
    %14 = arith.divf %12, %13 : vector<16x1xf32>
    %15 = vector.broadcast %7 : vector<16x1xf32> to vector<16x32xf32>
    %16 = arith.subf %1, %15 : vector<16x32xf32>
    %cst_9 = arith.constant 9.99999974E-6 : f32
    %17 = vector.broadcast %cst_9 : f32 to vector<16x1xf32>
    %18 = arith.addf %14, %17 : vector<16x1xf32>
    %19 = math.rsqrt %18 : vector<16x1xf32>
    %20 = vector.broadcast %19 : vector<16x1xf32> to vector<16x32xf32>
    %21 = arith.mulf %16, %20 : vector<16x32xf32>
    %22 = vector.broadcast %2 : vector<1x32xf32> to vector<16x32xf32>
    %23 = arith.mulf %21, %22 : vector<16x32xf32>
    %24 = vector.broadcast %3 : vector<1x32xf32> to vector<16x32xf32>
    %25 = arith.addf %23, %24 : vector<16x32xf32>
    %c0_10 = arith.constant 0 : index
    %c0_11 = arith.constant 0 : index
    %26 = vector.load %arg7[%c0_10, %c0_11] : memref<32x32xbf16, #tpu.memory_space<vmem>>, vector<32x32xbf16>
    %27 = arith.truncf %25 : vector<16x32xf32> to vector<16x32xbf16>
    %cst_12 = arith.constant dense<0.000000e+00> : vector<16x32xf32>
    %28 = tpu.matmul %27, %26, %cst_12 {dimension_numbers = #tpu.dot_dimension_numbers<[1], [0], [0], [1], [0, 0, 1, 1], [], []>} : vector<16x32xbf16>, vector<32x32xbf16>, vector<16x32xf32> -> vector<16x32xf32>
    %c0_13 = arith.constant 0 : index
    %c0_14 = arith.constant 0 : index
    %29 = vector.load %arg8[%c0_13, %c0_14] : memref<1x32xf32, #tpu.memory_space<vmem>>, vector<1x32xf32>
    %30 = vector.broadcast %29 : vector<1x32xf32> to vector<16x32xf32>
    %31 = arith.addf %28, %30 : vector<16x32xf32>
    %c0_15 = arith.constant 0 : index
    %c0_16 = arith.constant 0 : index
    %32 = vector.load %arg2[%c0_15, %c0_16] : memref<16x32xbf16, #tpu.memory_space<vmem>>, vector<16x32xbf16>
    %33 = arith.extf %32 : vector<16x32xbf16> to vector<16x32xf32>
    %c0_17 = arith.constant 0 : index
    %c0_18 = arith.constant 0 : index
    %34 = vector.load %arg3[%c0_17, %c0_18] : memref<16x32xbf16, #tpu.memory_space<vmem>>, vector<16x32xbf16>
    %35 = arith.extf %34 : vector<16x32xbf16> to vector<16x32xf32>
    %c0_19 = arith.constant 0 : index
    %c0_20 = arith.constant 0 : index
    %c0_21 = arith.constant 0 : index
    %36 = vector.load %arg4[%c0_19, %c0_20, %c0_21] : memref<1x1x16xf32, #tpu.memory_space<vmem>>, vector<1x1x16xf32>
    %37 = vector.shape_cast %36 : vector<1x1x16xf32> to vector<1x16xf32>
    %cst_22 = arith.constant 5.000000e-01 : f32
    %38 = vector.broadcast %cst_22 : f32 to vector<1x16xf32>
    %39 = arith.cmpf ogt, %37, %38 : vector<1x16xf32>
    %cst_23 = arith.constant 0.000000e+00 : f32
    %cst_24 = arith.constant -1.000000e+09 : f32
    %40 = vector.broadcast %cst_23 : f32 to vector<1x16xf32>
    %41 = vector.broadcast %cst_24 : f32 to vector<1x16xf32>
    %42 = arith.select %39, %40, %41 : vector<1x16xi1>, vector<1x16xf32>
    %c0_25 = arith.constant 0 : index
    %c0_26 = arith.constant 0 : index
    %43 = vector.load %arg9[%c0_25, %c0_26] : memref<32x32xbf16, #tpu.memory_space<vmem>>, vector<32x32xbf16>
    %44 = arith.extf %43 : vector<32x32xbf16> to vector<32x32xf32>
    %cst_27 = arith.constant 0.000000e+00 : f32
    %45 = vector.broadcast %cst_27 : f32 to vector<16x32xf32>
    %46 = vector.extract_strided_slice %31 {offsets = [0, 0], sizes = [16, 8], strides = [1, 1]} : vector<16x32xf32> to vector<16x8xf32>
    %47 = arith.truncf %46 : vector<16x8xf32> to vector<16x8xbf16>
    %48 = vector.extract_strided_slice %33 {offsets = [0, 0], sizes = [16, 8], strides = [1, 1]} : vector<16x32xf32> to vector<16x8xf32>
    %49 = arith.truncf %48 : vector<16x8xf32> to vector<16x8xbf16>
    %50 = vector.extract_strided_slice %35 {offsets = [0, 0], sizes = [16, 8], strides = [1, 1]} : vector<16x32xf32> to vector<16x8xf32>
    %51 = arith.truncf %50 : vector<16x8xf32> to vector<16x8xbf16>
    %cst_28 = arith.constant dense<0.000000e+00> : vector<16x16xf32>
    %52 = tpu.matmul %47, %49, %cst_28 {dimension_numbers = #tpu.dot_dimension_numbers<[1], [1], [0], [0], [0, 0, 1, 0], [], []>} : vector<16x8xbf16>, vector<16x8xbf16>, vector<16x16xf32> -> vector<16x16xf32>
    %cst_29 = arith.constant 0.353553385 : f32
    %53 = vector.broadcast %cst_29 : f32 to vector<16x16xf32>
    %54 = arith.mulf %52, %53 : vector<16x16xf32>
    %55 = vector.broadcast %42 : vector<1x16xf32> to vector<16x16xf32>
    %56 = arith.addf %54, %55 : vector<16x16xf32>
    %cst_30 = arith.constant dense<0xFF800000> : vector<16xf32>
    %57 = vector.multi_reduction <maximumf>, %56, %cst_30 [1] : vector<16x16xf32> to vector<16xf32>
    %58 = vector.shape_cast %57 : vector<16xf32> to vector<16x1xf32>
    %59 = vector.broadcast %58 : vector<16x1xf32> to vector<16x16xf32>
    %60 = arith.subf %56, %59 : vector<16x16xf32>
    %61 = math.exp %60 : vector<16x16xf32>
    %cst_31 = arith.constant dense<0.000000e+00> : vector<16xf32>
    %62 = vector.multi_reduction <add>, %61, %cst_31 [1] : vector<16x16xf32> to vector<16xf32>
    %63 = vector.shape_cast %62 : vector<16xf32> to vector<16x1xf32>
    %64 = tpu.reciprocal %63 {approx = true} : vector<16x1xf32> -> vector<16x1xf32>
    %65 = vector.broadcast %64 : vector<16x1xf32> to vector<16x16xf32>
    %66 = arith.mulf %61, %65 : vector<16x16xf32>
    %67 = arith.truncf %66 : vector<16x16xf32> to vector<16x16xbf16>
    %cst_32 = arith.constant dense<0.000000e+00> : vector<16x8xf32>
    %68 = tpu.matmul %67, %51, %cst_32 {dimension_numbers = #tpu.dot_dimension_numbers<[1], [0], [0], [1], [0, 0, 1, 1], [], []>} : vector<16x16xbf16>, vector<16x8xbf16>, vector<16x8xf32> -> vector<16x8xf32>
    %69 = arith.truncf %68 : vector<16x8xf32> to vector<16x8xbf16>
    %70 = vector.extract_strided_slice %44 {offsets = [0, 0], sizes = [8, 32], strides = [1, 1]} : vector<32x32xf32> to vector<8x32xf32>
    %71 = arith.truncf %70 : vector<8x32xf32> to vector<8x32xbf16>
    %cst_33 = arith.constant dense<0.000000e+00> : vector<16x32xf32>
    %72 = tpu.matmul %69, %71, %cst_33 {dimension_numbers = #tpu.dot_dimension_numbers<[1], [0], [0], [1], [0, 0, 1, 1], [], []>} : vector<16x8xbf16>, vector<8x32xbf16>, vector<16x32xf32> -> vector<16x32xf32>
    %73 = arith.addf %45, %72 : vector<16x32xf32>
    %74 = vector.extract_strided_slice %31 {offsets = [0, 8], sizes = [16, 8], strides = [1, 1]} : vector<16x32xf32> to vector<16x8xf32>
    %75 = arith.truncf %74 : vector<16x8xf32> to vector<16x8xbf16>
    %76 = vector.extract_strided_slice %33 {offsets = [0, 8], sizes = [16, 8], strides = [1, 1]} : vector<16x32xf32> to vector<16x8xf32>
    %77 = arith.truncf %76 : vector<16x8xf32> to vector<16x8xbf16>
    %78 = vector.extract_strided_slice %35 {offsets = [0, 8], sizes = [16, 8], strides = [1, 1]} : vector<16x32xf32> to vector<16x8xf32>
    %79 = arith.truncf %78 : vector<16x8xf32> to vector<16x8xbf16>
    %cst_34 = arith.constant dense<0.000000e+00> : vector<16x16xf32>
    %80 = tpu.matmul %75, %77, %cst_34 {dimension_numbers = #tpu.dot_dimension_numbers<[1], [1], [0], [0], [0, 0, 1, 0], [], []>} : vector<16x8xbf16>, vector<16x8xbf16>, vector<16x16xf32> -> vector<16x16xf32>
    %cst_35 = arith.constant 0.353553385 : f32
    %81 = vector.broadcast %cst_35 : f32 to vector<16x16xf32>
    %82 = arith.mulf %80, %81 : vector<16x16xf32>
    %83 = vector.broadcast %42 : vector<1x16xf32> to vector<16x16xf32>
    %84 = arith.addf %82, %83 : vector<16x16xf32>
    %cst_36 = arith.constant dense<0xFF800000> : vector<16xf32>
    %85 = vector.multi_reduction <maximumf>, %84, %cst_36 [1] : vector<16x16xf32> to vector<16xf32>
    %86 = vector.shape_cast %85 : vector<16xf32> to vector<16x1xf32>
    %87 = vector.broadcast %86 : vector<16x1xf32> to vector<16x16xf32>
    %88 = arith.subf %84, %87 : vector<16x16xf32>
    %89 = math.exp %88 : vector<16x16xf32>
    %cst_37 = arith.constant dense<0.000000e+00> : vector<16xf32>
    %90 = vector.multi_reduction <add>, %89, %cst_37 [1] : vector<16x16xf32> to vector<16xf32>
    %91 = vector.shape_cast %90 : vector<16xf32> to vector<16x1xf32>
    %92 = tpu.reciprocal %91 {approx = true} : vector<16x1xf32> -> vector<16x1xf32>
    %93 = vector.broadcast %92 : vector<16x1xf32> to vector<16x16xf32>
    %94 = arith.mulf %89, %93 : vector<16x16xf32>
    %95 = arith.truncf %94 : vector<16x16xf32> to vector<16x16xbf16>
    %cst_38 = arith.constant dense<0.000000e+00> : vector<16x8xf32>
    %96 = tpu.matmul %95, %79, %cst_38 {dimension_numbers = #tpu.dot_dimension_numbers<[1], [0], [0], [1], [0, 0, 1, 1], [], []>} : vector<16x16xbf16>, vector<16x8xbf16>, vector<16x8xf32> -> vector<16x8xf32>
    %97 = arith.truncf %96 : vector<16x8xf32> to vector<16x8xbf16>
    %98 = vector.extract_strided_slice %44 {offsets = [8, 0], sizes = [8, 32], strides = [1, 1]} : vector<32x32xf32> to vector<8x32xf32>
    %99 = arith.truncf %98 : vector<8x32xf32> to vector<8x32xbf16>
    %cst_39 = arith.constant dense<0.000000e+00> : vector<16x32xf32>
    %100 = tpu.matmul %97, %99, %cst_39 {dimension_numbers = #tpu.dot_dimension_numbers<[1], [0], [0], [1], [0, 0, 1, 1], [], []>} : vector<16x8xbf16>, vector<8x32xbf16>, vector<16x32xf32> -> vector<16x32xf32>
    %101 = arith.addf %73, %100 : vector<16x32xf32>
    %102 = vector.extract_strided_slice %31 {offsets = [0, 16], sizes = [16, 8], strides = [1, 1]} : vector<16x32xf32> to vector<16x8xf32>
    %103 = arith.truncf %102 : vector<16x8xf32> to vector<16x8xbf16>
    %104 = vector.extract_strided_slice %33 {offsets = [0, 16], sizes = [16, 8], strides = [1, 1]} : vector<16x32xf32> to vector<16x8xf32>
    %105 = arith.truncf %104 : vector<16x8xf32> to vector<16x8xbf16>
    %106 = vector.extract_strided_slice %35 {offsets = [0, 16], sizes = [16, 8], strides = [1, 1]} : vector<16x32xf32> to vector<16x8xf32>
    %107 = arith.truncf %106 : vector<16x8xf32> to vector<16x8xbf16>
    %cst_40 = arith.constant dense<0.000000e+00> : vector<16x16xf32>
    %108 = tpu.matmul %103, %105, %cst_40 {dimension_numbers = #tpu.dot_dimension_numbers<[1], [1], [0], [0], [0, 0, 1, 0], [], []>} : vector<16x8xbf16>, vector<16x8xbf16>, vector<16x16xf32> -> vector<16x16xf32>
    %cst_41 = arith.constant 0.353553385 : f32
    %109 = vector.broadcast %cst_41 : f32 to vector<16x16xf32>
    %110 = arith.mulf %108, %109 : vector<16x16xf32>
    %111 = vector.broadcast %42 : vector<1x16xf32> to vector<16x16xf32>
    %112 = arith.addf %110, %111 : vector<16x16xf32>
    %cst_42 = arith.constant dense<0xFF800000> : vector<16xf32>
    %113 = vector.multi_reduction <maximumf>, %112, %cst_42 [1] : vector<16x16xf32> to vector<16xf32>
    %114 = vector.shape_cast %113 : vector<16xf32> to vector<16x1xf32>
    %115 = vector.broadcast %114 : vector<16x1xf32> to vector<16x16xf32>
    %116 = arith.subf %112, %115 : vector<16x16xf32>
    %117 = math.exp %116 : vector<16x16xf32>
    %cst_43 = arith.constant dense<0.000000e+00> : vector<16xf32>
    %118 = vector.multi_reduction <add>, %117, %cst_43 [1] : vector<16x16xf32> to vector<16xf32>
    %119 = vector.shape_cast %118 : vector<16xf32> to vector<16x1xf32>
    %120 = tpu.reciprocal %119 {approx = true} : vector<16x1xf32> -> vector<16x1xf32>
    %121 = vector.broadcast %120 : vector<16x1xf32> to vector<16x16xf32>
    %122 = arith.mulf %117, %121 : vector<16x16xf32>
    %123 = arith.truncf %122 : vector<16x16xf32> to vector<16x16xbf16>
    %cst_44 = arith.constant dense<0.000000e+00> : vector<16x8xf32>
    %124 = tpu.matmul %123, %107, %cst_44 {dimension_numbers = #tpu.dot_dimension_numbers<[1], [0], [0], [1], [0, 0, 1, 1], [], []>} : vector<16x16xbf16>, vector<16x8xbf16>, vector<16x8xf32> -> vector<16x8xf32>
    %125 = arith.truncf %124 : vector<16x8xf32> to vector<16x8xbf16>
    %126 = vector.extract_strided_slice %44 {offsets = [16, 0], sizes = [8, 32], strides = [1, 1]} : vector<32x32xf32> to vector<8x32xf32>
    %127 = arith.truncf %126 : vector<8x32xf32> to vector<8x32xbf16>
    %cst_45 = arith.constant dense<0.000000e+00> : vector<16x32xf32>
    %128 = tpu.matmul %125, %127, %cst_45 {dimension_numbers = #tpu.dot_dimension_numbers<[1], [0], [0], [1], [0, 0, 1, 1], [], []>} : vector<16x8xbf16>, vector<8x32xbf16>, vector<16x32xf32> -> vector<16x32xf32>
    %129 = arith.addf %101, %128 : vector<16x32xf32>
    %130 = vector.extract_strided_slice %31 {offsets = [0, 24], sizes = [16, 8], strides = [1, 1]} : vector<16x32xf32> to vector<16x8xf32>
    %131 = arith.truncf %130 : vector<16x8xf32> to vector<16x8xbf16>
    %132 = vector.extract_strided_slice %33 {offsets = [0, 24], sizes = [16, 8], strides = [1, 1]} : vector<16x32xf32> to vector<16x8xf32>
    %133 = arith.truncf %132 : vector<16x8xf32> to vector<16x8xbf16>
    %134 = vector.extract_strided_slice %35 {offsets = [0, 24], sizes = [16, 8], strides = [1, 1]} : vector<16x32xf32> to vector<16x8xf32>
    %135 = arith.truncf %134 : vector<16x8xf32> to vector<16x8xbf16>
    %cst_46 = arith.constant dense<0.000000e+00> : vector<16x16xf32>
    %136 = tpu.matmul %131, %133, %cst_46 {dimension_numbers = #tpu.dot_dimension_numbers<[1], [1], [0], [0], [0, 0, 1, 0], [], []>} : vector<16x8xbf16>, vector<16x8xbf16>, vector<16x16xf32> -> vector<16x16xf32>
    %cst_47 = arith.constant 0.353553385 : f32
    %137 = vector.broadcast %cst_47 : f32 to vector<16x16xf32>
    %138 = arith.mulf %136, %137 : vector<16x16xf32>
    %139 = vector.broadcast %42 : vector<1x16xf32> to vector<16x16xf32>
    %140 = arith.addf %138, %139 : vector<16x16xf32>
    %cst_48 = arith.constant dense<0xFF800000> : vector<16xf32>
    %141 = vector.multi_reduction <maximumf>, %140, %cst_48 [1] : vector<16x16xf32> to vector<16xf32>
    %142 = vector.shape_cast %141 : vector<16xf32> to vector<16x1xf32>
    %143 = vector.broadcast %142 : vector<16x1xf32> to vector<16x16xf32>
    %144 = arith.subf %140, %143 : vector<16x16xf32>
    %145 = math.exp %144 : vector<16x16xf32>
    %cst_49 = arith.constant dense<0.000000e+00> : vector<16xf32>
    %146 = vector.multi_reduction <add>, %145, %cst_49 [1] : vector<16x16xf32> to vector<16xf32>
    %147 = vector.shape_cast %146 : vector<16xf32> to vector<16x1xf32>
    %148 = tpu.reciprocal %147 {approx = true} : vector<16x1xf32> -> vector<16x1xf32>
    %149 = vector.broadcast %148 : vector<16x1xf32> to vector<16x16xf32>
    %150 = arith.mulf %145, %149 : vector<16x16xf32>
    %151 = arith.truncf %150 : vector<16x16xf32> to vector<16x16xbf16>
    %cst_50 = arith.constant dense<0.000000e+00> : vector<16x8xf32>
    %152 = tpu.matmul %151, %135, %cst_50 {dimension_numbers = #tpu.dot_dimension_numbers<[1], [0], [0], [1], [0, 0, 1, 1], [], []>} : vector<16x16xbf16>, vector<16x8xbf16>, vector<16x8xf32> -> vector<16x8xf32>
    %153 = arith.truncf %152 : vector<16x8xf32> to vector<16x8xbf16>
    %154 = vector.extract_strided_slice %44 {offsets = [24, 0], sizes = [8, 32], strides = [1, 1]} : vector<32x32xf32> to vector<8x32xf32>
    %155 = arith.truncf %154 : vector<8x32xf32> to vector<8x32xbf16>
    %cst_51 = arith.constant dense<0.000000e+00> : vector<16x32xf32>
    %156 = tpu.matmul %153, %155, %cst_51 {dimension_numbers = #tpu.dot_dimension_numbers<[1], [0], [0], [1], [0, 0, 1, 1], [], []>} : vector<16x8xbf16>, vector<8x32xbf16>, vector<16x32xf32> -> vector<16x32xf32>
    %157 = arith.addf %129, %156 : vector<16x32xf32>
    %c0_52 = arith.constant 0 : index
    %c0_53 = arith.constant 0 : index
    %158 = vector.load %arg10[%c0_52, %c0_53] : memref<1x32xf32, #tpu.memory_space<vmem>>, vector<1x32xf32>
    %159 = vector.broadcast %158 : vector<1x32xf32> to vector<16x32xf32>
    %160 = arith.addf %157, %159 : vector<16x32xf32>
    %161 = arith.addf %1, %160 : vector<16x32xf32>
    %c0_54 = arith.constant 0 : index
    %c0_55 = arith.constant 0 : index
    %162 = vector.load %arg11[%c0_54, %c0_55] : memref<1x32xf32, #tpu.memory_space<vmem>>, vector<1x32xf32>
    %c0_56 = arith.constant 0 : index
    %c0_57 = arith.constant 0 : index
    %163 = vector.load %arg12[%c0_56, %c0_57] : memref<1x32xf32, #tpu.memory_space<vmem>>, vector<1x32xf32>
    %cst_58 = arith.constant dense<0.000000e+00> : vector<16xf32>
    %164 = vector.multi_reduction <add>, %161, %cst_58 [1] : vector<16x32xf32> to vector<16xf32>
    %165 = vector.shape_cast %164 : vector<16xf32> to vector<16x1xf32>
    %cst_59 = arith.constant 3.200000e+01 : f32
    %166 = vector.broadcast %cst_59 : f32 to vector<16x1xf32>
    %167 = arith.divf %165, %166 : vector<16x1xf32>
    %168 = vector.broadcast %167 : vector<16x1xf32> to vector<16x32xf32>
    %169 = arith.subf %161, %168 : vector<16x32xf32>
    %170 = arith.mulf %169, %169 : vector<16x32xf32>
    %cst_60 = arith.constant dense<0.000000e+00> : vector<16xf32>
    %171 = vector.multi_reduction <add>, %170, %cst_60 [1] : vector<16x32xf32> to vector<16xf32>
    %172 = vector.shape_cast %171 : vector<16xf32> to vector<16x1xf32>
    %cst_61 = arith.constant 3.200000e+01 : f32
    %173 = vector.broadcast %cst_61 : f32 to vector<16x1xf32>
    %174 = arith.divf %172, %173 : vector<16x1xf32>
    %175 = vector.broadcast %167 : vector<16x1xf32> to vector<16x32xf32>
    %176 = arith.subf %161, %175 : vector<16x32xf32>
    %cst_62 = arith.constant 9.99999974E-6 : f32
    %177 = vector.broadcast %cst_62 : f32 to vector<16x1xf32>
    %178 = arith.addf %174, %177 : vector<16x1xf32>
    %179 = math.rsqrt %178 : vector<16x1xf32>
    %180 = vector.broadcast %179 : vector<16x1xf32> to vector<16x32xf32>
    %181 = arith.mulf %176, %180 : vector<16x32xf32>
    %182 = vector.broadcast %162 : vector<1x32xf32> to vector<16x32xf32>
    %183 = arith.mulf %181, %182 : vector<16x32xf32>
    %184 = vector.broadcast %163 : vector<1x32xf32> to vector<16x32xf32>
    %185 = arith.addf %183, %184 : vector<16x32xf32>
    %c0_63 = arith.constant 0 : index
    %c0_64 = arith.constant 0 : index
    %186 = vector.load %arg13[%c0_63, %c0_64] : memref<32x128xbf16, #tpu.memory_space<vmem>>, vector<32x128xbf16>
    %187 = arith.truncf %185 : vector<16x32xf32> to vector<16x32xbf16>
    %cst_65 = arith.constant dense<0.000000e+00> : vector<16x128xf32>
    %188 = tpu.matmul %187, %186, %cst_65 {dimension_numbers = #tpu.dot_dimension_numbers<[1], [0], [0], [1], [0, 0, 1, 1], [], []>} : vector<16x32xbf16>, vector<32x128xbf16>, vector<16x128xf32> -> vector<16x128xf32>
    %c0_66 = arith.constant 0 : index
    %c0_67 = arith.constant 0 : index
    %189 = vector.load %arg14[%c0_66, %c0_67] : memref<1x128xf32, #tpu.memory_space<vmem>>, vector<1x128xf32>
    %190 = vector.broadcast %189 : vector<1x128xf32> to vector<16x128xf32>
    %191 = arith.addf %188, %190 : vector<16x128xf32>
    %cst_68 = arith.constant 0.000000e+00 : f32
    %192 = vector.broadcast %cst_68 : f32 to vector<16x128xf32>
    %193 = arith.maximumf %191, %192 : vector<16x128xf32>
    %c0_69 = arith.constant 0 : index
    %c0_70 = arith.constant 0 : index
    %194 = vector.load %arg15[%c0_69, %c0_70] : memref<128x32xbf16, #tpu.memory_space<vmem>>, vector<128x32xbf16>
    %195 = arith.truncf %193 : vector<16x128xf32> to vector<16x128xbf16>
    %cst_71 = arith.constant dense<0.000000e+00> : vector<16x32xf32>
    %196 = tpu.matmul %195, %194, %cst_71 {dimension_numbers = #tpu.dot_dimension_numbers<[1], [0], [0], [1], [0, 0, 1, 1], [], []>} : vector<16x128xbf16>, vector<128x32xbf16>, vector<16x32xf32> -> vector<16x32xf32>
    %c0_72 = arith.constant 0 : index
    %c0_73 = arith.constant 0 : index
    %197 = vector.load %arg16[%c0_72, %c0_73] : memref<1x32xf32, #tpu.memory_space<vmem>>, vector<1x32xf32>
    %198 = vector.broadcast %197 : vector<1x32xf32> to vector<16x32xf32>
    %199 = arith.addf %196, %198 : vector<16x32xf32>
    %200 = arith.addf %161, %199 : vector<16x32xf32>
    %c0_74 = arith.constant 0 : index
    %c0_75 = arith.constant 0 : index
    %c0_76 = arith.constant 0 : index
    %201 = vector.load %arg17[%c0_74, %c0_75, %c0_76] : memref<1x16x32xf32, #tpu.memory_space<vmem>>, vector<1x16x32xf32>
    %202 = vector.shape_cast %201 : vector<1x16x32xf32> to vector<16x32xf32>
    %203 = vector.shape_cast %200 : vector<16x32xf32> to vector<1x16x32xf32>
    tpu.vector_store %arg17[%c0_74, %c0_75, %c0_76], %203 {strides = array<i32>} : memref<1x16x32xf32, #tpu.memory_space<vmem>>, vector<1x16x32xf32>,
    return
  }
  func.func @transform_0(%arg0: i32) -> (i32, i32, i32) {
    %c0_i32 = arith.constant 0 : i32
    %c0_i32_0 = arith.constant 0 : i32
    %c0_i32_1 = arith.constant 0 : i32
    return %arg0, %c0_i32, %c0_i32_0 : i32, i32, i32
  }
  func.func @transform_1(%arg0: i32) -> (i32, i32) {
    %c0_i32 = arith.constant 0 : i32
    %c0_i32_0 = arith.constant 0 : i32
    %c0_i32_1 = arith.constant 0 : i32
    return %c0_i32, %c0_i32_0 : i32, i32
  }
  func.func @transform_2(%arg0: i32) -> (i32, i32) {
    %c0_i32 = arith.constant 0 : i32
    %c0_i32_0 = arith.constant 0 : i32
    %c0_i32_1 = arith.constant 0 : i32
    return %c0_i32, %c0_i32_0 : i32, i32
  }
  func.func @transform_3(%arg0: i32) -> (i32, i32, i32) {
    %c0_i32 = arith.constant 0 : i32
    %c0_i32_0 = arith.constant 0 : i32
    %c0_i32_1 = arith.constant 0 : i32
    return %arg0, %c0_i32, %c0_i32_0 : i32, i32, i32
  }
  func.func @transform_4(%arg0: i32) -> (i32, i32) {
    %c0_i32 = arith.constant 0 : i32
    %c0_i32_0 = arith.constant 0 : i32
    %c0_i32_1 = arith.constant 0 : i32
    return %c0_i32, %c0_i32_0 : i32, i32
  }
  func.func @transform_5(%arg0: i32) -> (i32, i32) {
    %c0_i32 = arith.constant 0 : i32
    %c0_i32_0 = arith.constant 0 : i32
    %c0_i32_1 = arith.constant 0 : i32
    return %c0_i32, %c0_i32_0 : i32, i32
  }
  func.func @transform_6(%arg0: i32) -> (i32, i32) {
    %c0_i32 = arith.constant 0 : i32
    %c0_i32_0 = arith.constant 0 : i32
    %c0_i32_1 = arith.constant 0 : i32
    return %c0_i32, %c0_i32_0 : i32, i32
  }
  func.func @transform_7(%arg0: i32) -> (i32, i32) {
    %c0_i32 = arith.constant 0 : i32
    %c0_i32_0 = arith.constant 0 : i32
    %c0_i32_1 = arith.constant 0 : i32
    return %c0_i32, %c0_i32_0 : i32, i32
  }
  func.func @transform_8(%arg0: i32) -> (i32, i32) {
    %c0_i32 = arith.constant 0 : i32
    %c0_i32_0 = arith.constant 0 : i32
    %c0_i32_1 = arith.constant 0 : i32
    return %c0_i32, %c0_i32_0 : i32, i32
  }
  func.func @transform_9(%arg0: i32) -> (i32, i32) {
    %c0_i32 = arith.constant 0 : i32
    %c0_i32_0 = arith.constant 0 : i32
    %c0_i32_1 = arith.constant 0 : i32
    return %c0_i32, %c0_i32_0 : i32, i32
  }
  func.func @transform_10(%arg0: i32) -> (i32, i32) {
    %c0_i32 = arith.constant 0 : i32
    %c0_i32_0 = arith.constant 0 : i32
    %c0_i32_1 = arith.constant 0 : i32
    return %c0_i32, %c0_i32_0 : i32, i32
  }
  func.func @transform_11(%arg0: i32) -> (i32, i32) {
    %c0_i32 = arith.constant 0 : i32
    %c0_i32_0 = arith.constant 0 : i32
    %c0_i32_1 = arith.constant 0 : i32
    return %c0_i32, %c0_i32_0 : i32, i32
  }
  func.func @transform_12(%arg0: i32) -> (i32, i32) {
    %c0_i32 = arith.constant 0 : i32
    %c0_i32_0 = arith.constant 0 : i32
    %c0_i32_1 = arith.constant 0 : i32
    return %c0_i32, %c0_i32_0 : i32, i32
  }
  func.func @transform_13(%arg0: i32) -> (i32, i32) {
    %c0_i32 = arith.constant 0 : i32
    %c0_i32_0 = arith.constant 0 : i32
    %c0_i32_1 = arith.constant 0 : i32
    return %c0_i32, %c0_i32_0 : i32, i32
  }
  func.func @transform_14(%arg0: i32) -> (i32, i32) {
    %c0_i32 = arith.constant 0 : i32
    %c0_i32_0 = arith.constant 0 : i32
    %c0_i32_1 = arith.constant 0 : i32
    return %c0_i32, %c0_i32_0 : i32, i32
  }
  func.func @transform_15(%arg0: i32) -> (i32, i32) {
    %c0_i32 = arith.constant 0 : i32
    %c0_i32_0 = arith.constant 0 : i32
    %c0_i32_1 = arith.constant 0 : i32
    return %c0_i32, %c0_i32_0 : i32, i32
  }
  func.func @transform_16(%arg0: i32) -> (i32, i32, i32) {
    %c0_i32 = arith.constant 0 : i32
    %c0_i32_0 = arith.constant 0 : i32
    %c0_i32_1 = arith.constant 0 : i32
    return %arg0, %c0_i32, %c0_i32_0 : i32, i32, i32
  }
}

</mosaic_0001>

<bundles_post_ra>
// kernel: encoder_forward.5
= control target key start
LH: loop header
LB: loop body
LE: loop exit
PB: predicated region body
PF: predicated region fallthrough
CT: control target
= control target key end

     0   :  { %v567_v0 = vmov 0   ;;  %vm209_vm8 = vcmask 1043456   ;;  %s988_s1 = inlined_call_operand.vmem [shape: f32[128,1], index: 1, kind: input, shape index: {}]   ;;  %s989_s2 = inlined_call_operand.vmem [shape: bf16[8,32], index: 2, kind: input, shape index: {}]   ;;  %s990_s0 = inlined_call_operand.vmem [shape: f32[128,8], index: 0, kind: input, shape index: {}]   ;;  %s991_s3 = inlined_call_operand.vmem [shape: f32[1,32], index: 3, kind: input, shape index: {}]   ;;  %s992_s4 = inlined_call_operand.vmem [shape: f32[1,32], index: 4, kind: input, shape index: {}]   ;;  %s993_s5 = inlined_call_operand.vmem [shape: f32[1,32], index: 5, kind: input, shape index: {}]   ;;  %s994_s6 = inlined_call_operand.vmem [shape: f32[128,32], index: 6, kind: output, shape index: {}]  }
   0x1   :  { %564 = vset.pattern.permute.xlu1 %v567_v0  ;;  %563 = vset.pattern.permute.xlu0 %v567_v0  ;;  %v26_v1 = vld [vmem:[%s988_s1 + $0x10] sm:$0xff]  ;;  %v24_v2 = vld [vmem:[%s988_s1] sm:$0xff]  ;;  %v27_v3 = vld [vmem:[%s988_s1 + $0x18] sm:$0xff] }
   0x2   :  { %vm42_vm0 = vcmp.gt.f32.partialorder %v26_v1, 0.5  ;;  %vm40_vm1 = vcmp.gt.f32.partialorder %v24_v2, 0.5  ;;  %vm43_vm2 = vcmp.gt.f32.partialorder %v27_v3, 0.5  ;;  %v25_v4 = vld [vmem:[%s988_s1 + $0x8] sm:$0xff]  ;;  %v28_v8 = vld [vmem:[%s988_s1 + $0x20] sm:$0xff]  ;;  %v31_v11 = vld [vmem:[%s988_s1 + $0x38] sm:$0xff] }
   0x3   :  { %v74_v5 = vsel %vm42_vm0, 1, %v567_v0  ;;  %v72_v6 = vsel %vm40_vm1, 1, %v567_v0  ;;  %vm41_vm3 = vcmp.gt.f32.partialorder %v25_v4, 0.5  ;;  %v29_v7 = vld [vmem:[%s988_s1 + $0x28] sm:$0xff]  ;;  %v75_v9 = vsel %vm43_vm2, 1, %v567_v0  ;;  %v30_v12 = vld [vmem:[%s988_s1 + $0x30] sm:$0xff] }
   0x4   :  { %95 = vperm.xlu1 %564, %v74_v5   ;;  %89 = vperm.xlu0 %563, %v72_v6   ;;  %v73_v10 = vsel %vm41_vm3, 1, %v567_v0  ;;  %vm45_vm4 = vcmp.gt.f32.partialorder %v29_v7, 0.5  ;;  %vm44_vm5 = vcmp.gt.f32.partialorder %v28_v8, 0.5  ;;  %vm47_vm6 = vcmp.gt.f32.partialorder %v31_v11, 0.5  ;;  %v168_v15 = vld [vmem:[%s989_s2] sm:$0xf] }
   0x5   :  { %v77_v13 = vsel %vm45_vm4, 1, %v567_v0  ;;  %v76_v14 = vsel %vm44_vm5, 1, %v567_v0  ;;  %vm46_vm7 = vcmp.gt.f32.partialorder %v30_v12, 0.5  ;;  %v33_v16 = vld [vmem:[%s988_s1 + $0x48] sm:$0xff]  ;;  %v32_v17 = vld [vmem:[%s988_s1 + $0x40] sm:$0xff]  ;;  %560 = vmatprep.subr.msk.bf16.mxu0 %vm209_vm8, %v168_v15  ;;  %v211_v18 = vsel %vm209_vm8, %v168_v15, 0  ;;  %561 = vmatprep.subr.msk.bf16.mxu1 %vm209_vm8, %v168_v15 }
   0x6   :  { %v79_v19 = vsel %vm47_vm6, 1, %v567_v0  ;;  %v78_v20 = vsel %vm46_vm7, 1, %v567_v0  ;;  %541 = vmatpush3.bf16.msra.mxu0 %v211_v18  ;;  %559 = vmatpush3.bf16.msra.mxu1 %v211_v18  ;;  %vm49_vm9 = vcmp.gt.f32.partialorder %v33_v16, 0.5  ;;  %vm48_vm10 = vcmp.gt.f32.partialorder %v32_v17, 0.5  ;;  %v35_v21 = vld [vmem:[%s988_s1 + $0x58] sm:$0xff]  ;;  %v34_v22 = vld [vmem:[%s988_s1 + $0x50] sm:$0xff] }
   0x7   :  { %v81_v23 = vsel %vm49_vm9, 1, %v567_v0  ;;  %v80_v24 = vsel %vm48_vm10, 1, %v567_v0  ;;  %vm51_vm11 = vcmp.gt.f32.partialorder %v35_v21, 0.5  ;;  %vm50_vm12 = vcmp.gt.f32.partialorder %v34_v22, 0.5  ;;  %v37_v25 = vld [vmem:[%s988_s1 + $0x68] sm:$0xff]  ;;  %v36_v26 = vld [vmem:[%s988_s1 + $0x60] sm:$0xff] }
   0x8   :  { %98 = vperm.xlu1 %564, %v75_v9   ;;  %92 = vperm.xlu0 %563, %v73_v10   ;;  %v83_v27 = vsel %vm51_vm11, 1, %v567_v0  ;;  %v82_v28 = vsel %vm50_vm12, 1, %v567_v0  ;;  %vm53_vm13 = vcmp.gt.f32.partialorder %v37_v25, 0.5  ;;  %vm52_vm14 = vcmp.gt.f32.partialorder %v36_v26, 0.5  ;;  %v39_v29 = vld [vmem:[%s988_s1 + $0x78] sm:$0xff]  ;;  %v38_v30 = vld [vmem:[%s988_s1 + $0x70] sm:$0xff] }
   0x9   :  { %v85_v31 = vsel %vm53_vm13, 1, %v567_v0  ;;  %v84_v32 = vsel %vm52_vm14, 1, %v567_v0  ;;  %vm55_vm15 = vcmp.gt.f32.partialorder %v39_v29, 0.5  ;;  %vm54_vm0 = vcmp.gt.f32.partialorder %v38_v30, 0.5  ;;  %v58_v37 = vld [vmem:[%s990_s0 + $0x10] sm:$0xff]  ;;  %v56_v38 = vld [vmem:[%s990_s0] sm:$0xff] }
   0xa   :  { %v87_v33 = vsel %vm55_vm15, 1, %v567_v0  ;;  %v86_v34 = vsel %vm54_vm0, 1, %v567_v0  ;;  %v59_v39 = vld [vmem:[%s990_s0 + $0x18] sm:$0xff]  ;;  %v57_v40 = vld [vmem:[%s990_s0 + $0x8] sm:$0xff]  ;;  %vm184_vm5 = vcmask 64512   ;;  %v60_v49 = vld [vmem:[%s990_s0 + $0x20] sm:$0xff] }
   0xb   :  { %v61_v48 = vld [vmem:[%s990_s0 + $0x28] sm:$0xff]  ;;  %v63_v56 = vld [vmem:[%s990_s0 + $0x38] sm:$0xff]  ;;  %v62_v57 = vld [vmem:[%s990_s0 + $0x30] sm:$0xff] }
   0xc   :  { %104 = vperm.xlu1 %564, %v77_v13   ;;  %101 = vperm.xlu0 %563, %v76_v14   ;;  %v65_v63 = vld [vmem:[%s990_s0 + $0x48] sm:$0xff]  ;;  %v64_v0 = vld [vmem:[%s990_s0 + $0x40] sm:$0xff]  ;;  %v67_v5 = vld [vmem:[%s990_s0 + $0x58] sm:$0xff] }
   0xd   :  { %v66_v6 = vld [vmem:[%s990_s0 + $0x50] sm:$0xff]  ;;  %v69_v13 = vld [vmem:[%s990_s0 + $0x68] sm:$0xff]  ;;  %v68_v14 = vld [vmem:[%s990_s0 + $0x60] sm:$0xff] }
   0xe   :  { %v70_v21 = vld [vmem:[%s990_s0 + $0x70] sm:$0xff] }
  0x10   :  { %110 = vperm.xlu1 %564, %v79_v19   ;;  %107 = vperm.xlu0 %563, %v78_v20   ;;  %v71_v20 = vld [vmem:[%s990_s0 + $0x78] sm:$0xff] }
  0x14   :  { %116 = vperm.xlu1 %564, %v81_v23   ;;  %113 = vperm.xlu0 %563, %v80_v24  }
  0x18   :  { %122 = vperm.xlu1 %564, %v83_v27   ;;  %119 = vperm.xlu0 %563, %v82_v28   ;;  %v731_v28 = vld [vmem:[%s991_s3] ss:$0 sm:$0xff] }
  0x1c   :  { %128 = vperm.xlu1 %564, %v85_v31   ;;  %125 = vperm.xlu0 %563, %v84_v32  }
  0x20   :  { %134 = vperm.xlu1 %564, %v87_v33   ;;  %131 = vperm.xlu0 %563, %v86_v34  }
  0x7f   :  { %v96_v35 = vpop.permute.xlu1 %95  ;;  %v90_v36 = vpop.permute.xlu0 %89 }
  0x80   :  { %vm138_vm1 = vcmp.eq.s32.totalorder %v96_v35, 1  ;;  %vm136_vm2 = vcmp.eq.s32.totalorder %v90_v36, 1 }
  0x81   :  { %v154_v43 = vsel %vm138_vm1, %v58_v37, -1.0  ;;  %v152_v44 = vsel %vm136_vm2, %v56_v38, -1.0  ;;  %vm326_vm2 = vcmask 261120  }
  0x83   :  { %v99_v41 = vpop.permute.xlu1 %98  ;;  %v93_v42 = vpop.permute.xlu0 %92 }
  0x84   :  { %vm139_vm3 = vcmp.eq.s32.totalorder %v99_v41, 1  ;;  %vm137_vm4 = vcmp.eq.s32.totalorder %v93_v42, 1 }
  0x85   :  { %v155_v45 = vsel %vm139_vm3, %v59_v39, -1.0  ;;  %v153_v46 = vsel %vm137_vm4, %v57_v40, -1.0 }
  0x86   :  { %v170_v47 = vpack.c.bf16 %v155_v45, %v154_v43  ;;  %v169_v50 = vpack.c.bf16 %v153_v46, %v152_v44 }
  0x87   :  { %v105_v51 = vpop.permute.xlu1 %104  ;;  %v102_v52 = vpop.permute.xlu0 %101 }
  0x88   :  { %vm141_vm6 = vcmp.eq.s32.totalorder %v105_v51, 1  ;;  %vm140_vm7 = vcmp.eq.s32.totalorder %v102_v52, 1  ;;  %542 = vmatprep.mubr.msk.bf16.mxu0 %vm184_vm5, %v169_v50 }
  0x89   :  { %v157_v53 = vsel %vm141_vm6, %v61_v48, -1.0  ;;  %v156_v54 = vsel %vm140_vm7, %v60_v49, -1.0  ;;  %543 = vmatmul.mubr.msk.bf16.vlgmr.msra.gmra.mxu0 %vm184_vm5, %v170_v47 }
  0x8a   :  { %v171_v55 = vpack.c.bf16 %v157_v53, %v156_v54 }
  0x8b   :  { %v111_v58 = vpop.permute.xlu1 %110  ;;  %v108_v59 = vpop.permute.xlu0 %107 }
  0x8c   :  { %vm143_vm8 = vcmp.eq.s32.totalorder %v111_v58, 1  ;;  %vm142_vm9 = vcmp.eq.s32.totalorder %v108_v59, 1  ;;  %546 = vmatprep.mubr.msk.bf16.mxu0 %vm184_vm5, %v171_v55 }
  0x8d   :  { %v159_v60 = vsel %vm143_vm8, %v63_v56, -1.0  ;;  %v158_v61 = vsel %vm142_vm9, %v62_v57, -1.0 }
  0x8e   :  { %v172_v62 = vpack.c.bf16 %v159_v60, %v158_v61 }
  0x8f   :  { %v117_v1 = vpop.permute.xlu1 %116  ;;  %v114_v2 = vpop.permute.xlu0 %113 }
  0x90   :  { %vm145_vm10 = vcmp.eq.s32.totalorder %v117_v1, 1  ;;  %vm144_vm11 = vcmp.eq.s32.totalorder %v114_v2, 1 }
  0x91   :  { %v161_v3 = vsel %vm145_vm10, %v65_v63, -1.0  ;;  %v160_v4 = vsel %vm144_vm11, %v64_v0, -1.0  ;;  %547 = vmatmul.mubr.msk.bf16.gmra.mxu0 %vm184_vm5, %v172_v62 }
  0x92   :  { %v173_v7 = vpack.c.bf16 %v161_v3, %v160_v4 }
  0x93   :  { %v123_v8 = vpop.permute.xlu1 %122  ;;  %v120_v9 = vpop.permute.xlu0 %119 }
  0x94   :  { %vm147_vm12 = vcmp.eq.s32.totalorder %v123_v8, 1  ;;  %vm146_vm13 = vcmp.eq.s32.totalorder %v120_v9, 1  ;;  %550 = vmatprep.mubr.msk.bf16.mxu1 %vm184_vm5, %v173_v7 }
  0x95   :  { %v163_v10 = vsel %vm147_vm12, %v67_v5, -1.0  ;;  %v162_v11 = vsel %vm146_vm13, %v66_v6, -1.0 }
  0x96   :  { %v174_v12 = vpack.c.bf16 %v163_v10, %v162_v11 }
  0x97   :  { %v129_v15 = vpop.permute.xlu1 %128  ;;  %v126_v16 = vpop.permute.xlu0 %125 }
  0x98   :  { %vm149_vm14 = vcmp.eq.s32.totalorder %v129_v15, 1  ;;  %vm148_vm15 = vcmp.eq.s32.totalorder %v126_v16, 1  ;;  %551 = vmatmul.mubr.msk.bf16.vlgmr.msra.gmra.mxu1 %vm184_vm5, %v174_v12 }
  0x99   :  { %v165_v17 = vsel %vm149_vm14, %v69_v13, -1.0  ;;  %v164_v18 = vsel %vm148_vm15, %v68_v14, -1.0 }
  0x9a   :  { %v175_v19 = vpack.c.bf16 %v165_v17, %v164_v18 }
  0x9b   :  { %v135_v22 = vpop.permute.xlu1 %134  ;;  %v132_v23 = vpop.permute.xlu0 %131 }
  0x9c   :  { %vm151_vm0 = vcmp.eq.s32.totalorder %v135_v22, 1  ;;  %vm150_vm1 = vcmp.eq.s32.totalorder %v132_v23, 1  ;;  %554 = vmatprep.mubr.msk.bf16.mxu1 %vm184_vm5, %v175_v19 }
  0x9d   :  { %v167_v24 = vsel %vm151_vm0, %v71_v20, -1.0  ;;  %v166_v25 = vsel %vm150_vm1, %v70_v21, -1.0 }
  0x9e   :  { %v176_v26 = vpack.c.bf16 %v167_v24, %v166_v25 }
  0xa0   :  { %555 = vmatmul.mubr.msk.bf16.gmra.mxu1 %vm184_vm5, %v176_v26 }
 0x149   :  { %v544_v27 = vpop.f32.mrf.mxu0 }
 0x14a   :  { %v737_v32 = vadd.f32 %v544_v27, %v731_v28 }
 0x14b   :  { %v247_v29 = vpop.f32.mrf.mxu0 }
 0x14c   :  { %v734_v30 = vadd.f32 %v731_v28, %v247_v29  ;;  %v312_v38 = vmax.f32 %v737_v32, 0.0 }
 0x14d   :  { %v545_v31 = vpop.f32.mrf.mxu0 }
 0x14e   :  { %v310_v34 = vmax.f32 %v734_v30, 0.0  ;;  %v741_v35 = vadd.f32 %v545_v31, %v731_v28  ;;  %v330_v47 = vsel %vm326_vm2, %v312_v38, 0.0 }
 0x14f   :  { %v250_v33 = vpop.f32.mrf.mxu0 }
 0x150   :  { %v744_v36 = vadd.f32 %v731_v28, %v250_v33  ;;  %v327_v41 = vsel %vm326_vm2, %v310_v34, 0.0  ;;  %v313_v42 = vmax.f32 %v741_v35, 0.0 }
 0x151   :  { %v548_v37 = vpop.f32.mrf.mxu0 }
 0x152   :  { %v311_v39 = vmax.f32 %v744_v36, 0.0  ;;  %v762_v48 = vadd.f32 %v548_v37, %v731_v28  ;;  %v332_v52 = vsel %vm326_vm2, %v313_v42, 0.0 }
 0x153   :  { %v263_v40 = vpop.f32.mrf.mxu0 }
 0x154   :  { %v328_v43 = vsel %vm326_vm2, %v311_v39, 0.0  ;;  %v756_v44 = vadd.f32 %v731_v28, %v263_v40  ;;  %v316_v57 = vmax.f32 %v762_v48, 0.0 }
 0x155   :  { %v329_v45 = vadd.f32 %v328_v43, %v327_v41  ;;  %v549_v46 = vpop.f32.mrf.mxu0 }
 0x156   :  { %v314_v49 = vmax.f32 %v756_v44, 0.0  ;;  %v769_v53 = vadd.f32 %v549_v46, %v731_v28  ;;  %v338_v3 = vsel %vm326_vm2, %v316_v57, 0.0 }
 0x157   :  { %v331_v50 = vadd.f32 %v330_v47, %v329_v45  ;;  %v266_v51 = vpop.f32.mrf.mxu0 }
 0x158   :  { %v772_v54 = vadd.f32 %v731_v28, %v266_v51  ;;  %v552_v55 = vpop.f32.mrf.mxu1  ;;  %v334_v58 = vsel %vm326_vm2, %v314_v49, 0.0  ;;  %v317_v63 = vmax.f32 %v769_v53, 0.0 }
 0x159   :  { %v333_v56 = vadd.f32 %v332_v52, %v331_v50  ;;  %v790_v4 = vadd.f32 %v552_v55, %v731_v28 }
 0x15a   :  { %v315_v59 = vmax.f32 %v772_v54, 0.0  ;;  %v279_v60 = vpop.f32.mrf.mxu1  ;;  %v340_v9 = vsel %vm326_vm2, %v317_v63, 0.0 }
 0x15b   :  { %v335_v61 = vadd.f32 %v334_v58, %v333_v56  ;;  %v780_v62 = vadd.f32 %v731_v28, %v279_v60  ;;  %v320_v14 = vmax.f32 %v790_v4, 0.0 }
 0x15c   :  { %v336_v0 = vsel %vm326_vm2, %v315_v59, 0.0  ;;  %v553_v1 = vpop.f32.mrf.mxu1 }
 0x15d   :  { %v337_v2 = vadd.f32 %v336_v0, %v335_v61  ;;  %v318_v5 = vmax.f32 %v780_v62, 0.0  ;;  %v800_v10 = vadd.f32 %v553_v1, %v731_v28  ;;  %v346_v23 = vsel %vm326_vm2, %v320_v14, 0.0 }
 0x15e   :  { %v282_v6 = vpop.f32.mrf.mxu1 }
 0x15f   :  { %v339_v7 = vadd.f32 %v338_v3, %v337_v2  ;;  %v794_v8 = vadd.f32 %v731_v28, %v282_v6  ;;  %v342_v15 = vsel %vm326_vm2, %v318_v5, 0.0  ;;  %v321_v20 = vmax.f32 %v800_v10, 0.0 }
 0x160   :  { %v556_v11 = vpop.f32.mrf.mxu1 }
 0x161   :  { %v341_v12 = vadd.f32 %v340_v9, %v339_v7  ;;  %v319_v13 = vmax.f32 %v794_v8, 0.0  ;;  %v816_v24 = vadd.f32 %v556_v11, %v731_v28  ;;  %v348_v31 = vsel %vm326_vm2, %v321_v20, 0.0 }
 0x162   :  { %v295_v16 = vpop.f32.mrf.mxu1 }
 0x163   :  { %v343_v17 = vadd.f32 %v342_v15, %v341_v12  ;;  %v344_v18 = vsel %vm326_vm2, %v319_v13, 0.0  ;;  %v809_v19 = vadd.f32 %v731_v28, %v295_v16  ;;  %v324_v41 = vmax.f32 %v816_v24, 0.0 }
 0x164   :  { %v557_v21 = vpop.f32.mrf.mxu1 }
 0x165   :  { %v345_v22 = vadd.f32 %v344_v18, %v343_v17  ;;  %v322_v25 = vmax.f32 %v809_v19, 0.0  ;;  %v826_v33 = vadd.f32 %v557_v21, %v731_v28  ;;  %v354_v51 = vsel %vm326_vm2, %v324_v41, 0.0 }
 0x166   :  { %v298_v26 = vpop.f32.mrf.mxu1 }
 0x167   :  { %v347_v27 = vadd.f32 %v346_v23, %v345_v22  ;;  %v820_v29 = vadd.f32 %v731_v28, %v298_v26  ;;  %v350_v43 = vsel %vm326_vm2, %v322_v25, 0.0  ;;  %v325_v47 = vmax.f32 %v826_v33, 0.0 }
 0x169   :  { %v349_v37 = vadd.f32 %v348_v31, %v347_v27  ;;  %v323_v40 = vmax.f32 %v820_v29, 0.0  ;;  %v356_v55 = vsel %vm326_vm2, %v325_v47, 0.0 }
 0x16b   :  { %v351_v45 = vadd.f32 %v350_v43, %v349_v37  ;;  %v352_v46 = vsel %vm326_vm2, %v323_v40, 0.0 }
 0x16d   :  { %v353_v50 = vadd.f32 %v352_v46, %v351_v45 }
 0x16f   :  { %v355_v52 = vadd.f32 %v354_v51, %v353_v50 }
 0x171   :  { %v357_v28 = vadd.f32 %v356_v55, %v355_v52 }
 0x173   :  { %v358_v56 = vrot.slane %v357_v28, 4 }
 0x175   :  { %v359_v58 = vadd.f32 %v358_v56, %v357_v28 }
 0x177   :  { %v360_v60 = vrot.slane %v359_v58, 2 }
 0x179   :  { %v361_v61 = vadd.f32 %v360_v60, %v359_v58 }
 0x17b   :  { %v362_v0 = vrot.slane %v361_v61, 1 }
 0x17d   :  { %v363_v1 = vadd.f32 %v362_v0, %v361_v61 }
 0x17f   :  { %v365_v2 = vmul.f32 0.0078125, %v363_v1 }
 0x181   :  { %v837_v3 = vsub.f32 %v310_v34, %v365_v2  ;;  %v841_v6 = vsub.f32 %v311_v39, %v365_v2  ;;  %v845_v7 = vsub.f32 %v312_v38, %v365_v2  ;;  %v849_v8 = vsub.f32 %v313_v42, %v365_v2 }
 0x182   :  { %v857_v34 = vsub.f32 %v314_v49, %v365_v2  ;;  %v863_v32 = vsub.f32 %v315_v59, %v365_v2  ;;  %v871_v44 = vsub.f32 %v316_v57, %v365_v2  ;;  %v878_v59 = vsub.f32 %v317_v63, %v365_v2 }
 0x183   :  { %v382_v9 = vmul.f32 %v837_v3, %v837_v3  ;;  %v383_v30 = vmul.f32 %v841_v6, %v841_v6  ;;  %v384_v36 = vmul.f32 %v845_v7, %v845_v7  ;;  %v385_v35 = vmul.f32 %v849_v8, %v849_v8 }
 0x184   :  { %v386_v49 = vmul.f32 %v857_v34, %v857_v34  ;;  %v387_v12 = vmul.f32 %v863_v32, %v863_v32  ;;  %v885_v48 = vsub.f32 %v318_v5, %v365_v2  ;;  %v388_v57 = vmul.f32 %v871_v44, %v871_v44 }
 0x185   :  { %v398_v38 = vsel %vm326_vm2, %v382_v9, 0.0  ;;  %v399_v39 = vsel %vm326_vm2, %v383_v30, 0.0  ;;  %v401_v11 = vsel %vm326_vm2, %v384_v36, 0.0  ;;  %v403_v15 = vsel %vm326_vm2, %v385_v35, 0.0 }
 0x186   :  { %v400_v42 = vadd.f32 %v399_v39, %v398_v38  ;;  %v405_v17 = vsel %vm326_vm2, %v386_v49, 0.0  ;;  %v375_v19 = vsub.f32 %v319_v13, %v365_v2  ;;  %v389_v53 = vmul.f32 %v878_v59, %v878_v59 }
 0x187   :  { %v407_v63 = vsel %vm326_vm2, %v387_v12, 0.0  ;;  %v376_v22 = vsub.f32 %v320_v14, %v365_v2  ;;  %v390_v62 = vmul.f32 %v885_v48, %v885_v48  ;;  %v409_v5 = vsel %vm326_vm2, %v388_v57, 0.0 }
 0x188   :  { %v402_v54 = vadd.f32 %v401_v11, %v400_v42  ;;  %v377_v24 = vsub.f32 %v321_v20, %v365_v2  ;;  %v391_v26 = vmul.f32 %v375_v19, %v375_v19  ;;  %v411_v13 = vsel %vm326_vm2, %v389_v53, 0.0  ;;  %v529_v53 = vld [vmem:[%s992_s4] ss:$0 sm:$0xff] }
 0x189   :  { %v378_v29 = vsub.f32 %v322_v25, %v365_v2  ;;  %v392_v31 = vmul.f32 %v376_v22, %v376_v22  ;;  %v413_v33 = vsel %vm326_vm2, %v390_v62, 0.0  ;;  %v379_v4 = vsub.f32 %v323_v40, %v365_v2 }
 0x18a   :  { %v404_v16 = vadd.f32 %v403_v15, %v402_v54  ;;  %v393_v14 = vmul.f32 %v377_v24, %v377_v24  ;;  %v415_v43 = vsel %vm326_vm2, %v391_v26, 0.0  ;;  %v380_v46 = vsub.f32 %v324_v41, %v365_v2 }
 0x18b   :  { %v394_v50 = vmul.f32 %v378_v29, %v378_v29  ;;  %v417_v51 = vsel %vm326_vm2, %v392_v31, 0.0  ;;  %v381_v20 = vsub.f32 %v325_v47, %v365_v2  ;;  %v395_v52 = vmul.f32 %v379_v4, %v379_v4  ;;  %v530_v31 = vld [vmem:[%s993_s5] ss:$0 sm:$0xff] }
 0x18c   :  { %v406_v18 = vadd.f32 %v405_v17, %v404_v16  ;;  %v419_v55 = vsel %vm326_vm2, %v393_v14, 0.0  ;;  %v396_v25 = vmul.f32 %v380_v46, %v380_v46 }
 0x18d   :  { %v421_v56 = vsel %vm326_vm2, %v394_v50, 0.0  ;;  %v397_v60 = vmul.f32 %v381_v20, %v381_v20  ;;  %v423_v40 = vsel %vm326_vm2, %v395_v52, 0.0 }
 0x18e   :  { %v408_v21 = vadd.f32 %v407_v63, %v406_v18  ;;  %v425_v0 = vsel %vm326_vm2, %v396_v25, 0.0 }
 0x18f   :  { %v427_v1 = vsel %vm326_vm2, %v397_v60, 0.0 }
 0x190   :  { %v410_v23 = vadd.f32 %v409_v5, %v408_v21 }
 0x192   :  { %v412_v27 = vadd.f32 %v411_v13, %v410_v23 }
 0x194   :  { %v414_v37 = vadd.f32 %v413_v33, %v412_v27 }
 0x196   :  { %v416_v45 = vadd.f32 %v415_v43, %v414_v37 }
 0x198   :  { %v418_v10 = vadd.f32 %v417_v51, %v416_v45 }
 0x19a   :  { %v420_v28 = vadd.f32 %v419_v55, %v418_v10 }
 0x19c   :  { %v422_v58 = vadd.f32 %v421_v56, %v420_v28 }
 0x19e   :  { %v424_v61 = vadd.f32 %v423_v40, %v422_v58 }
 0x1a0   :  { %v426_v41 = vadd.f32 %v425_v0, %v424_v61 }
 0x1a2   :  { %v428_v9 = vadd.f32 %v427_v1, %v426_v41 }
 0x1a4   :  { %v429_v30 = vrot.slane %v428_v9, 4 }
 0x1a6   :  { %v430_v47 = vadd.f32 %v429_v30, %v428_v9 }
 0x1a8   :  { %v431_v2 = vrot.slane %v430_v47, 2 }
 0x1aa   :  { %v432_v36 = vadd.f32 %v431_v2, %v430_v47 }
 0x1ac   :  { %v433_v35 = vrot.slane %v432_v36, 1 }
 0x1ae   :  { %v434_v38 = vadd.f32 %v433_v35, %v432_v36 }
 0x1b0   :  { %v435_v39 = vmul.f32 0.0078125, %v434_v38 }
 0x1b2   :  { %v436_v42 = vadd.f32 1e-05, %v435_v39 }
 0x1b4   :  { %565 = vrsqrt.f32 %v436_v42 }
 0x1c1   :  { %v566_v49 = vpop.eup %565 }
 0x1c2   :  { %v438_v11 = vmul.f32 %v566_v49, %v837_v3  ;;  %v439_v54 = vmul.f32 %v566_v49, %v841_v6  ;;  %v440_v12 = vmul.f32 %v566_v49, %v845_v7  ;;  %v441_v15 = vmul.f32 %v566_v49, %v849_v8 }
 0x1c3   :  { %v442_v16 = vmul.f32 %v566_v49, %v857_v34  ;;  %v443_v57 = vmul.f32 %v566_v49, %v863_v32  ;;  %v444_v17 = vmul.f32 %v566_v49, %v871_v44  ;;  %v445_v18 = vmul.f32 %v566_v49, %v878_v59 }
 0x1c4   :  { %v446_v3 = vmul.f32 %v566_v49, %v885_v48  ;;  %v447_v63 = vmul.f32 %v566_v49, %v375_v19  ;;  %v448_v6 = vmul.f32 %v566_v49, %v376_v22  ;;  %v449_v21 = vmul.f32 %v566_v49, %v377_v24 }
 0x1c5   :  { %v450_v7 = vmul.f32 %v566_v49, %v378_v29  ;;  %v451_v62 = vmul.f32 %v566_v49, %v379_v4  ;;  %v452_v8 = vmul.f32 %v566_v49, %v380_v46  ;;  %v453_v5 = vmul.f32 %v566_v49, %v381_v20 }
 0x1c6   :  { %v461_v34 = vmul.f32 %v529_v53, %v438_v11  ;;  %v462_v23 = vmul.f32 %v529_v53, %v439_v54  ;;  %v463_v32 = vmul.f32 %v529_v53, %v440_v12  ;;  %v464_v26 = vmul.f32 %v529_v53, %v441_v15 }
 0x1c7   :  { %v465_v44 = vmul.f32 %v529_v53, %v442_v16  ;;  %v466_v13 = vmul.f32 %v529_v53, %v443_v57  ;;  %v467_v59 = vmul.f32 %v529_v53, %v444_v17  ;;  %v468_v27 = vmul.f32 %v529_v53, %v445_v18 }
 0x1c8   :  { %v469_v48 = vmul.f32 %v529_v53, %v446_v3  ;;  %v470_v19 = vmul.f32 %v529_v53, %v447_v63  ;;  %v471_v22 = vmul.f32 %v529_v53, %v448_v6  ;;  %v472_v24 = vmul.f32 %v529_v53, %v449_v21 }
 0x1c9   :  { %v473_v29 = vmul.f32 %v529_v53, %v450_v7  ;;  %v474_v33 = vmul.f32 %v529_v53, %v451_v62  ;;  %v475_v37 = vmul.f32 %v529_v53, %v452_v8  ;;  %v476_v4 = vmul.f32 %v529_v53, %v453_v5 }
 0x1ca   :  { %v484_v14 = vadd.f32 %v530_v31, %v461_v34  ;;  %v485_v43 = vadd.f32 %v530_v31, %v462_v23  ;;  %v486_v45 = vadd.f32 %v530_v31, %v463_v32  ;;  %v487_v46 = vadd.f32 %v530_v31, %v464_v26 }
 0x1cb   :  { %v488_v50 = vadd.f32 %v530_v31, %v465_v44  ;;  %v489_v51 = vadd.f32 %v530_v31, %v466_v13  ;;  %v490_v10 = vadd.f32 %v530_v31, %v467_v59  ;;  %v491_v20 = vadd.f32 %v530_v31, %v468_v27 }
 0x1cc   :  { %v492_v52 = vadd.f32 %v530_v31, %v469_v48  ;;  %v493_v55 = vadd.f32 %v530_v31, %v470_v19  ;;  %v494_v28 = vadd.f32 %v530_v31, %v471_v22  ;;  %v495_v25 = vadd.f32 %v530_v31, %v472_v24  ;;  %500 = vst.msk [vmem:[%s994_s6] sm:$0xff] %vm326_vm2, %v484_v14 }
 0x1cd   :  { %501 = vst.msk [vmem:[%s994_s6 + $0x8] sm:$0xff] %vm326_vm2, %v485_v43  ;;  %502 = vst.msk [vmem:[%s994_s6 + $0x10] sm:$0xff] %vm326_vm2, %v486_v45  ;;  %v496_v56 = vadd.f32 %v530_v31, %v473_v29  ;;  %v497_v58 = vadd.f32 %v530_v31, %v474_v33  ;;  %v498_v60 = vadd.f32 %v530_v31, %v475_v37 }
 0x1ce   :  { %503 = vst.msk [vmem:[%s994_s6 + $0x18] sm:$0xff] %vm326_vm2, %v487_v46  ;;  %v499_v40 = vadd.f32 %v530_v31, %v476_v4  ;;  %504 = vst.msk [vmem:[%s994_s6 + $0x20] sm:$0xff] %vm326_vm2, %v488_v50 }
 0x1cf   :  { %505 = vst.msk [vmem:[%s994_s6 + $0x28] sm:$0xff] %vm326_vm2, %v489_v51  ;;  %506 = vst.msk [vmem:[%s994_s6 + $0x30] sm:$0xff] %vm326_vm2, %v490_v10 }
 0x1d0   :  { %507 = vst.msk [vmem:[%s994_s6 + $0x38] sm:$0xff] %vm326_vm2, %v491_v20  ;;  %508 = vst.msk [vmem:[%s994_s6 + $0x40] sm:$0xff] %vm326_vm2, %v492_v52 }
 0x1d1   :  { %509 = vst.msk [vmem:[%s994_s6 + $0x48] sm:$0xff] %vm326_vm2, %v493_v55  ;;  %510 = vst.msk [vmem:[%s994_s6 + $0x50] sm:$0xff] %vm326_vm2, %v494_v28 }
 0x1d2   :  { %511 = vst.msk [vmem:[%s994_s6 + $0x58] sm:$0xff] %vm326_vm2, %v495_v25  ;;  %512 = vst.msk [vmem:[%s994_s6 + $0x60] sm:$0xff] %vm326_vm2, %v496_v56 }
 0x1d3   :  { %513 = vst.msk [vmem:[%s994_s6 + $0x68] sm:$0xff] %vm326_vm2, %v497_v58  ;;  %514 = vst.msk [vmem:[%s994_s6 + $0x70] sm:$0xff] %vm326_vm2, %v498_v60 }
 0x1d4   :  { %515 = vst.msk [vmem:[%s994_s6 + $0x78] sm:$0xff] %vm326_vm2, %v499_v40 }

// kernel: encoder_forward.8
= control target key start
LH: loop header
LB: loop body
LE: loop exit
PB: predicated region body
PF: predicated region fallthrough
CT: control target
= control target key end

     0   :  { %vm33_vm0 = vcmask 261120   ;;  %v288_v14 = vmov 0.0   ;;  %vm289_vm1 = vmmov 0   ;;  %vm153_vm2 = vcmask 257024   ;;  %s387_s0 = inlined_call_operand.vmem [shape: f32[16,32], index: 0, kind: input, shape index: {}]   ;;  %s388_s3 = inlined_call_operand.vmem [shape: bf16[32,32], index: 3, kind: input, shape index: {}]   ;;  %s389_s5 = inlined_call_operand.vmem [shape: bf16[32,32], index: 5, kind: input, shape index: {}]   ;;  %s390_s1 = inlined_call_operand.vmem [shape: f32[1,32], index: 1, kind: input, shape index: {}]   ;;  %s391_s2 = inlined_call_operand.vmem [shape: f32[1,32], index: 2, kind: input, shape index: {}]   ;;  %s392_s4 = inlined_call_operand.vmem [shape: f32[1,32], index: 4, kind: input, shape index: {}]   ;;  %s393_s6 = inlined_call_operand.vmem [shape: f32[1,32], index: 6, kind: input, shape index: {}]   ;;  %s394_s7 = inlined_call_operand.vmem [shape: bf16[16,32], index: 7, kind: output, shape index: {0}]   ;;  %s395_s8 = inlined_call_operand.vmem [shape: bf16[16,32], index: 8, kind: output, shape index: {1}]  }
   0x1   :  { %v29_v0 = vld [vmem:[%s387_s0] sm:$0xff]  ;;  %v30_v1 = vld [vmem:[%s387_s0 + $0x8] sm:$0xff]  ;;  %262 = vmatprep.subr.bf16.mxu0 %v288_v14  ;;  %270 = vmatprep.subr.bf16.mxu1 %v288_v14 }
   0x2   :  { %v34_v2 = vsel %vm33_vm0, %v29_v0, 0.0  ;;  %v37_v3 = vsel %vm33_vm0, %v30_v1, 0.0  ;;  %v280_v15 = vld [vmem:[%s388_s3 + $0x8] sm:$0xff]   ;;  %266 = vmatprep.mubr.msk.bf16.mxu0 %vm289_vm1, %v288_v14  ;;  %274 = vmatprep.mubr.msk.bf16.mxu1 %vm289_vm1, %v288_v14  ;;  %v282_v17 = vld [vmem:[%s388_s3] sm:$0xff]  }
   0x3   :  { %35 = vadd.xlane.f32.xlu0 %v34_v2  ;;  %v281_v16 = vld [vmem:[%s389_s5 + $0x8] sm:$0xff]   ;;  %263 = vmatpush3.bf16.msra.mxu0 %v280_v15  ;;  %v283_v18 = vld [vmem:[%s389_s5] sm:$0xff]  }
   0x4   :  { %271 = vmatpush3.bf16.msra.mxu1 %v281_v16  ;;  %264 = vmatprep.subr.bf16.mxu0 %v288_v14  ;;  %v238_v27 = vld [vmem:[%s390_s1] ss:$0 sm:$0xff] }
   0x5   :  { %272 = vmatprep.subr.bf16.mxu1 %v288_v14  ;;  %v239_v31 = vld [vmem:[%s391_s2] ss:$0 sm:$0xff] }
   0x6   :  { %v240_v36 = vld [vmem:[%s392_s4] ss:$0 sm:$0xff] }
   0x7   :  { %38 = vadd.xlane.f32.xlu0 %v37_v3  ;;  %265 = vmatpush3.bf16.msra.mxu0 %v282_v17  ;;  %v246_v37 = vld [vmem:[%s393_s6] ss:$0 sm:$0xff] }
   0x8   :  { %273 = vmatpush3.bf16.msra.mxu1 %v283_v18 }
  0x8c   :  { %v36_v4 = vpop.xlane.xlu0 %35 }
  0x8d   :  { %v41_v5 = vmul.f32 0.03125, %v36_v4 }
  0x8f   :  { %v43_v6 = vsub.f32 %v29_v0, %v41_v5 }
  0x90   :  { %v39_v7 = vpop.xlane.xlu0 %38 }
  0x91   :  { %v42_v8 = vmul.f32 0.03125, %v39_v7  ;;  %v45_v9 = vmul.f32 %v43_v6, %v43_v6 }
  0x93   :  { %v44_v10 = vsub.f32 %v30_v1, %v42_v8  ;;  %v47_v11 = vsel %vm33_vm0, %v45_v9, 0.0 }
  0x94   :  { %48 = vadd.xlane.f32.xlu1 %v47_v11 }
  0x95   :  { %v46_v12 = vmul.f32 %v44_v10, %v44_v10 }
  0x97   :  { %v50_v13 = vsel %vm33_vm0, %v46_v12, 0.0 }
  0x98   :  { %51 = vadd.xlane.f32.xlu1 %v50_v13 }
 0x11d   :  { %v49_v19 = vpop.xlane.xlu1 %48 }
 0x11e   :  { %v53_v20 = vmul.f32 0.03125, %v49_v19 }
 0x120   :  { %v55_v21 = vadd.f32 1e-05, %v53_v20 }
 0x121   :  { %v52_v22 = vpop.xlane.xlu1 %51 }
 0x122   :  { %284 = vrsqrt.f32 %v55_v21  ;;  %v54_v23 = vmul.f32 0.03125, %v52_v22 }
 0x124   :  { %v56_v24 = vadd.f32 1e-05, %v54_v23 }
 0x126   :  { %286 = vrsqrt.f32 %v56_v24 }
 0x12f   :  { %v285_v25 = vpop.eup %284 }
 0x130   :  { %v59_v26 = vmul.f32 %v285_v25, %v43_v6 }
 0x132   :  { %v67_v30 = vmul.f32 %v238_v27, %v59_v26 }
 0x133   :  { %v287_v28 = vpop.eup %286 }
 0x134   :  { %v60_v29 = vmul.f32 %v287_v28, %v44_v10  ;;  %v75_v33 = vadd.f32 %v239_v31, %v67_v30 }
 0x136   :  { %v68_v32 = vmul.f32 %v238_v27, %v60_v29 }
 0x138   :  { %v76_v34 = vadd.f32 %v239_v31, %v68_v32 }
 0x13a   :  { %v81_v35 = vpack.c.bf16 %v76_v34, %v75_v33 }
 0x13c   :  { %267 = vmatmul.mubr.msk.bf16.vlgmr.msra.gmra.mxu0 %vm33_vm0, %v81_v35  ;;  %275 = vmatmul.mubr.msk.bf16.vlgmr.msra.gmra.mxu1 %vm33_vm0, %v81_v35 }
 0x1fc   :  { %v138_v38 = vpop.f32.mrf.mxu0  ;;  %v213_v39 = vpop.f32.mrf.mxu1 }
 0x1fd   :  { %v139_v40 = vadd.f32 %v240_v36, %v138_v38  ;;  %v214_v41 = vadd.f32 %v246_v37, %v213_v39 }
 0x1fe   :  { %v268_v42 = vpop.f32.mrf.mxu0  ;;  %v276_v43 = vpop.f32.mrf.mxu1 }
 0x1ff   :  { %v252_v44 = vpack.c.bf16 %v139_v40, %v139_v40  ;;  %v254_v45 = vpack.c.bf16 %v214_v41, %v214_v41 }
 0x200   :  { %v141_v46 = vpop.f32.mrf.mxu0  ;;  %v216_v47 = vpop.f32.mrf.mxu1 }
 0x201   :  { %154 = vst.msk [vmem:[%s394_s7] sm:$0xf] %vm153_vm2, %v252_v44  ;;  %228 = vst.msk [vmem:[%s395_s8] sm:$0xf] %vm153_vm2, %v254_v45  ;;  %v142_v48 = vadd.f32 %v240_v36, %v141_v46  ;;  %v217_v49 = vadd.f32 %v246_v37, %v216_v47 }
 0x202   :  { %v269_v50 = vpop.f32.mrf.mxu0  ;;  %v277_v51 = vpop.f32.mrf.mxu1 }
 0x203   :  { %v253_v52 = vpack.c.bf16 %v142_v48, %v142_v48  ;;  %v255_v53 = vpack.c.bf16 %v217_v49, %v217_v49 }
 0x205   :  { %155 = vst.msk [vmem:[%s394_s7 + $0x4] sm:$0xf] %vm153_vm2, %v253_v52  ;;  %229 = vst.msk [vmem:[%s395_s8 + $0x4] sm:$0xf] %vm153_vm2, %v255_v53 }

// kernel: encoder_forward.7
= control target key start
LH: loop header
LB: loop body
LE: loop exit
PB: predicated region body
PF: predicated region fallthrough
CT: control target
= control target key end

     0   :  { %s2451_s0 = inlined_call_operand.vmem [shape: f32[16,8,32], index: 0, kind: input, shape index: {}]   ;;  %s2452_s1 = inlined_call_operand.vmem [shape: f32[16,1,8], index: 1, kind: input, shape index: {}]   ;;  %s2453_s2 = inlined_call_operand.vmem [shape: f32[8,8], index: 2, kind: input, shape index: {}]   ;;  %s2454_s3 = inlined_call_operand.vmem [shape: f32[1,32], index: 3, kind: input, shape index: {}]   ;;  %s2455_s4 = inlined_call_operand.vmem [shape: f32[1,32], index: 4, kind: input, shape index: {}]   ;;  %s2456_s5 = inlined_call_operand.vmem [shape: bf16[32,32], index: 5, kind: input, shape index: {}]   ;;  %s2457_s6 = inlined_call_operand.vmem [shape: f32[1,32], index: 6, kind: input, shape index: {}]   ;;  %s2458_s7 = inlined_call_operand.vmem [shape: bf16[32,32], index: 7, kind: input, shape index: {}]   ;;  %s2459_s8 = inlined_call_operand.vmem [shape: f32[1,32], index: 8, kind: input, shape index: {}]   ;;  %s2460_s9 = inlined_call_operand.vmem [shape: bf16[32,32], index: 9, kind: input, shape index: {}]   ;;  %s2461_s10 = inlined_call_operand.vmem [shape: f32[1,32], index: 10, kind: input, shape index: {}]   ;;  %s2462_s11 = inlined_call_operand.vmem [shape: bf16[32,32], index: 11, kind: input, shape index: {}]   ;;  %s2463_s12 = inlined_call_operand.vmem [shape: f32[1,32], index: 12, kind: input, shape index: {}]   ;;  %s2464_s13 = inlined_call_operand.vmem [shape: f32[1,32], index: 13, kind: input, shape index: {}]   ;;  %s2465_s14 = inlined_call_operand.vmem [shape: f32[1,32], index: 14, kind: input, shape index: {}]   ;;  %s2466_s15 = inlined_call_operand.vmem [shape: bf16[32,128], index: 15, kind: input, shape index: {}]   ;;  %s2467_s16 = inlined_call_operand.vmem [shape: f32[1,128], index: 16, kind: input, shape index: {}]   ;;  %s2468_s17 = inlined_call_operand.vmem [shape: bf16[128,32], index: 17, kind: input, shape index: {}]   ;;  %s2469_s18 = inlined_call_operand.vmem [shape: f32[1,32], index: 18, kind: input, shape index: {}]   ;;  %s2470_s19 = inlined_call_operand.vmem [shape: f32[16,8,32], index: 19, kind: output, shape index: {}]  }
   0x1   :  { %2471 = sst [smem:[#allocation2_spill]] %s2451_s0  ;;  %s2178_s0 = smov 0  }
   0x2   :  { %2472 = sst [smem:[#allocation3_spill]] %s2452_s1 }
   0x3   :  { %2473 = sst [smem:[#allocation4_spill]] %s2453_s2 }
   0x4   :  { %2474 = sst [smem:[#allocation5_spill]] %s2454_s3 }
   0x5 LB: > { %s1784_s30 = sadd.s32 4294967295, %s2069_s0   ;;  %p1788_p0 = scmp.ge.s32.totalorder %s2069_s0, 1  ;;  %s2069_s0 = sphi %s2178_s0, %s29_s0  }
   0x6   : > { %p544_p1 = scmp.lt.s32.totalorder %s2069_s0, 17 }
   0x8   : > { %p545_p2 = pnand %p1788_p0, %p544_p1 }
   0x9   : > { %p601_p3 = scmp.lt.s32.totalorder (!%p545_p2), %s1784_s30, 15  ;;  %s2475_s22 = sld [smem:[#allocation2_spill]] (!%p545_p2) }
   0xa   : > { %548 = sbr.rel (%p545_p2) target bundleno = 3503 (0xdaf), region = 96  ;;  %s2476_s28 = sld [smem:[#allocation5_spill]] (!%p545_p2) }
   0xb   : > { %s2073_s1 = smov (!%p545_p2), 120   ;;  %s2477_s25 = sld [smem:[#allocation3_spill]] (!%p545_p2) }
   0xc   : > { %s2076_s29 = smov (!%p545_p2), 112   ;;  %s2077_s23 = smov (!%p545_p2), 104  }
   0xf   : > { %s2480_s30 = smov (!%p601_p3, %s1784_s30), 15  ;;  %vm616_vm0 = vcmask 261120   ;;  %v2023_v7 = vld [vmem:[%s2456_s5 + $0x8] sm:$0xff]   ;;  %v2071_v8 = vmov 0.0   ;;  %vm2072_vm1 = vmmov 0   ;;  %v2024_v9 = vld [vmem:[%s2456_s5] sm:$0xff]   ;;  %v843_v50 = vlaneseq }
  0x10   : > { %s1789_s20 = sshll.u32 %s2480_s30, 3  ;;  %1884 = vmatprep.subr.bf16.mxu1 %v2071_v8  ;;  %1888 = vmatprep.mubr.msk.bf16.mxu1 %vm2072_vm1, %v2071_v8  ;;  %v1791_v14 = vld [vmem:[%s2476_s28] ss:$0 sm:$0xff]  ;;  %v2025_v19 = vld [vmem:[%s2458_s7 + $0x8] sm:$0xff]   ;;  %vm861_vm2 = vcmask 64512   ;;  %vm925_vm3 = vcmask 1043456  }
  0x11   : > { %s604_s2 = scalar_lea.vmem %s2475_s22, %s1789_s20  ;;  %1885 = vmatpush3.bf16.msra.mxu1 %v2023_v7  ;;  %1914 = vmatprep.subr.bf16.mxu0 %v2071_v8  ;;  %v1792_v16 = vld [vmem:[%s2455_s4] ss:$0 sm:$0xff]  ;;  %v2027_v22 = vld [vmem:[%s2460_s9 + $0x8] sm:$0xff]   ;;  %s607_s3 = scalar_lea.vmem %s2477_s25, %s2480_s30  ;;  %v844_v52 = vshrl.u32 %v843_v50, 7  ;;  %v2074_v54 = vmov 0  }
  0x12   : > { %v2194_v0 = vld [vmem:[%s604_s2] sm:$0xff]  ;;  %1886 = vmatprep.subr.bf16.mxu1 %v2071_v8  ;;  %1916 = vmatprep.mubr.msk.bf16.mxu0 %vm2072_vm1, %v2071_v8  ;;  %s2478_s28 = sld [smem:[#allocation4_spill]]  ;;  %v2075_v59 = vmov -1e+09   ;;  %s611_s24 = scalar_lea.vmem %s2470_s19, %s1789_s20 }
  0x13   : > { %v617_v1 = vsel %vm616_vm0, %v2194_v0, 0.0  ;;  %v2026_v21 = vld [vmem:[%s2458_s7] sm:$0xff]   ;;  %v845_v53 = vsub.s32 0, %v844_v52 }
  0x14   : > { %618 = vadd.xlane.f32.xlu0 %v617_v1  ;;  %v2028_v23 = vld [vmem:[%s2460_s9] sm:$0xff]  }
  0x15   : > { %1887 = vmatpush3.bf16.msra.mxu1 %v2024_v9  ;;  %v1797_v28 = vld [vmem:[%s2459_s8] ss:$0 sm:$0xff] }
  0x16   : > { %1892 = vmatprep.subr.bf16.mxu1 %v2071_v8  ;;  %v1793_v29 = vld [vmem:[%s2457_s6] ss:$0 sm:$0xff] }
  0x17   : > { %v1801_v38 = vld [vmem:[%s2461_s10] ss:$0 sm:$0xff] }
  0x18   : > { %v838_v51 = vld [vmem:[%s607_s3] sm:$0x1] }
  0x19   : > { %vm839_vm4 = vcmp.gt.f32.partialorder %v838_v51, 0.5  ;;  %v840_v57 = vld [vmem:[%s2478_s28] sm:$0xff] }
  0x1a   : > { %v842_v55 = vsel %vm839_vm4, 1, %v2074_v54  ;;  %vm841_vm5 = vcmp.gt.f32.partialorder %v840_v57, 0.5 }
  0x1b   : > { %v846_v56 = vrot.slane %v842_v55, %v845_v53 }
  0x1d   : > { %vm847_vm6 = vcmp.eq.s32.totalorder %v846_v56, 1 }
  0x1e   : > { %vm848_vm7 = vmand %vm847_vm6, %vm841_vm5 }
  0x1f   : > { %v2286_v60 = vsel %vm848_vm7, 0.0, %v2075_v59 }
  0x9d   : > { %v619_v2 = vpop.xlane.xlu0 %618 }
  0x9e   : > { %v621_v3 = vmul.f32 0.03125, %v619_v2 }
  0xa0   : > { %v622_v4 = vsub.f32 %v2194_v0, %v621_v3 }
  0xa2   : > { %v623_v5 = vmul.f32 %v622_v4, %v622_v4 }
  0xa4   : > { %v624_v6 = vsel %vm616_vm0, %v623_v5, 0.0 }
  0xa5   : > { %625 = vadd.xlane.f32.xlu0 %v624_v6 }
 0x12e   : > { %v626_v10 = vpop.xlane.xlu0 %625 }
 0x12f   : > { %v627_v11 = vmul.f32 0.03125, %v626_v10 }
 0x131   : > { %v628_v12 = vadd.f32 1e-05, %v627_v11 }
 0x133   : > { %2043 = vrsqrt.f32 %v628_v12 }
 0x140   : > { %v2044_v13 = vpop.eup %2043 }
 0x141   : > { %v630_v15 = vmul.f32 %v2044_v13, %v622_v4 }
 0x143   : > { %v637_v17 = vmul.f32 %v1791_v14, %v630_v15 }
 0x145   : > { %v644_v18 = vadd.f32 %v1792_v16, %v637_v17 }
 0x147   : > { %v649_v20 = vpack.c.bf16 %v644_v18, %v644_v18 }
 0x149   : > { %1889 = vmatmul.mubr.msk.bf16.vlgmr.msra.gmra.mxu1 %vm616_vm0, %v649_v20 }
 0x14a   : > { %1893 = vmatpush3.bf16.msra.mxu1 %v2025_v19  ;;  %1896 = vmatprep.mubr.msk.bf16.mxu1 %vm2072_vm1, %v2071_v8 }
 0x14b   : > { %1894 = vmatprep.subr.bf16.mxu1 %v2071_v8 }
 0x14e   : > { %1895 = vmatpush3.bf16.msra.mxu1 %v2026_v21 }
 0x14f   : > { %1900 = vmatprep.subr.bf16.mxu1 %v2071_v8 }
 0x151   : > { %1897 = vmatmul.mubr.msk.bf16.vlgmr.msra.gmra.mxu1 %vm616_vm0, %v649_v20 }
 0x152   : > { %1901 = vmatpush3.bf16.msra.mxu1 %v2027_v22  ;;  %1904 = vmatprep.mubr.msk.bf16.mxu1 %vm2072_vm1, %v2071_v8 }
 0x153   : > { %1902 = vmatprep.subr.bf16.mxu1 %v2071_v8 }
 0x156   : > { %1903 = vmatpush3.bf16.msra.mxu1 %v2028_v23 }
 0x157   : > { %1908 = vmatprep.subr.bf16.mxu1 %v2071_v8 }
 0x159   : > { %1905 = vmatmul.mubr.msk.bf16.vlgmr.msra.gmra.mxu1 %vm616_vm0, %v649_v20 }
 0x15a   : > { %1910 = vmatprep.mubr.msk.bf16.mxu1 %vm2072_vm1, %v2071_v8 }
 0x209   : > { %v706_v24 = vpop.f32.mrf.mxu1 }
 0x20a   : > { %v707_v33 = vadd.f32 %v1793_v29, %v706_v24 }
 0x20b   : > { %v1890_v25 = vpop.f32.mrf.mxu1 }
 0x20c   : > { %v2260_v39 = vpack.c.bf16 %v707_v33, %v707_v33 }
 0x20d   : > { %v709_v26 = vpop.f32.mrf.mxu1 }
 0x20e   : > { %v2030_v26 = vld [vmem:[%s2462_s11 + $0x4] ss:$0 sps:$4 sm:$0xff]  }
 0x20f   : > { %v1891_v27 = vpop.f32.mrf.mxu1 }
 0x210   : > { %v1092_v27 = vsel %vm925_vm3, %v2030_v26, 0 }
 0x211   : > { %v769_v30 = vpop.f32.mrf.mxu1 }
 0x212   : > { %v770_v31 = vadd.f32 %v1797_v28, %v769_v30 }
 0x213   : > { %v1898_v32 = vpop.f32.mrf.mxu1 }
 0x214   : > { %v2251_v34 = vpack.c.bf16 %v770_v31, %v770_v31  ;;  %v2029_v31 = vld [vmem:[%s2462_s11] ss:$0 sps:$4 sm:$0xff]  }
 0x215   : > { %v772_v35 = vpop.f32.mrf.mxu1 }
 0x216   : > { %975 = vrot.lane.b32.xlu1 %v2251_v34, %s2073_s1  ;;  %v866_v36 = vsel %vm861_vm2, %v2251_v34, 0 }
 0x217   : > { %v1899_v37 = vpop.f32.mrf.mxu1  ;;  %1909 = vmatpush3.bf16.xpose.msra.mxu1 %v866_v36  ;;  %v1138_v36 = vsel %vm925_vm3, %v2029_v31, 0 }
 0x218   : > { %1920 = vmatprep.subr.bf16.mxu1 %v2071_v8 }
 0x219   : > { %v832_v40 = vpop.f32.mrf.mxu1 }
 0x21a   : > { %v833_v41 = vadd.f32 %v1801_v38, %v832_v40  ;;  %972 = vrot.lane.b32.xlu1 %v2260_v39, %s2073_s1 }
 0x21b   : > { %v1906_v42 = vpop.f32.mrf.mxu1 }
 0x21c   : > { %v2265_v43 = vpack.c.bf16 %v833_v41, %v833_v41 }
 0x21d   : > { %v835_v44 = vpop.f32.mrf.mxu1 }
 0x21e   : > { %1911 = vmatmul.mubr.msk.bf16.vlgmr.msra.gmra.mxu1 %vm861_vm2, %v2260_v39  ;;  %v927_v45 = vsel %vm925_vm3, %v2265_v43, 0 }
 0x21f   : > { %v1907_v46 = vpop.f32.mrf.mxu1  ;;  %1915 = vmatpush3.bf16.msra.mxu0 %v927_v45  ;;  %1922 = vmatprep.mubr.msk.bf16.mxu1 %vm2072_vm1, %v2071_v8 }
 0x220   : > { %1926 = vmatprep.subr.bf16.mxu0 %v2071_v8 }
 0x288   : > { %v976_v47 = vpop.permute.xlu1 %975 }
 0x289   : > { %v981_v48 = vsel %vm861_vm2, %v976_v47, 0 }
 0x28a   : > { %1921 = vmatpush3.bf16.xpose.msra.mxu1 %v981_v48 }
 0x28b   : > { %1932 = vmatprep.subr.bf16.mxu1 %v2071_v8 }
 0x28c   : > { %v973_v49 = vpop.permute.xlu1 %972 }
 0x291   : > { %1923 = vmatmul.mubr.msk.bf16.vlgmr.msra.gmra.mxu1 %vm861_vm2, %v973_v49 }
 0x292   : > { %1934 = vmatprep.mubr.msk.bf16.mxu1 %vm2072_vm1, %v2071_v8  ;;  %1933 = vmatpush3.bf16.msra.mxu1 %v1092_v27 }
 0x293   : > { %1944 = vmatprep.subr.bf16.mxu1 %v2071_v8 }
 0x2de   : > { %v902_v58 = vpop.f32.mrf.mxu1 }
 0x2df   : > { %v908_v61 = vmul.f32 0.35355338, %v902_v58 }
 0x2e0   : > { %v1912_v62 = vpop.f32.mrf.mxu1 }
 0x2e1   : > { %v909_v63 = vadd.f32 %v908_v61, %v2286_v60 }
 0x2e2   : > { %v905_v1 = vpop.f32.mrf.mxu1 }
 0x2e3   : > { %v910_v2 = vsel %vm861_vm2, %v909_v63, -inf }
 0x2e4   : > { %911 = vmax.xlane.f32.xlu0 %v910_v2  ;;  %v1913_v3 = vpop.f32.mrf.mxu1 }
 0x351   : > { %v1017_v4 = vpop.f32.mrf.mxu1 }
 0x352   : > { %v1023_v5 = vmul.f32 0.35355338, %v1017_v4 }
 0x353   : > { %v1924_v6 = vpop.f32.mrf.mxu1 }
 0x354   : > { %v1024_v7 = vadd.f32 %v1023_v5, %v2286_v60 }
 0x355   : > { %v1020_v9 = vpop.f32.mrf.mxu1 }
 0x356   : > { %v1025_v10 = vsel %vm861_vm2, %v1024_v7, -inf }
 0x357   : > { %1026 = vmax.xlane.f32.xlu1 %v1025_v10  ;;  %v1925_v11 = vpop.f32.mrf.mxu1 }
 0x368   : > { %1180 = vrot.lane.b32.xlu1 %v2260_v39, %s2076_s29 }
 0x36d   : > { %v912_v12 = vpop.xlane.xlu0 %911 }
 0x36e   : > { %v913_v13 = vsub.f32 %v909_v63, %v912_v12 }
 0x370   : > { %v914_v14 = vmul.f32 1.442695, %v913_v13 }
 0x372   : > { %2045 = vpow2.f32 %v914_v14 }
 0x37f   : > { %v2046_v15 = vpop.eup %2045 }
 0x380   : > { %v916_v16 = vsel %vm861_vm2, %v2046_v15, 0.0 }
 0x381   : > { %917 = vadd.xlane.f32.xlu0 %v916_v16 }
 0x3e0   : > { %v1027_v17 = vpop.xlane.xlu1 %1026 }
 0x3e1   : > { %v1028_v18 = vsub.f32 %v1024_v7, %v1027_v17 }
 0x3e3   : > { %v1029_v19 = vmul.f32 1.442695, %v1028_v18 }
 0x3e4   : > { %v1181_v51 = vpop.permute.xlu1 %1180 }
 0x3e5   : > { %2047 = vpow2.f32 %v1029_v19 }
 0x3f2   : > { %v2048_v20 = vpop.eup %2047 }
 0x3f3   : > { %v1031_v21 = vsel %vm861_vm2, %v2048_v20, 0.0 }
 0x3f4   : > { %1032 = vadd.xlane.f32.xlu0 %v1031_v21 }
 0x40a   : > { %v918_v22 = vpop.xlane.xlu0 %917  ;;  %1038 = vrot.lane.b32.xlu0 %v2265_v43, %s2073_s1 }
 0x40b   : > { %2049 = vrcp.f32 %v918_v22 }
 0x40e   : > { %1182 = vrot.lane.b32.xlu0 %v2251_v34, %s2076_s29 }
 0x418   : > { %v2050_v23 = vpop.eup %2049 }
 0x419   : > { %v920_v24 = vmul.f32 %v2050_v23, %v2046_v15 }
 0x41b   : > { %v921_v25 = vpack.c.bf16 %v920_v24, %v920_v24 }
 0x41d   : > { %1917 = vmatmul.mubr.msk.bf16.vlgmr.msra.gmra.mxu0 %vm861_vm2, %v921_v25 }
 0x41e   : > { %1928 = vmatprep.mubr.msk.bf16.mxu0 %vm2072_vm1, %v2071_v8 }
 0x47d   : > { %v1033_v28 = vpop.xlane.xlu0 %1032 }
 0x47e   : > { %2051 = vrcp.f32 %v1033_v28 }
 0x481   : > { %v1039_v29 = vpop.permute.xlu0 %1038 }
 0x482   : > { %v1044_v30 = vsel %vm925_vm3, %v1039_v29, 0 }
 0x483   : > { %1927 = vmatpush3.bf16.msra.mxu0 %v1044_v30 }
 0x484   : > { %1938 = vmatprep.subr.bf16.mxu0 %v2071_v8 }
 0x485   : > { %v1183_v44 = vpop.permute.xlu0 %1182 }
 0x486   : > { %v1188_v48 = vsel %vm861_vm2, %v1183_v44, 0 }
 0x48b   : > { %v2052_v32 = vpop.eup %2051 }
 0x48c   : > { %v1035_v33 = vmul.f32 %v2052_v32, %v2048_v20 }
 0x48e   : > { %v1036_v35 = vpack.c.bf16 %v1035_v33, %v1035_v33 }
 0x490   : > { %1929 = vmatmul.mubr.msk.bf16.vlgmr.msra.gmra.mxu0 %vm861_vm2, %v1036_v35 }
 0x491   : > { %1939 = vmatpush3.bf16.msra.mxu0 %v1138_v36  ;;  %1940 = vmatprep.mubr.msk.bf16.mxu0 %vm2072_vm1, %v2071_v8 }
 0x492   : > { %1950 = vmatprep.subr.bf16.mxu0 %v2071_v8 }
 0x4dd   : > { %v963_v37 = vpop.f32.mrf.mxu0 }
 0x4de   : > { %v969_v38 = vpack.c.bf16 %v963_v37, %v963_v37 }
 0x4df   : > { %v1918_v40 = vpop.f32.mrf.mxu0 }
 0x4e0   : > { %1941 = vmatmul.mubr.msk.bf16.vlgmr.msra.gmra.mxu0 %vm861_vm2, %v969_v38 }
 0x4e1   : > { %v966_v41 = vpop.f32.mrf.mxu0  ;;  %1952 = vmatprep.mubr.msk.bf16.mxu0 %vm2072_vm1, %v2071_v8 }
 0x4e3   : > { %v1919_v42 = vpop.f32.mrf.mxu0 }
 0x550   : > { %v1080_v45 = vpop.f32.mrf.mxu0 }
 0x551   : > { %v1086_v46 = vpack.c.bf16 %v1080_v45, %v1080_v45  ;;  %v2032_v45 = vld [vmem:[%s2462_s11 + $0xc] ss:$0 sps:$4 sm:$0xff]  }
 0x552   : > { %v1930_v47 = vpop.f32.mrf.mxu0 }
 0x553   : > { %1935 = vmatmul.mubr.msk.bf16.vlgmr.msra.gmra.mxu1 %vm861_vm2, %v1086_v46  ;;  %v1459_v47 = vsel %vm925_vm3, %v2032_v45, 0 }
 0x554   : > { %1945 = vmatpush3.bf16.xpose.msra.mxu1 %v1188_v48  ;;  %v1083_v49 = vpop.f32.mrf.mxu0  ;;  %1946 = vmatprep.mubr.msk.bf16.mxu1 %vm2072_vm1, %v2071_v8 }
 0x555   : > { %1956 = vmatprep.subr.bf16.mxu1 %v2071_v8 }
 0x556   : > { %v1931_v50 = vpop.f32.mrf.mxu0 }
 0x55b   : > { %1947 = vmatmul.mubr.msk.bf16.vlgmr.msra.gmra.mxu1 %vm861_vm2, %v1181_v51 }
 0x55c   : > { %1958 = vmatprep.mubr.msk.bf16.mxu1 %vm2072_vm1, %v2071_v8 }
 0x5a0   : > { %v2329_v52 = vpop.f32.mrf.mxu0 }
 0x5a2   : > { %v1942_v53 = vpop.f32.mrf.mxu0 }
 0x5a4   : > { %v1177_v54 = vpop.f32.mrf.mxu0 }
 0x5a6   : > { %v1943_v55 = vpop.f32.mrf.mxu0 }
 0x613   : > { %v2331_v56 = vpop.f32.mrf.mxu1 }
 0x614   : > { %v1175_v40 = vadd.f32 %v2329_v52, %v2331_v56 }
 0x615   : > { %v1936_v57 = vpop.f32.mrf.mxu1 }
 0x617   : > { %v1131_v58 = vpop.f32.mrf.mxu1 }
 0x618   : > { %v1821_v58 = vld [vmem:[%s2463_s12] ss:$0 sm:$0xff] }
 0x619   : > { %v1937_v59 = vpop.f32.mrf.mxu1 }
 0x61b   : > { %v1224_v61 = vpop.f32.mrf.mxu1 }
 0x61c   : > { %v1230_v62 = vmul.f32 0.35355338, %v1224_v61 }
 0x61d   : > { %v1948_v63 = vpop.f32.mrf.mxu1 }
 0x61e   : > { %v1231_v1 = vadd.f32 %v1230_v62, %v2286_v60 }
 0x61f   : > { %v1227_v2 = vpop.f32.mrf.mxu1 }
 0x620   : > { %v1232_v3 = vsel %vm861_vm2, %v1231_v1, -inf }
 0x621   : > { %1233 = vmax.xlane.f32.xlu0 %v1232_v3  ;;  %v1949_v4 = vpop.f32.mrf.mxu1 }
 0x637   : > { %1244 = vrot.lane.b32.xlu0 %v2265_v43, %s2076_s29 }
 0x63b   : > { %1341 = vrot.lane.b32.xlu0 %v2260_v39, %s2077_s23 }
 0x6aa   : > { %v1234_v5 = vpop.xlane.xlu0 %1233 }
 0x6ab   : > { %v1235_v6 = vsub.f32 %v1231_v1, %v1234_v5 }
 0x6ad   : > { %v1236_v7 = vmul.f32 1.442695, %v1235_v6 }
 0x6ae   : > { %v1245_v9 = vpop.permute.xlu0 %1244 }
 0x6af   : > { %2053 = vpow2.f32 %v1236_v7  ;;  %v1250_v10 = vsel %vm925_vm3, %v1245_v9, 0 }
 0x6b0   : > { %1951 = vmatpush3.bf16.msra.mxu0 %v1250_v10  ;;  %v2033_v10 = vld [vmem:[%s2466_s15 + $0x8] sm:$0xff]  }
 0x6b1   : > { %1962 = vmatprep.subr.bf16.mxu0 %v2071_v8 }
 0x6b2   : > { %v1342_v18 = vpop.permute.xlu0 %1341 }
 0x6bc   : > { %v2054_v11 = vpop.eup %2053 }
 0x6bd   : > { %v1238_v12 = vsel %vm861_vm2, %v2054_v11, 0.0 }
 0x6be   : > { %1239 = vadd.xlane.f32.xlu1 %v1238_v12  ;;  %v2036_v12 = vld [vmem:[%s2468_s17 + $0x30] sm:$0xff]  }
 0x6cf   : > { %1343 = vrot.lane.b32.xlu1 %v2251_v34, %s2077_s23  ;;  %v2031_v34 = vld [vmem:[%s2462_s11 + $0x8] ss:$0 sps:$4 sm:$0xff]  }
 0x6d0   : > { %v1298_v19 = vsel %vm925_vm3, %v2031_v34, 0 }
 0x6d1   : > { %1957 = vmatpush3.bf16.msra.mxu1 %v1298_v19  ;;  %v1822_v19 = vld [vmem:[%s2464_s13] ss:$0 sm:$0xff] }
 0x6d2   : > { %1968 = vmatprep.subr.bf16.mxu1 %v2071_v8 }
 0x747   : > { %v1240_v13 = vpop.xlane.xlu1 %1239 }
 0x748   : > { %2055 = vrcp.f32 %v1240_v13  ;;  %v2037_v13 = vld [vmem:[%s2468_s17 + $0x28] sm:$0xff]  }
 0x74b   : > { %v1344_v15 = vpop.permute.xlu1 %1343 }
 0x74c   : > { %v1349_v17 = vsel %vm861_vm2, %v1344_v15, 0  ;;  %v2040_v15 = vld [vmem:[%s2468_s17 + $0x10] sm:$0xff]  }
 0x755   : > { %v2056_v39 = vpop.eup %2055 }
 0x756   : > { %v1242_v14 = vmul.f32 %v2056_v39, %v2054_v11  ;;  %v2035_v11 = vld [vmem:[%s2468_s17 + $0x38] sm:$0xff]   ;;  %v2038_v39 = vld [vmem:[%s2468_s17 + $0x20] sm:$0xff]  }
 0x758   : > { %v1243_v16 = vpack.c.bf16 %v1242_v14, %v1242_v14  ;;  %v2039_v14 = vld [vmem:[%s2468_s17 + $0x18] sm:$0xff]  }
 0x75a   : > { %1953 = vmatmul.mubr.msk.bf16.vlgmr.msra.gmra.mxu0 %vm861_vm2, %v1243_v16 }
 0x75b   : > { %1963 = vmatpush3.bf16.xpose.msra.mxu0 %v1349_v17  ;;  %1964 = vmatprep.mubr.msk.bf16.mxu0 %vm2072_vm1, %v2071_v8 }
 0x75c   : > { %1974 = vmatprep.subr.bf16.mxu0 %v2071_v8 }
 0x762   : > { %1965 = vmatmul.mubr.msk.bf16.vlgmr.msra.gmra.mxu0 %vm861_vm2, %v1342_v18 }
 0x763   : > { %1976 = vmatprep.mubr.msk.bf16.mxu0 %vm2072_vm1, %v2071_v8  ;;  %1975 = vmatpush3.bf16.msra.mxu0 %v1459_v47 }
 0x764   : > { %1988 = vmatprep.subr.bf16.mxu0 %v2071_v8 }
 0x81a   : > { %v1286_v20 = vpop.f32.mrf.mxu0 }
 0x81b   : > { %v1292_v21 = vpack.c.bf16 %v1286_v20, %v1286_v20 }
 0x81c   : > { %v1954_v22 = vpop.f32.mrf.mxu0 }
 0x81d   : > { %1959 = vmatmul.mubr.msk.bf16.vlgmr.msra.gmra.mxu1 %vm861_vm2, %v1292_v21  ;;  %v1823_v21 = vld [vmem:[%s2465_s14] ss:$0 sm:$0xff] }
 0x81e   : > { %v1289_v23 = vpop.f32.mrf.mxu0  ;;  %1970 = vmatprep.mubr.msk.bf16.mxu1 %vm2072_vm1, %v2071_v8 }
 0x820   : > { %v1955_v24 = vpop.f32.mrf.mxu0 }
 0x822   : > { %v1385_v25 = vpop.f32.mrf.mxu0 }
 0x823   : > { %v1391_v26 = vmul.f32 0.35355338, %v1385_v25  ;;  %v2041_v25 = vld [vmem:[%s2468_s17 + $0x8] sm:$0xff]  }
 0x824   : > { %v1966_v27 = vpop.f32.mrf.mxu0 }
 0x825   : > { %v1392_v28 = vadd.f32 %v1391_v26, %v2286_v60  ;;  %v2042_v26 = vld [vmem:[%s2468_s17] sm:$0xff]  }
 0x826   : > { %v1388_v29 = vpop.f32.mrf.mxu0  ;;  %v1824_v27 = vld [vmem:[%s2467_s16] ss:$0 sm:$0xff] }
 0x827   : > { %v1393_v30 = vsel %vm861_vm2, %v1392_v28, -inf }
 0x828   : > { %1394 = vmax.xlane.f32.xlu0 %v1393_v30  ;;  %v1967_v31 = vpop.f32.mrf.mxu0 }
 0x83e   : > { %1405 = vrot.lane.b32.xlu0 %v2265_v43, %s2077_s23 }
 0x8b1   : > { %v1395_v32 = vpop.xlane.xlu0 %1394 }
 0x8b2   : > { %v1396_v33 = vsub.f32 %v1392_v28, %v1395_v32 }
 0x8b4   : > { %v1397_v35 = vmul.f32 1.442695, %v1396_v33 }
 0x8b5   : > { %v1406_v36 = vpop.permute.xlu0 %1405 }
 0x8b6   : > { %2057 = vpow2.f32 %v1397_v35  ;;  %v1411_v37 = vsel %vm925_vm3, %v1406_v36, 0 }
 0x8b7   : > { %1969 = vmatpush3.bf16.msra.mxu1 %v1411_v37 }
 0x8b8   : > { %1980 = vmatprep.subr.bf16.mxu1 %v2071_v8 }
 0x8c3   : > { %v2058_v38 = vpop.eup %2057 }
 0x8c4   : > { %v1399_v60 = vsel %vm861_vm2, %v2058_v38, 0.0 }
 0x8c5   : > { %1400 = vadd.xlane.f32.xlu1 %v1399_v60 }
 0x8dd   : > { %v1334_v41 = vpop.f32.mrf.mxu1 }
 0x8de   : > { %v1340_v42 = vadd.f32 %v1334_v41, %v1175_v40 }
 0x8df   : > { %v1960_v43 = vpop.f32.mrf.mxu1 }
 0x8e1   : > { %v1337_v44 = vpop.f32.mrf.mxu1 }
 0x8e3   : > { %v1961_v46 = vpop.f32.mrf.mxu1 }
 0x94e   : > { %v1401_v48 = vpop.xlane.xlu1 %1400 }
 0x94f   : > { %2059 = vrcp.f32 %v1401_v48 }
 0x95c   : > { %v2060_v49 = vpop.eup %2059 }
 0x95d   : > { %v1403_v50 = vmul.f32 %v2060_v49, %v2058_v38 }
 0x95f   : > { %v1404_v51 = vpack.c.bf16 %v1403_v50, %v1403_v50 }
 0x961   : > { %1971 = vmatmul.mubr.msk.bf16.vlgmr.msra.gmra.mxu1 %vm861_vm2, %v1404_v51 }
 0x962   : > { %1984 = vmatprep.mubr.msk.bf16.mxu1 %vm2072_vm1, %v2071_v8  ;;  %1981 = vmatpush3.bf16.msra.mxu1 %v2033_v10 }
 0x963   : > { %1982 = vmatprep.subr.bf16.mxu1 %v2071_v8 }
 0xa21   : > { %v1447_v52 = vpop.f32.mrf.mxu1 }
 0xa22   : > { %v1453_v53 = vpack.c.bf16 %v1447_v52, %v1447_v52 }
 0xa23   : > { %v1972_v54 = vpop.f32.mrf.mxu1 }
 0xa24   : > { %1977 = vmatmul.mubr.msk.bf16.vlgmr.msra.gmra.mxu0 %vm861_vm2, %v1453_v53 }
 0xa25   : > { %v1450_v55 = vpop.f32.mrf.mxu1  ;;  %2004 = vmatprep.mubr.msk.bf16.mxu0 %vm2072_vm1, %v2071_v8  ;;  %1989 = vmatpush3.bf16.msra.mxu0 %v2035_v11 }
 0xa26   : > { %1990 = vmatprep.subr.bf16.mxu0 %v2071_v8 }
 0xa27   : > { %v1973_v56 = vpop.f32.mrf.mxu1 }
 0xa29   : > { %1991 = vmatpush3.bf16.msra.mxu0 %v2036_v12 }
 0xa2a   : > { %1992 = vmatprep.subr.bf16.mxu0 %v2071_v8 }
 0xa2d   : > { %1993 = vmatpush3.bf16.msra.mxu0 %v2037_v13 }
 0xa2e   : > { %1994 = vmatprep.subr.bf16.mxu0 %v2071_v8 }
 0xa31   : > { %1995 = vmatpush3.bf16.msra.mxu0 %v2038_v39 }
 0xa32   : > { %1996 = vmatprep.subr.bf16.mxu0 %v2071_v8 }
 0xa35   : > { %1997 = vmatpush3.bf16.msra.mxu0 %v2039_v14 }
 0xa36   : > { %1998 = vmatprep.subr.bf16.mxu0 %v2071_v8 }
 0xa39   : > { %1999 = vmatpush3.bf16.msra.mxu0 %v2040_v15 }
 0xa3a   : > { %2000 = vmatprep.subr.bf16.mxu0 %v2071_v8 }
 0xa3d   : > { %2001 = vmatpush3.bf16.msra.mxu0 %v2041_v25 }
 0xa3e   : > { %2002 = vmatprep.subr.bf16.mxu0 %v2071_v8  ;;  %v1828_v8 = vld [vmem:[%s2469_s18] ss:$0 sm:$0xff] }
 0xa41   : > { %2003 = vmatpush3.bf16.msra.mxu0 %v2042_v26 }
 0xae4   : > { %v1495_v57 = vpop.f32.mrf.mxu0 }
 0xae5   : > { %v1501_v59 = vadd.f32 %v1495_v57, %v1340_v42 }
 0xae6   : > { %v1978_v61 = vpop.f32.mrf.mxu0 }
 0xae7   : > { %v1509_v62 = vadd.f32 %v1821_v58, %v1501_v59 }
 0xae8   : > { %v1498_v63 = vpop.f32.mrf.mxu0 }
 0xae9   : > { %v2384_v1 = vadd.f32 %v1509_v62, %v2194_v0  ;;  %v2034_v0 = vld [vmem:[%s2466_s15] sm:$0xff]  }
 0xaea   : > { %v1979_v2 = vpop.f32.mrf.mxu0  ;;  %1983 = vmatpush3.bf16.msra.mxu1 %v2034_v0 }
 0xaeb   : > { %v1513_v3 = vsel %vm616_vm0, %v2384_v1, 0.0 }
 0xaec   : > { %1514 = vadd.xlane.f32.xlu1 %v1513_v3 }
 0xb75   : > { %v1515_v4 = vpop.xlane.xlu1 %1514 }
 0xb76   : > { %v1516_v5 = vmul.f32 0.03125, %v1515_v4 }
 0xb78   : > { %v1517_v6 = vsub.f32 %v2384_v1, %v1516_v5 }
 0xb7a   : > { %v1518_v7 = vmul.f32 %v1517_v6, %v1517_v6 }
 0xb7c   : > { %v1519_v9 = vsel %vm616_vm0, %v1518_v7, 0.0 }
 0xb7d   : > { %1520 = vadd.xlane.f32.xlu1 %v1519_v9 }
 0xc06   : > { %v1521_v16 = vpop.xlane.xlu1 %1520 }
 0xc07   : > { %v1522_v17 = vmul.f32 0.03125, %v1521_v16 }
 0xc09   : > { %v1523_v18 = vadd.f32 1e-05, %v1522_v17 }
 0xc0b   : > { %2061 = vrsqrt.f32 %v1523_v18 }
 0xc18   : > { %v2062_v34 = vpop.eup %2061 }
 0xc19   : > { %v1525_v20 = vmul.f32 %v2062_v34, %v1517_v6 }
 0xc1b   : > { %v1532_v22 = vmul.f32 %v1822_v19, %v1525_v20 }
 0xc1d   : > { %v1539_v23 = vadd.f32 %v1823_v21, %v1532_v22 }
 0xc1f   : > { %v1544_v24 = vpack.c.bf16 %v1539_v23, %v1539_v23 }
 0xc21   : > { %1985 = vmatmul.mubr.msk.bf16.vlgmr.msra.gmra.mxu1 %vm616_vm0, %v1544_v24 }
 0xce1   : > { %v1601_v28 = vpop.f32.mrf.mxu1 }
 0xce2   : > { %v1602_v29 = vadd.f32 %v1824_v27, %v1601_v28 }
 0xce3   : > { %v1986_v30 = vpop.f32.mrf.mxu1 }
 0xce4   : > { %v1607_v31 = vmax.f32 %v1602_v29, 0.0 }
 0xce5   : > { %v1604_v32 = vpop.f32.mrf.mxu1 }
 0xce6   : > { %v1624_v33 = vpack.c.bf16 %v1607_v31, %v1607_v31 }
 0xce7   : > { %v1987_v35 = vpop.f32.mrf.mxu1 }
 0xce8   : > { %2005 = vmatmul.mubr.bf16.vlgmr.msra.gmra.mxu0 %v1624_v33 }
 0xda8   : > { %v1714_v36 = vpop.f32.mrf.mxu0 }
 0xda9   : > { %v1715_v37 = vadd.f32 %v1828_v8, %v1714_v36 }
 0xdaa   : > { %v2006_v38 = vpop.f32.mrf.mxu0 }
 0xdab   : > { %v1720_v60 = vadd.f32 %v1715_v37, %v2384_v1 }
 0xdac   : > { %v1717_v40 = vpop.f32.mrf.mxu0 }
 0xdad   : > { %1721 = vst.msk [vmem:[%s611_s24] sm:$0xff] %vm616_vm0, %v1720_v60 }
 0xdae   : > { %v2007_v41 = vpop.f32.mrf.mxu0 }
 0xdaf PF: > { %s29_s0 = sadd.s32 1, %s2069_s0  }
 0xdb0   : > { %p26_p4 = scmp.ge.s32.totalorder %s29_s0, 18  }
 0xdb2   :  { %28 = sbr.rel (!%p26_p4) target bundleno = 5 (0x5), region = 129 }

// kernel: encoder_forward.6
= control target key start
LH: loop header
LB: loop body
LE: loop exit
PB: predicated region body
PF: predicated region fallthrough
CT: control target
= control target key end

     0   :  { %s2619_s0 = inlined_call_operand.vmem [shape: f32[8,16,32], index: 0, kind: input, shape index: {}]   ;;  %s2620_s1 = inlined_call_operand.vmem [shape: f32[8,1,16], index: 1, kind: input, shape index: {}]   ;;  %s2621_s2 = inlined_call_operand.vmem [shape: f32[16,16], index: 2, kind: input, shape index: {}]   ;;  %s2622_s3 = inlined_call_operand.vmem [shape: f32[1,32], index: 3, kind: input, shape index: {}]   ;;  %s2623_s4 = inlined_call_operand.vmem [shape: f32[1,32], index: 4, kind: input, shape index: {}]   ;;  %s2624_s5 = inlined_call_operand.vmem [shape: bf16[32,32], index: 5, kind: input, shape index: {}]   ;;  %s2625_s6 = inlined_call_operand.vmem [shape: f32[1,32], index: 6, kind: input, shape index: {}]   ;;  %s2626_s7 = inlined_call_operand.vmem [shape: bf16[32,32], index: 7, kind: input, shape index: {}]   ;;  %s2627_s8 = inlined_call_operand.vmem [shape: f32[1,32], index: 8, kind: input, shape index: {}]   ;;  %s2628_s9 = inlined_call_operand.vmem [shape: bf16[32,32], index: 9, kind: input, shape index: {}]   ;;  %s2629_s10 = inlined_call_operand.vmem [shape: f32[1,32], index: 10, kind: input, shape index: {}]   ;;  %s2630_s11 = inlined_call_operand.vmem [shape: bf16[32,32], index: 11, kind: input, shape index: {}]   ;;  %s2631_s12 = inlined_call_operand.vmem [shape: f32[1,32], index: 12, kind: input, shape index: {}]   ;;  %s2632_s13 = inlined_call_operand.vmem [shape: f32[1,32], index: 13, kind: input, shape index: {}]   ;;  %s2633_s14 = inlined_call_operand.vmem [shape: f32[1,32], index: 14, kind: input, shape index: {}]   ;;  %s2634_s15 = inlined_call_operand.vmem [shape: bf16[32,128], index: 15, kind: input, shape index: {}]   ;;  %s2635_s16 = inlined_call_operand.vmem [shape: f32[1,128], index: 16, kind: input, shape index: {}]   ;;  %s2636_s17 = inlined_call_operand.vmem [shape: bf16[128,32], index: 17, kind: input, shape index: {}]   ;;  %s2637_s18 = inlined_call_operand.vmem [shape: f32[1,32], index: 18, kind: input, shape index: {}]   ;;  %s2638_s19 = inlined_call_operand.vmem [shape: f32[8,16,32], index: 19, kind: output, shape index: {}]  }
   0x1   :  { %2640 = sst [smem:[#allocation2_spill]] %s2619_s0  ;;  %s2312_s0 = smov 0  }
   0x2   :  { %2641 = sst [smem:[#allocation3_spill]] %s2620_s1 }
   0x3   :  { %2642 = sst [smem:[#allocation4_spill]] %s2621_s2 }
   0x4   :  { %2643 = sst [smem:[#allocation5_spill]] %s2622_s3 }
   0x5 LB: > { %s1894_s30 = sadd.s32 4294967295, %s2203_s0   ;;  %p1898_p0 = scmp.ge.s32.totalorder %s2203_s0, 1  ;;  %s2203_s0 = sphi %s2312_s0, %s29_s0  }
   0x6   : > { %p545_p1 = scmp.lt.s32.totalorder %s2203_s0, 9 }
   0x8   : > { %p546_p2 = pnand %p1898_p0, %p545_p1 }
   0x9   : > { %p604_p3 = scmp.lt.s32.totalorder (!%p546_p2), %s1894_s30, 7  ;;  %s2644_s22 = sld [smem:[#allocation2_spill]] (!%p546_p2) }
   0xa   : > { %549 = sbr.rel (%p546_p2) target bundleno = 3542 (0xdd6), region = 96  ;;  %s2645_s28 = sld [smem:[#allocation5_spill]] (!%p546_p2) }
   0xb   : > { %s2207_s29 = smov (!%p546_p2), 120   ;;  %s2646_s25 = sld [smem:[#allocation3_spill]] (!%p546_p2) }
   0xf   : > { %s2649_s30 = smov (!%p604_p3, %s1894_s30), 7  ;;  %vm622_vm0 = vcmask 261120   ;;  %v2137_v14 = vld [vmem:[%s2624_s5 + $0x8] sm:$0xff]   ;;  %v2205_v15 = vmov 0.0   ;;  %vm2206_vm1 = vmmov 0   ;;  %v2138_v16 = vld [vmem:[%s2624_s5] sm:$0xff]  }
  0x10   : > { %s1951_s20 = sshll.u32 %s2649_s30, 4  ;;  %1998 = vmatprep.subr.bf16.mxu1 %v2205_v15  ;;  %2002 = vmatprep.mubr.msk.bf16.mxu1 %vm2206_vm1, %v2205_v15  ;;  %v1903_v25 = vld [vmem:[%s2645_s28] ss:$0 sm:$0xff]  ;;  %v2139_v33 = vld [vmem:[%s2626_s7 + $0x8] sm:$0xff]   ;;  %vm889_vm2 = vcmask 64512   ;;  %s2647_s28 = sld [smem:[#allocation4_spill]] }
  0x11   : > { %s608_s2 = scalar_lea.vmem %s2644_s22, %s1951_s20  ;;  %1999 = vmatpush3.bf16.msra.mxu1 %v2137_v14  ;;  %2028 = vmatprep.subr.bf16.mxu0 %v2205_v15  ;;  %v1904_v29 = vld [vmem:[%s2623_s4] ss:$0 sm:$0xff]  ;;  %v2141_v36 = vld [vmem:[%s2628_s9 + $0x8] sm:$0xff]   ;;  %s611_s3 = scalar_lea.vmem %s2646_s25, %s2649_s30  ;;  %v2209_v14 = vmov -1e+09   ;;  %vm941_vm9 = vcmask 130048  }
  0x12   : > { %v2328_v0 = vld [vmem:[%s608_s2] sm:$0xff]  ;;  %v2330_v1 = vld [vmem:[%s608_s2 + $0x8] sm:$0xff]  ;;  %2000 = vmatprep.subr.bf16.mxu1 %v2205_v15  ;;  %2030 = vmatprep.mubr.msk.bf16.mxu0 %vm2206_vm1, %v2205_v15  ;;  %s2210_s22 = smov 112   ;;  %vm1144_vm10 = vcmask 1043456   ;;  %s2211_s25 = smov 104  }
  0x13   : > { %v623_v2 = vsel %vm622_vm0, %v2328_v0, 0.0  ;;  %v626_v3 = vsel %vm622_vm0, %v2330_v1, 0.0  ;;  %v2140_v35 = vld [vmem:[%s2626_s7] sm:$0xff]   ;;  %s616_s21 = scalar_lea.vmem %s2638_s19, %s1951_s20 }
  0x14   : > { %624 = vadd.xlane.f32.xlu0 %v623_v2  ;;  %v2142_v37 = vld [vmem:[%s2628_s9] sm:$0xff]  }
  0x15   : > { %2001 = vmatpush3.bf16.msra.mxu1 %v2138_v16  ;;  %v1905_v39 = vld [vmem:[%s2625_s6] ss:$0 sm:$0xff] }
  0x16   : > { %2006 = vmatprep.subr.bf16.mxu1 %v2205_v15  ;;  %v1909_v47 = vld [vmem:[%s2627_s8] ss:$0 sm:$0xff] }
  0x17   : > { %v1913_v56 = vld [vmem:[%s2629_s10] ss:$0 sm:$0xff] }
  0x18   : > { %627 = vadd.xlane.f32.xlu0 %v626_v3 }
  0x9d   : > { %v625_v4 = vpop.xlane.xlu0 %624 }
  0x9e   : > { %v630_v5 = vmul.f32 0.03125, %v625_v4  ;;  %v869_v4 = vlaneseq }
  0xa0   : > { %v632_v6 = vsub.f32 %v2328_v0, %v630_v5  ;;  %v862_v5 = vld [vmem:[%s611_s3] sm:$0x1] }
  0xa1   : > { %v628_v7 = vpop.xlane.xlu0 %627  ;;  %vm863_vm3 = vcmp.gt.f32.partialorder %v862_v5, 0.5 }
  0xa2   : > { %v631_v8 = vmul.f32 0.03125, %v628_v7  ;;  %v634_v9 = vmul.f32 %v632_v6, %v632_v6 }
  0xa4   : > { %v633_v10 = vsub.f32 %v2330_v1, %v631_v8  ;;  %v636_v11 = vsel %vm622_vm0, %v634_v9, 0.0  ;;  %v2208_v8 = vmov 0  }
  0xa5   : > { %637 = vadd.xlane.f32.xlu1 %v636_v11  ;;  %v868_v9 = vsel %vm863_vm3, 1, %v2208_v8  ;;  %v864_v11 = vld [vmem:[%s2647_s28] sm:$0xff] }
  0xa6   : > { %v635_v12 = vmul.f32 %v633_v10, %v633_v10  ;;  %vm866_vm4 = vcmp.gt.f32.partialorder %v864_v11, 0.5 }
  0xa8   : > { %v639_v13 = vsel %vm622_vm0, %v635_v12, 0.0  ;;  %v865_v12 = vld [vmem:[%s2647_s28 + $0x8] sm:$0xff] }
  0xa9   : > { %640 = vadd.xlane.f32.xlu1 %v639_v13  ;;  %vm867_vm7 = vcmp.gt.f32.partialorder %v865_v12, 0.5 }
 0x12e   : > { %v638_v17 = vpop.xlane.xlu1 %637 }
 0x12f   : > { %v642_v18 = vmul.f32 0.03125, %v638_v17 }
 0x131   : > { %v644_v19 = vadd.f32 1e-05, %v642_v18 }
 0x132   : > { %v641_v20 = vpop.xlane.xlu1 %640 }
 0x133   : > { %2157 = vrsqrt.f32 %v644_v19  ;;  %v643_v21 = vmul.f32 0.03125, %v641_v20 }
 0x135   : > { %v645_v22 = vadd.f32 1e-05, %v643_v21 }
 0x137   : > { %2159 = vrsqrt.f32 %v645_v22 }
 0x140   : > { %v2158_v23 = vpop.eup %2157 }
 0x141   : > { %v648_v24 = vmul.f32 %v2158_v23, %v632_v6  ;;  %v870_v6 = vshrl.u32 %v869_v4, 7 }
 0x143   : > { %v656_v28 = vmul.f32 %v1903_v25, %v648_v24  ;;  %v871_v7 = vsub.s32 0, %v870_v6 }
 0x144   : > { %v2160_v26 = vpop.eup %2159 }
 0x145   : > { %v649_v27 = vmul.f32 %v2160_v26, %v633_v10  ;;  %v664_v31 = vadd.f32 %v1904_v29, %v656_v28  ;;  %v872_v10 = vrot.slane %v868_v9, %v871_v7  ;;  %v2143_v9 = vld [vmem:[%s2630_s11] ss:$0 sps:$4 sm:$0xff]  }
 0x147   : > { %v657_v30 = vmul.f32 %v1903_v25, %v649_v27  ;;  %vm873_vm5 = vcmp.eq.s32.totalorder %v872_v10, 1 }
 0x148   : > { %vm874_vm6 = vmand %vm873_vm5, %vm866_vm4 }
 0x149   : > { %v665_v32 = vadd.f32 %v1904_v29, %v657_v30  ;;  %v2428_v16 = vsel %vm874_vm6, 0.0, %v2209_v14  ;;  %vm875_vm8 = vmand %vm873_vm5, %vm867_vm7 }
 0x14a   : > { %v2431_v21 = vsel %vm875_vm8, 0.0, %v2209_v14  ;;  %v1193_v14 = vsel %vm1144_vm10, %v2143_v9, 0 }
 0x14b   : > { %v670_v34 = vpack.c.bf16 %v665_v32, %v664_v31 }
 0x14d   : > { %2003 = vmatmul.mubr.msk.bf16.vlgmr.msra.gmra.mxu1 %vm622_vm0, %v670_v34 }
 0x14e   : > { %2007 = vmatpush3.bf16.msra.mxu1 %v2139_v33  ;;  %2010 = vmatprep.mubr.msk.bf16.mxu1 %vm2206_vm1, %v2205_v15 }
 0x14f   : > { %2008 = vmatprep.subr.bf16.mxu1 %v2205_v15 }
 0x152   : > { %2009 = vmatpush3.bf16.msra.mxu1 %v2140_v35 }
 0x153   : > { %2014 = vmatprep.subr.bf16.mxu1 %v2205_v15 }
 0x155   : > { %2011 = vmatmul.mubr.msk.bf16.vlgmr.msra.gmra.mxu1 %vm622_vm0, %v670_v34 }
 0x156   : > { %2015 = vmatpush3.bf16.msra.mxu1 %v2141_v36  ;;  %2018 = vmatprep.mubr.msk.bf16.mxu1 %vm2206_vm1, %v2205_v15 }
 0x157   : > { %2016 = vmatprep.subr.bf16.mxu1 %v2205_v15 }
 0x15a   : > { %2017 = vmatpush3.bf16.msra.mxu1 %v2142_v37 }
 0x15b   : > { %2022 = vmatprep.subr.bf16.mxu1 %v2205_v15 }
 0x15d   : > { %2019 = vmatmul.mubr.msk.bf16.vlgmr.msra.gmra.mxu1 %vm622_vm0, %v670_v34 }
 0x15e   : > { %2024 = vmatprep.mubr.msk.bf16.mxu1 %vm2206_vm1, %v2205_v15 }
 0x20d   : > { %v727_v38 = vpop.f32.mrf.mxu1 }
 0x20e   : > { %v728_v42 = vadd.f32 %v1905_v39, %v727_v38 }
 0x20f   : > { %v2004_v40 = vpop.f32.mrf.mxu1 }
 0x211   : > { %v730_v41 = vpop.f32.mrf.mxu1 }
 0x212   : > { %v731_v43 = vadd.f32 %v1905_v39, %v730_v41 }
 0x213   : > { %v2005_v44 = vpop.f32.mrf.mxu1 }
 0x214   : > { %v2388_v45 = vpack.c.bf16 %v731_v43, %v728_v42 }
 0x215   : > { %v791_v46 = vpop.f32.mrf.mxu1 }
 0x216   : > { %1012 = vrot.lane.b32.xlu1 %v2388_v45, %s2207_s29  ;;  %v792_v50 = vadd.f32 %v1909_v47, %v791_v46 }
 0x217   : > { %v2012_v48 = vpop.f32.mrf.mxu1 }
 0x219   : > { %v794_v49 = vpop.f32.mrf.mxu1 }
 0x21a   : > { %v795_v51 = vadd.f32 %v1909_v47, %v794_v49 }
 0x21b   : > { %v2013_v52 = vpop.f32.mrf.mxu1 }
 0x21c   : > { %v2395_v53 = vpack.c.bf16 %v795_v51, %v792_v50 }
 0x21d   : > { %v855_v54 = vpop.f32.mrf.mxu1 }
 0x21e   : > { %1015 = vrot.lane.b32.xlu0 %v2395_v53, %s2207_s29  ;;  %v894_v55 = vsel %vm889_vm2, %v2395_v53, 0  ;;  %v856_v59 = vadd.f32 %v1913_v56, %v855_v54 }
 0x21f   : > { %v2020_v57 = vpop.f32.mrf.mxu1  ;;  %2023 = vmatpush3.bf16.xpose.msra.mxu1 %v894_v55 }
 0x220   : > { %2034 = vmatprep.subr.bf16.mxu1 %v2205_v15 }
 0x221   : > { %v858_v58 = vpop.f32.mrf.mxu1 }
 0x222   : > { %v859_v60 = vadd.f32 %v1913_v56, %v858_v58 }
 0x223   : > { %v2021_v61 = vpop.f32.mrf.mxu1 }
 0x224   : > { %v2405_v62 = vpack.c.bf16 %v859_v60, %v856_v59 }
 0x226   : > { %2025 = vmatmul.mubr.msk.bf16.vlgmr.msra.gmra.mxu1 %vm889_vm2, %v2388_v45  ;;  %2029 = vmatpush3.bf16.msra.mxu0 %v2405_v62 }
 0x227   : > { %2036 = vmatprep.mubr.msk.bf16.mxu1 %vm2206_vm1, %v2205_v15  ;;  %2040 = vmatprep.subr.bf16.mxu0 %v2205_v15 }
 0x288   : > { %v1013_v3 = vpop.permute.xlu1 %1012 }
 0x290   : > { %v1016_v63 = vpop.permute.xlu0 %1015 }
 0x291   : > { %v1021_v2 = vsel %vm889_vm2, %v1016_v63, 0 }
 0x292   : > { %2035 = vmatpush3.bf16.xpose.msra.mxu1 %v1021_v2 }
 0x293   : > { %2046 = vmatprep.subr.bf16.mxu1 %v2205_v15 }
 0x299   : > { %2037 = vmatmul.mubr.msk.bf16.vlgmr.msra.gmra.mxu1 %vm889_vm2, %v1013_v3 }
 0x29a   : > { %2048 = vmatprep.mubr.msk.bf16.mxu1 %vm2206_vm1, %v2205_v15 }
 0x2e6   : > { %v930_v13 = vpop.f32.mrf.mxu1 }
 0x2e7   : > { %v937_v17 = vmul.f32 0.35355338, %v930_v13 }
 0x2e8   : > { %v2026_v18 = vpop.f32.mrf.mxu1 }
 0x2e9   : > { %v939_v19 = vadd.f32 %v937_v17, %v2428_v16  ;;  %v2144_v17 = vld [vmem:[%s2630_s11 + $0x4] ss:$0 sps:$4 sm:$0xff]  }
 0x2ea   : > { %v933_v20 = vpop.f32.mrf.mxu1  ;;  %v1146_v18 = vsel %vm1144_vm10, %v2144_v17, 0 }
 0x2eb   : > { %v938_v22 = vmul.f32 0.35355338, %v933_v20  ;;  %v942_v23 = vsel %vm941_vm9, %v939_v19, -inf  ;;  %2047 = vmatpush3.bf16.msra.mxu1 %v1146_v18 }
 0x2ec   : > { %943 = vmax.xlane.f32.xlu1 %v942_v23  ;;  %v2027_v24 = vpop.f32.mrf.mxu1  ;;  %2058 = vmatprep.subr.bf16.mxu1 %v2205_v15 }
 0x2ed   : > { %v940_v25 = vadd.f32 %v938_v22, %v2431_v21 }
 0x2ef   : > { %v945_v26 = vsel %vm941_vm9, %v940_v25, -inf }
 0x2f0   : > { %946 = vmax.xlane.f32.xlu0 %v945_v26 }
 0x359   : > { %v1057_v27 = vpop.f32.mrf.mxu1 }
 0x35a   : > { %v1064_v28 = vmul.f32 0.35355338, %v1057_v27 }
 0x35b   : > { %v2038_v29 = vpop.f32.mrf.mxu1 }
 0x35c   : > { %v1066_v30 = vadd.f32 %v1064_v28, %v2428_v16 }
 0x35d   : > { %v1060_v31 = vpop.f32.mrf.mxu1 }
 0x35e   : > { %v1065_v32 = vmul.f32 0.35355338, %v1060_v31  ;;  %v1068_v33 = vsel %vm941_vm9, %v1066_v30, -inf }
 0x35f   : > { %1069 = vmax.xlane.f32.xlu0 %v1068_v33  ;;  %v2039_v34 = vpop.f32.mrf.mxu1 }
 0x360   : > { %v1067_v35 = vadd.f32 %v1065_v32, %v2431_v21 }
 0x362   : > { %v1071_v36 = vsel %vm941_vm9, %v1067_v35, -inf }
 0x363   : > { %1072 = vmax.xlane.f32.xlu1 %v1071_v36 }
 0x375   : > { %v944_v37 = vpop.xlane.xlu1 %943 }
 0x376   : > { %v948_v38 = vsub.f32 %v939_v19, %v944_v37 }
 0x378   : > { %v950_v39 = vmul.f32 1.442695, %v948_v38 }
 0x379   : > { %v947_v40 = vpop.xlane.xlu0 %946 }
 0x37a   : > { %2161 = vpow2.f32 %v950_v39  ;;  %v949_v41 = vsub.f32 %v940_v25, %v947_v40 }
 0x37c   : > { %v952_v42 = vmul.f32 1.442695, %v949_v41 }
 0x37e   : > { %2163 = vpow2.f32 %v952_v42 }
 0x387   : > { %v2162_v43 = vpop.eup %2161 }
 0x388   : > { %v954_v44 = vsel %vm941_vm9, %v2162_v43, 0.0 }
 0x389   : > { %955 = vadd.xlane.f32.xlu0 %v954_v44 }
 0x38b   : > { %v2164_v46 = vpop.eup %2163 }
 0x38c   : > { %v957_v47 = vsel %vm941_vm9, %v2164_v46, 0.0 }
 0x38d   : > { %958 = vadd.xlane.f32.xlu1 %v957_v47 }
 0x3e8   : > { %v1070_v48 = vpop.xlane.xlu0 %1069 }
 0x3e9   : > { %v1074_v49 = vsub.f32 %v1066_v30, %v1070_v48 }
 0x3eb   : > { %v1076_v50 = vmul.f32 1.442695, %v1074_v49 }
 0x3ec   : > { %v1073_v51 = vpop.xlane.xlu1 %1072 }
 0x3ed   : > { %2165 = vpow2.f32 %v1076_v50  ;;  %v1075_v52 = vsub.f32 %v1067_v35, %v1073_v51 }
 0x3ef   : > { %v1078_v54 = vmul.f32 1.442695, %v1075_v52 }
 0x3f1   : > { %2167 = vpow2.f32 %v1078_v54 }
 0x3fa   : > { %v2166_v55 = vpop.eup %2165 }
 0x3fb   : > { %v1080_v56 = vsel %vm941_vm9, %v2166_v55, 0.0 }
 0x3fc   : > { %1081 = vadd.xlane.f32.xlu0 %v1080_v56 }
 0x3fe   : > { %v2168_v57 = vpop.eup %2167 }
 0x3ff   : > { %v1083_v58 = vsel %vm941_vm9, %v2168_v57, 0.0 }
 0x400   : > { %1084 = vadd.xlane.f32.xlu1 %v1083_v58 }
 0x411   : > { %1238 = vrot.lane.b32.xlu1 %v2395_v53, %s2210_s22 }
 0x412   : > { %1092 = vrot.lane.b32.xlu0 %v2405_v62, %s2207_s29  ;;  %v956_v59 = vpop.xlane.xlu0 %955 }
 0x413   : > { %2169 = vrcp.f32 %v956_v59 }
 0x415   : > { %1236 = vrot.lane.b32.xlu1 %v2388_v45, %s2210_s22 }
 0x416   : > { %v959_v60 = vpop.xlane.xlu1 %958 }
 0x417   : > { %2171 = vrcp.f32 %v959_v60 }
 0x420   : > { %v2170_v61 = vpop.eup %2169 }
 0x421   : > { %v962_v2 = vmul.f32 %v2170_v61, %v2162_v43 }
 0x424   : > { %v2172_v63 = vpop.eup %2171 }
 0x425   : > { %v963_v3 = vmul.f32 %v2172_v63, %v2164_v46 }
 0x427   : > { %v964_v4 = vpack.c.bf16 %v963_v3, %v962_v2 }
 0x429   : > { %2031 = vmatmul.mubr.msk.bf16.vlgmr.msra.gmra.mxu0 %vm941_vm9, %v964_v4 }
 0x42a   : > { %2042 = vmatprep.mubr.msk.bf16.mxu0 %vm2206_vm1, %v2205_v15 }
 0x485   : > { %v1082_v5 = vpop.xlane.xlu0 %1081 }
 0x486   : > { %2173 = vrcp.f32 %v1082_v5 }
 0x489   : > { %v1093_v6 = vpop.permute.xlu0 %1092  ;;  %v1085_v7 = vpop.xlane.xlu1 %1084 }
 0x48a   : > { %2175 = vrcp.f32 %v1085_v7  ;;  %2041 = vmatpush3.bf16.msra.mxu0 %v1093_v6 }
 0x48b   : > { %2052 = vmatprep.subr.bf16.mxu0 %v2205_v15 }
 0x48d   : > { %v1239_v27 = vpop.permute.xlu1 %1238 }
 0x48e   : > { %v1244_v31 = vsel %vm889_vm2, %v1239_v27, 0 }
 0x491   : > { %v1237_v32 = vpop.permute.xlu1 %1236 }
 0x493   : > { %v2174_v8 = vpop.eup %2173 }
 0x494   : > { %v1088_v11 = vmul.f32 %v2174_v8, %v2166_v55 }
 0x497   : > { %v2176_v10 = vpop.eup %2175 }
 0x498   : > { %v1089_v12 = vmul.f32 %v2176_v10, %v2168_v57 }
 0x49a   : > { %v1090_v13 = vpack.c.bf16 %v1089_v12, %v1088_v11  ;;  %v2145_v11 = vld [vmem:[%s2630_s11 + $0x8] ss:$0 sps:$4 sm:$0xff]  }
 0x49b   : > { %v1367_v12 = vsel %vm1144_vm10, %v2145_v11, 0 }
 0x49c   : > { %2043 = vmatmul.mubr.msk.bf16.vlgmr.msra.gmra.mxu0 %vm941_vm9, %v1090_v13 }
 0x49d   : > { %2053 = vmatpush3.bf16.msra.mxu0 %v1193_v14  ;;  %2054 = vmatprep.mubr.msk.bf16.mxu0 %vm2206_vm1, %v2205_v15 }
 0x49e   : > { %2064 = vmatprep.subr.bf16.mxu0 %v2205_v15 }
 0x4e9   : > { %v1002_v19 = vpop.f32.mrf.mxu0 }
 0x4eb   : > { %v2032_v20 = vpop.f32.mrf.mxu0 }
 0x4ed   : > { %v1005_v22 = vpop.f32.mrf.mxu0 }
 0x4ee   : > { %v1009_v23 = vpack.c.bf16 %v1005_v22, %v1002_v19 }
 0x4ef   : > { %v2033_v24 = vpop.f32.mrf.mxu0 }
 0x4f0   : > { %2055 = vmatmul.mubr.msk.bf16.vlgmr.msra.gmra.mxu0 %vm889_vm2, %v1009_v23 }
 0x4f1   : > { %2066 = vmatprep.mubr.msk.bf16.mxu0 %vm2206_vm1, %v2205_v15 }
 0x55c   : > { %v1132_v25 = vpop.f32.mrf.mxu0 }
 0x55e   : > { %v2044_v26 = vpop.f32.mrf.mxu0 }
 0x560   : > { %v1135_v28 = vpop.f32.mrf.mxu0 }
 0x561   : > { %v1139_v29 = vpack.c.bf16 %v1135_v28, %v1132_v25 }
 0x562   : > { %v2045_v30 = vpop.f32.mrf.mxu0 }
 0x563   : > { %2049 = vmatmul.mubr.msk.bf16.vlgmr.msra.gmra.mxu1 %vm889_vm2, %v1139_v29 }
 0x564   : > { %2059 = vmatpush3.bf16.xpose.msra.mxu1 %v1244_v31  ;;  %2060 = vmatprep.mubr.msk.bf16.mxu1 %vm2206_vm1, %v2205_v15 }
 0x565   : > { %2070 = vmatprep.subr.bf16.mxu1 %v2205_v15 }
 0x56b   : > { %2061 = vmatmul.mubr.msk.bf16.vlgmr.msra.gmra.mxu1 %vm889_vm2, %v1237_v32 }
 0x56c   : > { %2072 = vmatprep.mubr.msk.bf16.mxu1 %vm2206_vm1, %v2205_v15  ;;  %2071 = vmatpush3.bf16.msra.mxu1 %v1367_v12 }
 0x56d   : > { %2082 = vmatprep.subr.bf16.mxu1 %v2205_v15 }
 0x5b0   : > { %v2478_v33 = vpop.f32.mrf.mxu0 }
 0x5b2   : > { %v2056_v34 = vpop.f32.mrf.mxu0 }
 0x5b4   : > { %v2480_v35 = vpop.f32.mrf.mxu0 }
 0x5b6   : > { %v2057_v36 = vpop.f32.mrf.mxu0 }
 0x623   : > { %v2482_v37 = vpop.f32.mrf.mxu1 }
 0x625   : > { %v2050_v38 = vpop.f32.mrf.mxu1 }
 0x627   : > { %v2484_v39 = vpop.f32.mrf.mxu1 }
 0x629   : > { %v2051_v40 = vpop.f32.mrf.mxu1 }
 0x62b   : > { %v1280_v41 = vpop.f32.mrf.mxu1 }
 0x62c   : > { %v1287_v42 = vmul.f32 0.35355338, %v1280_v41 }
 0x62d   : > { %v2062_v43 = vpop.f32.mrf.mxu1 }
 0x62e   : > { %v1289_v44 = vadd.f32 %v1287_v42, %v2428_v16 }
 0x62f   : > { %v1283_v46 = vpop.f32.mrf.mxu1 }
 0x630   : > { %v1288_v47 = vmul.f32 0.35355338, %v1283_v46  ;;  %v1291_v48 = vsel %vm941_vm9, %v1289_v44, -inf }
 0x631   : > { %1292 = vmax.xlane.f32.xlu1 %v1291_v48  ;;  %v2063_v49 = vpop.f32.mrf.mxu1  ;;  %v1233_v48 = vadd.f32 %v2480_v35, %v2484_v39  ;;  %v2146_v35 = vld [vmem:[%s2630_s11 + $0xc] ss:$0 sps:$4 sm:$0xff]  }
 0x632   : > { %v1290_v50 = vadd.f32 %v1288_v47, %v2431_v21  ;;  %v1543_v39 = vsel %vm1144_vm10, %v2146_v35, 0 }
 0x634   : > { %v1294_v51 = vsel %vm941_vm9, %v1290_v50, -inf }
 0x635   : > { %1295 = vmax.xlane.f32.xlu0 %v1294_v51 }
 0x642   : > { %1314 = vrot.lane.b32.xlu1 %v2405_v62, %s2210_s22 }
 0x646   : > { %1412 = vrot.lane.b32.xlu1 %v2388_v45, %s2211_s25 }
 0x6ba   : > { %v1293_v52 = vpop.xlane.xlu1 %1292 }
 0x6bb   : > { %v1297_v54 = vsub.f32 %v1289_v44, %v1293_v52 }
 0x6bd   : > { %v1299_v55 = vmul.f32 1.442695, %v1297_v54 }
 0x6be   : > { %v1315_v56 = vpop.permute.xlu1 %1314  ;;  %v1296_v57 = vpop.xlane.xlu0 %1295 }
 0x6bf   : > { %2177 = vpow2.f32 %v1299_v55  ;;  %v1298_v58 = vsub.f32 %v1290_v50, %v1296_v57  ;;  %2065 = vmatpush3.bf16.msra.mxu0 %v1315_v56 }
 0x6c0   : > { %2076 = vmatprep.subr.bf16.mxu0 %v2205_v15 }
 0x6c1   : > { %v1301_v59 = vmul.f32 1.442695, %v1298_v58 }
 0x6c3   : > { %2179 = vpow2.f32 %v1301_v59 }
 0x6cc   : > { %v2178_v60 = vpop.eup %2177 }
 0x6cd   : > { %v1303_v61 = vsel %vm941_vm9, %v2178_v60, 0.0 }
 0x6ce   : > { %1304 = vadd.xlane.f32.xlu0 %v1303_v61 }
 0x6d0   : > { %v2180_v63 = vpop.eup %2179 }
 0x6d1   : > { %v1306_v2 = vsel %vm941_vm9, %v2180_v63, 0.0 }
 0x6d2   : > { %1307 = vadd.xlane.f32.xlu0 %v1306_v2 }
 0x6e8   : > { %1414 = vrot.lane.b32.xlu0 %v2395_v53, %s2211_s25  ;;  %v1413_v53 = vpop.permute.xlu1 %1412 }
 0x757   : > { %v1305_v45 = vpop.xlane.xlu0 %1304 }
 0x758   : > { %2181 = vrcp.f32 %v1305_v45  ;;  %v1933_v45 = vld [vmem:[%s2631_s12] ss:$0 sm:$0xff] }
 0x75b   : > { %v1308_v3 = vpop.xlane.xlu0 %1307 }
 0x75c   : > { %2183 = vrcp.f32 %v1308_v3 }
 0x75f   : > { %v1415_v8 = vpop.permute.xlu0 %1414 }
 0x760   : > { %v1420_v10 = vsel %vm889_vm2, %v1415_v8, 0 }
 0x765   : > { %v2182_v4 = vpop.eup %2181 }
 0x766   : > { %v1311_v6 = vmul.f32 %v2182_v4, %v2178_v60 }
 0x769   : > { %v2184_v5 = vpop.eup %2183 }
 0x76a   : > { %v1312_v7 = vmul.f32 %v2184_v5, %v2180_v63 }
 0x76c   : > { %v1313_v9 = vpack.c.bf16 %v1312_v7, %v1311_v6 }
 0x76e   : > { %2067 = vmatmul.mubr.msk.bf16.vlgmr.msra.gmra.mxu0 %vm941_vm9, %v1313_v9 }
 0x76f   : > { %2077 = vmatpush3.bf16.xpose.msra.mxu0 %v1420_v10  ;;  %2078 = vmatprep.mubr.msk.bf16.mxu0 %vm2206_vm1, %v2205_v15 }
 0x770   : > { %2088 = vmatprep.subr.bf16.mxu0 %v2205_v15 }
 0x776   : > { %2079 = vmatmul.mubr.msk.bf16.vlgmr.msra.gmra.mxu0 %vm889_vm2, %v1413_v53 }
 0x777   : > { %2090 = vmatprep.mubr.msk.bf16.mxu0 %vm2206_vm1, %v2205_v15  ;;  %2089 = vmatpush3.bf16.msra.mxu0 %v1543_v39 }
 0x778   : > { %2102 = vmatprep.subr.bf16.mxu0 %v2205_v15 }
 0x82e   : > { %v1354_v13 = vpop.f32.mrf.mxu0 }
 0x830   : > { %v2068_v14 = vpop.f32.mrf.mxu0 }
 0x832   : > { %v1357_v17 = vpop.f32.mrf.mxu0 }
 0x833   : > { %v1361_v18 = vpack.c.bf16 %v1357_v17, %v1354_v13 }
 0x834   : > { %v2069_v19 = vpop.f32.mrf.mxu0 }
 0x835   : > { %2073 = vmatmul.mubr.msk.bf16.vlgmr.msra.gmra.mxu1 %vm889_vm2, %v1361_v18 }
 0x836   : > { %v1456_v20 = vpop.f32.mrf.mxu0  ;;  %2084 = vmatprep.mubr.msk.bf16.mxu1 %vm2206_vm1, %v2205_v15 }
 0x837   : > { %v1463_v22 = vmul.f32 0.35355338, %v1456_v20 }
 0x838   : > { %v2080_v23 = vpop.f32.mrf.mxu0 }
 0x839   : > { %v1465_v24 = vadd.f32 %v1463_v22, %v2428_v16 }
 0x83a   : > { %v1459_v25 = vpop.f32.mrf.mxu0 }
 0x83b   : > { %v1464_v26 = vmul.f32 0.35355338, %v1459_v25  ;;  %v1467_v27 = vsel %vm941_vm9, %v1465_v24, -inf  ;;  %v2148_v25 = vld [vmem:[%s2634_s15] sm:$0xff]  }
 0x83c   : > { %1468 = vmax.xlane.f32.xlu1 %v1467_v27  ;;  %v2081_v28 = vpop.f32.mrf.mxu0  ;;  %v2150_v27 = vld [vmem:[%s2636_s17 + $0x30] sm:$0xff]  }
 0x83d   : > { %v1466_v29 = vadd.f32 %v1464_v26, %v2431_v21  ;;  %v1230_v21 = vadd.f32 %v2478_v33, %v2482_v37  ;;  %v2149_v26 = vld [vmem:[%s2636_s17 + $0x38] sm:$0xff]   ;;  %v2151_v28 = vld [vmem:[%s2636_s17 + $0x28] sm:$0xff]  }
 0x83f   : > { %v1470_v30 = vsel %vm941_vm9, %v1466_v29, -inf }
 0x840   : > { %1471 = vmax.xlane.f32.xlu0 %v1470_v30  ;;  %v2153_v30 = vld [vmem:[%s2636_s17 + $0x18] sm:$0xff]  }
 0x8c5   : > { %v1469_v31 = vpop.xlane.xlu1 %1468 }
 0x8c6   : > { %v1473_v32 = vsub.f32 %v1465_v24, %v1469_v31  ;;  %v2147_v24 = vld [vmem:[%s2634_s15 + $0x8] sm:$0xff]  }
 0x8c8   : > { %v1475_v34 = vmul.f32 1.442695, %v1473_v32 }
 0x8c9   : > { %v1472_v36 = vpop.xlane.xlu0 %1471 }
 0x8ca   : > { %2185 = vpow2.f32 %v1475_v34  ;;  %v1474_v38 = vsub.f32 %v1466_v29, %v1472_v36  ;;  %v2152_v29 = vld [vmem:[%s2636_s17 + $0x20] sm:$0xff]  }
 0x8cc   : > { %v1477_v40 = vmul.f32 1.442695, %v1474_v38 }
 0x8ce   : > { %2187 = vpow2.f32 %v1477_v40 }
 0x8d7   : > { %v2186_v16 = vpop.eup %2185 }
 0x8d8   : > { %v1479_v41 = vsel %vm941_vm9, %v2186_v16, 0.0 }
 0x8d9   : > { %1480 = vadd.xlane.f32.xlu0 %v1479_v41 }
 0x8db   : > { %v2188_v42 = vpop.eup %2187 }
 0x8dc   : > { %v1482_v43 = vsel %vm941_vm9, %v2188_v42, 0.0 }
 0x8dd   : > { %1483 = vadd.xlane.f32.xlu1 %v1482_v43 }
 0x8ef   : > { %1490 = vrot.lane.b32.xlu0 %v2405_v62, %s2211_s25 }
 0x8f5   : > { %v1403_v44 = vpop.f32.mrf.mxu1 }
 0x8f6   : > { %v1410_v46 = vadd.f32 %v1403_v44, %v1230_v21 }
 0x8f7   : > { %v2074_v47 = vpop.f32.mrf.mxu1 }
 0x8f9   : > { %v1406_v49 = vpop.f32.mrf.mxu1 }
 0x8fa   : > { %v1411_v50 = vadd.f32 %v1406_v49, %v1233_v48 }
 0x8fb   : > { %v2075_v51 = vpop.f32.mrf.mxu1 }
 0x8fc   : > { %v2154_v51 = vld [vmem:[%s2636_s17 + $0x10] sm:$0xff]  }
 0x962   : > { %v1481_v52 = vpop.xlane.xlu0 %1480 }
 0x963   : > { %2189 = vrcp.f32 %v1481_v52  ;;  %v2155_v52 = vld [vmem:[%s2636_s17 + $0x8] sm:$0xff]  }
 0x966   : > { %v1484_v54 = vpop.xlane.xlu1 %1483  ;;  %v1491_v55 = vpop.permute.xlu0 %1490 }
 0x967   : > { %2191 = vrcp.f32 %v1484_v54  ;;  %2083 = vmatpush3.bf16.msra.mxu1 %v1491_v55  ;;  %v2156_v54 = vld [vmem:[%s2636_s17] sm:$0xff]  }
 0x968   : > { %2094 = vmatprep.subr.bf16.mxu1 %v2205_v15  ;;  %v1936_v55 = vld [vmem:[%s2635_s16] ss:$0 sm:$0xff] }
 0x970   : > { %v2190_v62 = vpop.eup %2189 }
 0x971   : > { %v1487_v33 = vmul.f32 %v2190_v62, %v2186_v16 }
 0x974   : > { %v2192_v56 = vpop.eup %2191 }
 0x975   : > { %v1488_v37 = vmul.f32 %v2192_v56, %v2188_v42  ;;  %v1934_v42 = vld [vmem:[%s2632_s13] ss:$0 sm:$0xff] }
 0x977   : > { %v1489_v57 = vpack.c.bf16 %v1488_v37, %v1487_v33 }
 0x979   : > { %2085 = vmatmul.mubr.msk.bf16.vlgmr.msra.gmra.mxu1 %vm941_vm9, %v1489_v57 }
 0x97a   : > { %2098 = vmatprep.mubr.msk.bf16.mxu1 %vm2206_vm1, %v2205_v15  ;;  %2095 = vmatpush3.bf16.msra.mxu1 %v2147_v24 }
 0x97b   : > { %2096 = vmatprep.subr.bf16.mxu1 %v2205_v15 }
 0x97e   : > { %2097 = vmatpush3.bf16.msra.mxu1 %v2148_v25 }
 0xa39   : > { %v1530_v58 = vpop.f32.mrf.mxu1 }
 0xa3b   : > { %v2086_v59 = vpop.f32.mrf.mxu1 }
 0xa3d   : > { %v1533_v60 = vpop.f32.mrf.mxu1 }
 0xa3e   : > { %v1537_v61 = vpack.c.bf16 %v1533_v60, %v1530_v58 }
 0xa3f   : > { %v2087_v63 = vpop.f32.mrf.mxu1 }
 0xa40   : > { %2091 = vmatmul.mubr.msk.bf16.vlgmr.msra.gmra.mxu0 %vm889_vm2, %v1537_v61 }
 0xa41   : > { %2118 = vmatprep.mubr.msk.bf16.mxu0 %vm2206_vm1, %v2205_v15  ;;  %2103 = vmatpush3.bf16.msra.mxu0 %v2149_v26 }
 0xa42   : > { %2104 = vmatprep.subr.bf16.mxu0 %v2205_v15 }
 0xa45   : > { %2105 = vmatpush3.bf16.msra.mxu0 %v2150_v27 }
 0xa46   : > { %2106 = vmatprep.subr.bf16.mxu0 %v2205_v15 }
 0xa49   : > { %2107 = vmatpush3.bf16.msra.mxu0 %v2151_v28 }
 0xa4a   : > { %2108 = vmatprep.subr.bf16.mxu0 %v2205_v15 }
 0xa4d   : > { %2109 = vmatpush3.bf16.msra.mxu0 %v2152_v29 }
 0xa4e   : > { %2110 = vmatprep.subr.bf16.mxu0 %v2205_v15 }
 0xa51   : > { %2111 = vmatpush3.bf16.msra.mxu0 %v2153_v30 }
 0xa52   : > { %2112 = vmatprep.subr.bf16.mxu0 %v2205_v15 }
 0xa55   : > { %2113 = vmatpush3.bf16.msra.mxu0 %v2154_v51 }
 0xa56   : > { %2114 = vmatprep.subr.bf16.mxu0 %v2205_v15 }
 0xa59   : > { %2115 = vmatpush3.bf16.msra.mxu0 %v2155_v52 }
 0xa5a   : > { %2116 = vmatprep.subr.bf16.mxu0 %v2205_v15  ;;  %v1940_v15 = vld [vmem:[%s2637_s18] ss:$0 sm:$0xff] }
 0xa5d   : > { %2117 = vmatpush3.bf16.msra.mxu0 %v2156_v54 }
 0xb00   : > { %v1579_v2 = vpop.f32.mrf.mxu0 }
 0xb01   : > { %v1586_v3 = vadd.f32 %v1579_v2, %v1410_v46  ;;  %v1935_v46 = vld [vmem:[%s2633_s14] ss:$0 sm:$0xff] }
 0xb02   : > { %v2092_v4 = vpop.f32.mrf.mxu0 }
 0xb03   : > { %v1595_v5 = vadd.f32 %v1933_v45, %v1586_v3 }
 0xb04   : > { %v1582_v6 = vpop.f32.mrf.mxu0 }
 0xb05   : > { %v2543_v7 = vadd.f32 %v1595_v5, %v2328_v0  ;;  %v1587_v8 = vadd.f32 %v1582_v6, %v1411_v50 }
 0xb06   : > { %v2093_v9 = vpop.f32.mrf.mxu0 }
 0xb07   : > { %v1596_v10 = vadd.f32 %v1933_v45, %v1587_v8  ;;  %v1601_v53 = vsel %vm622_vm0, %v2543_v7, 0.0 }
 0xb08   : > { %1602 = vadd.xlane.f32.xlu1 %v1601_v53 }
 0xb09   : > { %v2548_v11 = vadd.f32 %v1596_v10, %v2330_v1 }
 0xb0b   : > { %v1604_v12 = vsel %vm622_vm0, %v2548_v11, 0.0 }
 0xb0c   : > { %1605 = vadd.xlane.f32.xlu1 %v1604_v12 }
 0xb91   : > { %v1603_v13 = vpop.xlane.xlu1 %1602 }
 0xb92   : > { %v1607_v14 = vmul.f32 0.03125, %v1603_v13 }
 0xb94   : > { %v1609_v17 = vsub.f32 %v2543_v7, %v1607_v14 }
 0xb95   : > { %v1606_v0 = vpop.xlane.xlu1 %1605 }
 0xb96   : > { %v1608_v18 = vmul.f32 0.03125, %v1606_v0  ;;  %v1611_v19 = vmul.f32 %v1609_v17, %v1609_v17 }
 0xb98   : > { %v1610_v20 = vsub.f32 %v2548_v11, %v1608_v18  ;;  %v1613_v22 = vsel %vm622_vm0, %v1611_v19, 0.0 }
 0xb99   : > { %1614 = vadd.xlane.f32.xlu1 %v1613_v22 }
 0xb9a   : > { %v1612_v23 = vmul.f32 %v1610_v20, %v1610_v20 }
 0xb9c   : > { %v1616_v1 = vsel %vm622_vm0, %v1612_v23, 0.0 }
 0xb9d   : > { %1617 = vadd.xlane.f32.xlu1 %v1616_v1 }
 0xc22   : > { %v1615_v31 = vpop.xlane.xlu1 %1614 }
 0xc23   : > { %v1619_v32 = vmul.f32 0.03125, %v1615_v31 }
 0xc25   : > { %v1621_v34 = vadd.f32 1e-05, %v1619_v32 }
 0xc26   : > { %v1618_v36 = vpop.xlane.xlu1 %1617 }
 0xc27   : > { %2193 = vrsqrt.f32 %v1621_v34  ;;  %v1620_v38 = vmul.f32 0.03125, %v1618_v36 }
 0xc29   : > { %v1622_v40 = vadd.f32 1e-05, %v1620_v38 }
 0xc2b   : > { %2195 = vrsqrt.f32 %v1622_v40 }
 0xc34   : > { %v2194_v16 = vpop.eup %2193 }
 0xc35   : > { %v1625_v41 = vmul.f32 %v2194_v16, %v1609_v17 }
 0xc37   : > { %v1633_v44 = vmul.f32 %v1934_v42, %v1625_v41 }
 0xc38   : > { %v2196_v43 = vpop.eup %2195 }
 0xc39   : > { %v1626_v21 = vmul.f32 %v2196_v43, %v1610_v20  ;;  %v1641_v48 = vadd.f32 %v1935_v46, %v1633_v44 }
 0xc3b   : > { %v1634_v47 = vmul.f32 %v1934_v42, %v1626_v21 }
 0xc3d   : > { %v1642_v49 = vadd.f32 %v1935_v46, %v1634_v47 }
 0xc3f   : > { %v1647_v50 = vpack.c.bf16 %v1642_v49, %v1641_v48 }
 0xc41   : > { %2099 = vmatmul.mubr.msk.bf16.vlgmr.msra.gmra.mxu1 %vm622_vm0, %v1647_v50 }
 0xd01   : > { %v1704_v62 = vpop.f32.mrf.mxu1 }
 0xd02   : > { %v1705_v33 = vadd.f32 %v1936_v55, %v1704_v62 }
 0xd03   : > { %v2100_v56 = vpop.f32.mrf.mxu1 }
 0xd04   : > { %v1711_v39 = vmax.f32 %v1705_v33, 0.0 }
 0xd05   : > { %v1707_v37 = vpop.f32.mrf.mxu1 }
 0xd06   : > { %v1708_v57 = vadd.f32 %v1936_v55, %v1707_v37 }
 0xd07   : > { %v2101_v35 = vpop.f32.mrf.mxu1 }
 0xd08   : > { %v1712_v58 = vmax.f32 %v1708_v57, 0.0 }
 0xd0a   : > { %v1729_v59 = vpack.c.bf16 %v1712_v58, %v1711_v39 }
 0xd0c   : > { %2119 = vmatmul.mubr.bf16.vlgmr.msra.gmra.mxu0 %v1729_v59 }
 0xdcc   : > { %v1819_v60 = vpop.f32.mrf.mxu0 }
 0xdcd   : > { %v1820_v61 = vadd.f32 %v1940_v15, %v1819_v60 }
 0xdce   : > { %v2120_v63 = vpop.f32.mrf.mxu0 }
 0xdcf   : > { %v1826_v2 = vadd.f32 %v1820_v61, %v2543_v7 }
 0xdd0   : > { %v1822_v45 = vpop.f32.mrf.mxu0 }
 0xdd1   : > { %1828 = vst.msk [vmem:[%s616_s21] sm:$0xff] %vm622_vm0, %v1826_v2  ;;  %v1823_v3 = vadd.f32 %v1940_v15, %v1822_v45 }
 0xdd2   : > { %v2121_v4 = vpop.f32.mrf.mxu0 }
 0xdd3   : > { %v1827_v5 = vadd.f32 %v1823_v3, %v2548_v11 }
 0xdd5   : > { %1829 = vst.msk [vmem:[%s616_s21 + $0x8] sm:$0xff] %vm622_vm0, %v1827_v5 }
 0xdd6 PF: > { %s29_s0 = sadd.s32 1, %s2203_s0  }
 0xdd7   : > { %p26_p4 = scmp.ge.s32.totalorder %s29_s0, 10  }
 0xdd9   :  { %28 = sbr.rel (!%p26_p4) target bundleno = 5 (0x5), region = 129 }

// kernel: encoder_forward.9
= control target key start
LH: loop header
LB: loop body
LE: loop exit
PB: predicated region body
PF: predicated region fallthrough
CT: control target
= control target key end

     0   :  { %s2525_s0 = inlined_call_operand.vmem [shape: f32[8,16,32], index: 0, kind: input, shape index: {}]   ;;  %s2526_s1 = inlined_call_operand.vmem [shape: bf16[16,32], index: 1, kind: input, shape index: {}]   ;;  %s2527_s2 = inlined_call_operand.vmem [shape: bf16[16,32], index: 2, kind: input, shape index: {}]   ;;  %s2528_s3 = inlined_call_operand.vmem [shape: f32[8,1,16], index: 3, kind: input, shape index: {}]   ;;  %s2529_s4 = inlined_call_operand.vmem [shape: f32[1,32], index: 4, kind: input, shape index: {}]   ;;  %s2530_s5 = inlined_call_operand.vmem [shape: f32[1,32], index: 5, kind: input, shape index: {}]   ;;  %s2531_s6 = inlined_call_operand.vmem [shape: bf16[32,32], index: 6, kind: input, shape index: {}]   ;;  %s2532_s7 = inlined_call_operand.vmem [shape: f32[1,32], index: 7, kind: input, shape index: {}]   ;;  %s2533_s8 = inlined_call_operand.vmem [shape: bf16[32,32], index: 8, kind: input, shape index: {}]   ;;  %s2534_s9 = inlined_call_operand.vmem [shape: f32[1,32], index: 9, kind: input, shape index: {}]   ;;  %s2535_s10 = inlined_call_operand.vmem [shape: f32[1,32], index: 10, kind: input, shape index: {}]   ;;  %s2536_s11 = inlined_call_operand.vmem [shape: f32[1,32], index: 11, kind: input, shape index: {}]   ;;  %s2537_s12 = inlined_call_operand.vmem [shape: bf16[32,128], index: 12, kind: input, shape index: {}]   ;;  %s2538_s13 = inlined_call_operand.vmem [shape: f32[1,128], index: 13, kind: input, shape index: {}]   ;;  %s2539_s14 = inlined_call_operand.vmem [shape: bf16[128,32], index: 14, kind: input, shape index: {}]   ;;  %s2540_s15 = inlined_call_operand.vmem [shape: f32[1,32], index: 15, kind: input, shape index: {}]   ;;  %s2541_s16 = inlined_call_operand.hbm [shape: f32[8,16,32], index: 16, kind: output, shape index: {}]  }
   0x1   :  { %2542 = sst [smem:[#allocation5_spill]] %s2525_s0 }
   0x2   :  { %2543 = sst [smem:[#allocation6_spill]] %s2526_s1 }
   0x3   :  { %2544 = sst [smem:[#allocation7_spill]] %s2527_s2 }
   0x4   :  { %2545 = sst [smem:[#allocation8_spill]] %s2528_s3 }
   0x5   :  { %2546 = sst [smem:[#allocation9_spill]] %s2529_s4 }
   0x6   :  { %2547 = sst [smem:[#allocation10_spill]] %s2531_s6 }
   0x7   :  { %21 = vsyncpa [#allocation3], 0 }
   0x8   :  { %23 = vsyncpa [#allocation3 + $0x1], 0  ;;  %s2167_s21 = smov 0   ;;  %s2169_s22 = smov 0  }
   0x9   :  { %s2171_s23 = smov 0   ;;  %s2173_s24 = smov 0  }
   0xa LB: > { %s2188_s25 = sadd.s32 4294967295, %s2071_s24   ;;  %s1705_s26 = sadd.s32 4294967294, %s2071_s24   ;;  %s2071_s24 = sphi %s2173_s24, %s2559_s24   ;;  %s2067_s23 = sphi %s2171_s23, %s2558_s23   ;;  %s2063_s22 = sphi %s2169_s22, %s2557_s22   ;;  %s2059_s21 = sphi %s2167_s21, %s2556_s21  }
   0xb   : > { %s2192_s27 = sadd.s32 1, %s2071_s24   ;;  %s382_s28 = sadd.s32 1, %s2067_s23 }
   0xc   : > { %s379_s29 = ssub.s32 %s2071_s24, %s2192_s27  ;;  %p392_p0 = scmp.ne.s32.totalorder %s2067_s23, %s2063_s22 }
   0xd   : > { %p380_p1 = scmp.eq.s32.totalorder %s379_s29, 0  ;;  %p393_p2 = scmp.eq.s32.totalorder %s2188_s25, 7 }
   0xe   : > { %p398_p3 = scmp.ne.s32.totalorder %s2063_s22, %s2059_s21  ;;  %p399_p4 = scmp.eq.s32.totalorder %s1705_s26, 7 }
   0xf   : > { %s2203_s30 = scalar_select %p380_p1, %s2067_s23, %s382_s28  }
  0x10   : > { %p2205_p5 = por %p393_p2, %p392_p0  ;;  %p2209_p6 = por %p399_p4, %p398_p3 }
  0x11   : > { %p1708_p7 = scmp.ge.s32.totalorder %s2071_s24, 1  ;;  %p473_p8 = scmp.lt.s32.totalorder %s2071_s24, 9 }
  0x13   : > { %p474_p9 = pnand %p1708_p7, %p473_p8 }
  0x14   : > { %p526_p10 = scmp.lt.s32.totalorder (!%p474_p9), %s2188_s25, 7  ;;  %s2550_s28 = sld [smem:[#allocation5_spill]] (!%p474_p9) }
  0x15   : > { %477 = sbr.rel (%p474_p9) target bundleno = 3959 (0xf77), region = 84  ;;  %s2551_s6 = sld [smem:[#allocation10_spill]] (!%p474_p9) }
  0x16   : > { %s2552_s4 = sld [smem:[#allocation9_spill]] (!%p474_p9) }
  0x17   : > { %s2553_s1 = sld [smem:[#allocation6_spill]] (!%p474_p9) }
  0x18   : > { %s2554_s3 = sld [smem:[#allocation8_spill]] (!%p474_p9) }
  0x19   : > { %s2555_s2 = sld [smem:[#allocation7_spill]] (!%p474_p9) }
  0x1a   : > { %s2217_s18 = scalar_select %p526_p10, %s2188_s25, 7  ;;  %vm539_vm0 = vcmask 261120   ;;  %v2073_v15 = vmov 0.0   ;;  %vm2074_vm1 = vmmov 0   ;;  %v1713_v29 = vld [vmem:[%s2530_s5] ss:$0 sm:$0xff]  ;;  %v724_v44 = vlaneseq }
  0x1b   : > { %v1953_v14 = vld [vmem:[%s2551_s6 + $0x8] sm:$0xff]   ;;  %1798 = vmatprep.subr.bf16.mxu1 %v2073_v15  ;;  %1802 = vmatprep.mubr.msk.bf16.mxu1 %vm2074_vm1, %v2073_v15  ;;  %v1954_v16 = vld [vmem:[%s2551_s6] sm:$0xff]   ;;  %vm673_vm2 = vcmask 64512   ;;  %v2075_v48 = vmov -1e+09   ;;  %vm731_vm4 = vcmask 130048  }
  0x1c   : > { %s1757_s19 = sshll.u32 %s2217_s18, 4  ;;  %1799 = vmatpush3.bf16.msra.mxu1 %v1953_v14  ;;  %1824 = vmatprep.subr.bf16.mxu0 %v2073_v15  ;;  %v1712_v25 = vld [vmem:[%s2552_s4] ss:$0 sm:$0xff]  ;;  %v725_v46 = vshrl.u32 %v724_v44, 7  ;;  %vm934_vm5 = vcmask 1043456  }
  0x1d   : > { %s530_s29 = scalar_lea.vmem %s2550_s28, %s1757_s19  ;;  %1800 = vmatprep.subr.bf16.mxu1 %v2073_v15  ;;  %1826 = vmatprep.mubr.msk.bf16.mxu0 %vm2074_vm1, %v2073_v15  ;;  %v2261_v34 = vld [vmem:[%s2553_s1] sm:$0xff]   ;;  %s2077_s19 = smov 112  }
  0x1e   : > { %v2223_v0 = vld [vmem:[%s530_s29] sm:$0xff]  ;;  %v2225_v1 = vld [vmem:[%s530_s29 + $0x8] sm:$0xff]  ;;  %v678_v35 = vsel %vm673_vm2, %v2261_v34, 0  ;;  %s533_s26 = scalar_lea.vmem %s2554_s3, %s2217_s18  ;;  %v726_v47 = vsub.s32 0, %v725_v46  ;;  %s2076_s29 = smov 120  }
  0x1f   : > { %v540_v2 = vsel %vm539_vm0, %v2223_v0, 0.0  ;;  %v543_v3 = vsel %vm539_vm0, %v2225_v1, 0.0  ;;  %v1714_v37 = vld [vmem:[%s2532_s7] ss:$0 sm:$0xff]  ;;  %s2078_s28 = smov 104  }
  0x20   : > { %541 = vadd.xlane.f32.xlu0 %v540_v2  ;;  %1801 = vmatpush3.bf16.msra.mxu1 %v1954_v16  ;;  %v659_v45 = vld [vmem:[%s533_s26] sm:$0x1] }
  0x21   : > { %1806 = vmatprep.subr.bf16.mxu1 %v2073_v15  ;;  %vm660_vm3 = vcmp.gt.f32.partialorder %v659_v45, 0.5 }
  0x22   : > { %v661_v49 = vsel %vm660_vm3, 0.0, %v2075_v48  ;;  %v1958_v48 = vld [vmem:[%s2533_s8 + $0x4] ss:$0 sps:$4 sm:$0xff]  }
  0x23   : > { %v2279_v50 = vrot.slane %v661_v49, %v726_v47  ;;  %v936_v49 = vsel %vm934_vm5, %v1958_v48, 0  ;;  %v1959_v48 = vld [vmem:[%s2533_s8 + $0x8] ss:$0 sps:$4 sm:$0xff]  }
  0x24   : > { %544 = vadd.xlane.f32.xlu0 %v543_v3 }
  0xa9   : > { %v542_v4 = vpop.xlane.xlu0 %541 }
  0xaa   : > { %v547_v5 = vmul.f32 0.03125, %v542_v4 }
  0xac   : > { %v549_v6 = vsub.f32 %v2223_v0, %v547_v5 }
  0xad   : > { %v545_v7 = vpop.xlane.xlu0 %544 }
  0xae   : > { %v548_v8 = vmul.f32 0.03125, %v545_v7  ;;  %v551_v9 = vmul.f32 %v549_v6, %v549_v6 }
  0xb0   : > { %v550_v10 = vsub.f32 %v2225_v1, %v548_v8  ;;  %v553_v11 = vsel %vm539_vm0, %v551_v9, 0.0  ;;  %v2290_v9 = vld [vmem:[%s2555_s2] sm:$0xff]  }
  0xb1   : > { %554 = vadd.xlane.f32.xlu1 %v553_v11 }
  0xb2   : > { %v552_v12 = vmul.f32 %v550_v10, %v550_v10 }
  0xb4   : > { %v556_v13 = vsel %vm539_vm0, %v552_v12, 0.0 }
  0xb5   : > { %557 = vadd.xlane.f32.xlu1 %v556_v13 }
 0x13a   : > { %v555_v17 = vpop.xlane.xlu1 %554 }
 0x13b   : > { %v559_v18 = vmul.f32 0.03125, %v555_v17 }
 0x13d   : > { %v561_v19 = vadd.f32 1e-05, %v559_v18 }
 0x13e   : > { %v558_v20 = vpop.xlane.xlu1 %557 }
 0x13f   : > { %1971 = vrsqrt.f32 %v561_v19  ;;  %v560_v21 = vmul.f32 0.03125, %v558_v20 }
 0x141   : > { %v562_v22 = vadd.f32 1e-05, %v560_v21 }
 0x143   : > { %1973 = vrsqrt.f32 %v562_v22 }
 0x14c   : > { %v1972_v23 = vpop.eup %1971 }
 0x14d   : > { %v565_v24 = vmul.f32 %v1972_v23, %v549_v6 }
 0x14f   : > { %v573_v28 = vmul.f32 %v1712_v25, %v565_v24 }
 0x150   : > { %v1974_v26 = vpop.eup %1973 }
 0x151   : > { %v566_v27 = vmul.f32 %v1974_v26, %v550_v10  ;;  %v581_v31 = vadd.f32 %v1713_v29, %v573_v28 }
 0x153   : > { %v574_v30 = vmul.f32 %v1712_v25, %v566_v27 }
 0x155   : > { %v582_v32 = vadd.f32 %v1713_v29, %v574_v30 }
 0x157   : > { %v587_v33 = vpack.c.bf16 %v582_v32, %v581_v31 }
 0x159   : > { %1803 = vmatmul.mubr.msk.bf16.vlgmr.msra.gmra.mxu1 %vm539_vm0, %v587_v33 }
 0x15a   : > { %1808 = vmatprep.mubr.msk.bf16.mxu1 %vm2074_vm1, %v2073_v15  ;;  %1807 = vmatpush3.bf16.xpose.msra.mxu1 %v678_v35 }
 0x15b   : > { %1812 = vmatprep.subr.bf16.mxu1 %v2073_v15 }
 0x219   : > { %v644_v36 = vpop.f32.mrf.mxu1 }
 0x21a   : > { %v645_v40 = vadd.f32 %v1714_v37, %v644_v36 }
 0x21b   : > { %v1804_v38 = vpop.f32.mrf.mxu1 }
 0x21d   : > { %v647_v39 = vpop.f32.mrf.mxu1 }
 0x21e   : > { %v648_v41 = vadd.f32 %v1714_v37, %v647_v39 }
 0x21f   : > { %v1805_v42 = vpop.f32.mrf.mxu1 }
 0x220   : > { %v2269_v43 = vpack.c.bf16 %v648_v41, %v645_v40 }
 0x222   : > { %1809 = vmatmul.mubr.msk.bf16.vlgmr.msra.gmra.mxu1 %vm673_vm2, %v2269_v43 }
 0x223   : > { %1814 = vmatprep.mubr.msk.bf16.mxu1 %vm2074_vm1, %v2073_v15  ;;  %1813 = vmatpush3.bf16.msra.mxu1 %v2290_v9 }
 0x224   : > { %1818 = vmatprep.subr.bf16.mxu1 %v2073_v15 }
 0x2e2   : > { %v714_v51 = vpop.f32.mrf.mxu1 }
 0x2e3   : > { %v721_v52 = vmul.f32 0.35355338, %v714_v51 }
 0x2e4   : > { %v1810_v53 = vpop.f32.mrf.mxu1 }
 0x2e5   : > { %v729_v54 = vadd.f32 %v2279_v50, %v721_v52 }
 0x2e6   : > { %v717_v55 = vpop.f32.mrf.mxu1 }
 0x2e7   : > { %v722_v56 = vmul.f32 0.35355338, %v717_v55  ;;  %v732_v57 = vsel %vm731_vm4, %v729_v54, -inf  ;;  %v1957_v55 = vld [vmem:[%s2533_s8] ss:$0 sps:$4 sm:$0xff]  }
 0x2e8   : > { %733 = vmax.xlane.f32.xlu0 %v732_v57  ;;  %v1811_v58 = vpop.f32.mrf.mxu1 }
 0x2e9   : > { %v730_v59 = vadd.f32 %v2279_v50, %v722_v56 }
 0x2eb   : > { %v735_v60 = vsel %vm731_vm4, %v730_v59, -inf }
 0x2ec   : > { %736 = vmax.xlane.f32.xlu1 %v735_v60  ;;  %v983_v60 = vsel %vm934_vm5, %v1957_v55, 0 }
 0x371   : > { %v734_v61 = vpop.xlane.xlu0 %733 }
 0x372   : > { %v738_v62 = vsub.f32 %v729_v54, %v734_v61 }
 0x374   : > { %v740_v63 = vmul.f32 1.442695, %v738_v62 }
 0x375   : > { %v737_v2 = vpop.xlane.xlu1 %736 }
 0x376   : > { %1975 = vpow2.f32 %v740_v63  ;;  %v739_v3 = vsub.f32 %v730_v59, %v737_v2 }
 0x378   : > { %v742_v4 = vmul.f32 1.442695, %v739_v3 }
 0x37a   : > { %1977 = vpow2.f32 %v742_v4 }
 0x383   : > { %v1976_v5 = vpop.eup %1975 }
 0x384   : > { %v744_v6 = vsel %vm731_vm4, %v1976_v5, 0.0 }
 0x385   : > { %745 = vadd.xlane.f32.xlu0 %v744_v6 }
 0x387   : > { %v1978_v7 = vpop.eup %1977 }
 0x388   : > { %v747_v8 = vsel %vm731_vm4, %v1978_v7, 0.0 }
 0x389   : > { %748 = vadd.xlane.f32.xlu1 %v747_v8 }
 0x39a   : > { %802 = vrot.lane.b32.xlu1 %v2269_v43, %s2076_s29 }
 0x39b   : > { %805 = vrot.lane.b32.xlu0 %v2261_v34, %s2076_s29 }
 0x40e   : > { %v746_v10 = vpop.xlane.xlu0 %745 }
 0x40f   : > { %1979 = vrcp.f32 %v746_v10 }
 0x412   : > { %v749_v11 = vpop.xlane.xlu1 %748  ;;  %v806_v14 = vpop.permute.xlu0 %805 }
 0x413   : > { %1981 = vrcp.f32 %v749_v11  ;;  %v811_v18 = vsel %vm673_vm2, %v806_v14, 0 }
 0x416   : > { %v803_v20 = vpop.permute.xlu1 %802 }
 0x41c   : > { %v1980_v12 = vpop.eup %1979 }
 0x41d   : > { %v752_v16 = vmul.f32 %v1980_v12, %v1976_v5 }
 0x420   : > { %v1982_v13 = vpop.eup %1981 }
 0x421   : > { %v753_v17 = vmul.f32 %v1982_v13, %v1978_v7 }
 0x423   : > { %v754_v19 = vpack.c.bf16 %v753_v17, %v752_v16 }
 0x425   : > { %1815 = vmatmul.mubr.msk.bf16.vlgmr.msra.gmra.mxu1 %vm731_vm4, %v754_v19 }
 0x426   : > { %1819 = vmatpush3.bf16.xpose.msra.mxu1 %v811_v18  ;;  %1820 = vmatprep.mubr.msk.bf16.mxu1 %vm2074_vm1, %v2073_v15 }
 0x427   : > { %1830 = vmatprep.subr.bf16.mxu1 %v2073_v15 }
 0x42d   : > { %1821 = vmatmul.mubr.msk.bf16.vlgmr.msra.gmra.mxu1 %vm673_vm2, %v803_v20 }
 0x42e   : > { %1832 = vmatprep.mubr.msk.bf16.mxu1 %vm2074_vm1, %v2073_v15  ;;  %1831 = vmatpush3.bf16.msra.mxu1 %v936_v49  ;;  %v1157_v49 = vsel %vm934_vm5, %v1959_v48, 0 }
 0x42f   : > { %1842 = vmatprep.subr.bf16.mxu1 %v2073_v15 }
 0x4e5   : > { %v792_v21 = vpop.f32.mrf.mxu1 }
 0x4e7   : > { %v1816_v22 = vpop.f32.mrf.mxu1 }
 0x4e9   : > { %v795_v23 = vpop.f32.mrf.mxu1 }
 0x4ea   : > { %v799_v24 = vpack.c.bf16 %v795_v23, %v792_v21 }
 0x4eb   : > { %v1817_v25 = vpop.f32.mrf.mxu1 }
 0x4ed   : > { %v847_v26 = vpop.f32.mrf.mxu1 }
 0x4ee   : > { %v854_v27 = vmul.f32 0.35355338, %v847_v26 }
 0x4ef   : > { %v1822_v28 = vpop.f32.mrf.mxu1 }
 0x4f0   : > { %v856_v29 = vadd.f32 %v854_v27, %v2279_v50 }
 0x4f1   : > { %v850_v30 = vpop.f32.mrf.mxu1 }
 0x4f2   : > { %v855_v31 = vmul.f32 0.35355338, %v850_v30  ;;  %v858_v32 = vsel %vm731_vm4, %v856_v29, -inf }
 0x4f3   : > { %859 = vmax.xlane.f32.xlu1 %v858_v32  ;;  %v1823_v33 = vpop.f32.mrf.mxu1 }
 0x4f4   : > { %v857_v35 = vadd.f32 %v855_v31, %v2279_v50 }
 0x4f6   : > { %v861_v36 = vsel %vm731_vm4, %v857_v35, -inf }
 0x4f7   : > { %862 = vmax.xlane.f32.xlu0 %v861_v36 }
 0x57c   : > { %v860_v37 = vpop.xlane.xlu1 %859 }
 0x57d   : > { %v864_v38 = vsub.f32 %v856_v29, %v860_v37 }
 0x57f   : > { %v866_v39 = vmul.f32 1.442695, %v864_v38 }
 0x580   : > { %v863_v40 = vpop.xlane.xlu0 %862 }
 0x581   : > { %1983 = vpow2.f32 %v866_v39  ;;  %v865_v41 = vsub.f32 %v857_v35, %v863_v40 }
 0x583   : > { %v868_v42 = vmul.f32 1.442695, %v865_v41 }
 0x585   : > { %1985 = vpow2.f32 %v868_v42 }
 0x58e   : > { %v1984_v44 = vpop.eup %1983 }
 0x58f   : > { %v870_v45 = vsel %vm731_vm4, %v1984_v44, 0.0 }
 0x590   : > { %871 = vadd.xlane.f32.xlu0 %v870_v45 }
 0x592   : > { %v1986_v46 = vpop.eup %1985 }
 0x593   : > { %v873_v47 = vsel %vm731_vm4, %v1986_v46, 0.0 }
 0x594   : > { %874 = vadd.xlane.f32.xlu1 %v873_v47 }
 0x5a5   : > { %1028 = vrot.lane.b32.xlu1 %v2261_v34, %s2077_s19 }
 0x5a6   : > { %882 = vrot.lane.b32.xlu0 %v2290_v9, %s2076_s29 }
 0x5a9   : > { %1026 = vrot.lane.b32.xlu1 %v2269_v43, %s2077_s19 }
 0x619   : > { %v872_v51 = vpop.xlane.xlu0 %871 }
 0x61a   : > { %1987 = vrcp.f32 %v872_v51 }
 0x61d   : > { %v875_v52 = vpop.xlane.xlu1 %874  ;;  %v883_v53 = vpop.permute.xlu0 %882 }
 0x61e   : > { %1989 = vrcp.f32 %v875_v52  ;;  %1825 = vmatpush3.bf16.msra.mxu0 %v883_v53 }
 0x61f   : > { %1836 = vmatprep.subr.bf16.mxu0 %v2073_v15 }
 0x621   : > { %v1029_v63 = vpop.permute.xlu1 %1028 }
 0x622   : > { %v1034_v3 = vsel %vm673_vm2, %v1029_v63, 0 }
 0x625   : > { %v1027_v10 = vpop.permute.xlu1 %1026 }
 0x627   : > { %v1988_v54 = vpop.eup %1987 }
 0x628   : > { %v878_v57 = vmul.f32 %v1988_v54, %v1984_v44 }
 0x62b   : > { %v1990_v56 = vpop.eup %1989 }
 0x62c   : > { %v879_v58 = vmul.f32 %v1990_v56, %v1986_v46 }
 0x62e   : > { %v880_v59 = vpack.c.bf16 %v879_v58, %v878_v57 }
 0x630   : > { %1827 = vmatmul.mubr.msk.bf16.vlgmr.msra.gmra.mxu0 %vm731_vm4, %v880_v59 }
 0x631   : > { %1837 = vmatpush3.bf16.msra.mxu0 %v983_v60  ;;  %1838 = vmatprep.mubr.msk.bf16.mxu0 %vm2074_vm1, %v2073_v15 }
 0x632   : > { %1848 = vmatprep.subr.bf16.mxu0 %v2073_v15 }
 0x638   : > { %1839 = vmatmul.mubr.msk.bf16.vlgmr.msra.gmra.mxu0 %vm673_vm2, %v799_v24 }
 0x639   : > { %1850 = vmatprep.mubr.msk.bf16.mxu0 %vm2074_vm1, %v2073_v15 }
 0x6f0   : > { %v922_v61 = vpop.f32.mrf.mxu0 }
 0x6f2   : > { %v1828_v62 = vpop.f32.mrf.mxu0 }
 0x6f4   : > { %v925_v2 = vpop.f32.mrf.mxu0 }
 0x6f5   : > { %v929_v4 = vpack.c.bf16 %v925_v2, %v922_v61 }
 0x6f6   : > { %v1829_v5 = vpop.f32.mrf.mxu0 }
 0x6f7   : > { %1833 = vmatmul.mubr.msk.bf16.vlgmr.msra.gmra.mxu1 %vm673_vm2, %v929_v4 }
 0x6f8   : > { %1843 = vmatpush3.bf16.xpose.msra.mxu1 %v1034_v3  ;;  %v2337_v6 = vpop.f32.mrf.mxu0  ;;  %1844 = vmatprep.mubr.msk.bf16.mxu1 %vm2074_vm1, %v2073_v15 }
 0x6f9   : > { %1854 = vmatprep.subr.bf16.mxu1 %v2073_v15 }
 0x6fa   : > { %v1840_v7 = vpop.f32.mrf.mxu0 }
 0x6fc   : > { %v2342_v8 = vpop.f32.mrf.mxu0 }
 0x6fe   : > { %v1841_v11 = vpop.f32.mrf.mxu0 }
 0x6ff   : > { %1845 = vmatmul.mubr.msk.bf16.vlgmr.msra.gmra.mxu1 %vm673_vm2, %v1027_v10 }
 0x700   : > { %1856 = vmatprep.mubr.msk.bf16.mxu1 %vm2074_vm1, %v2073_v15  ;;  %1855 = vmatpush3.bf16.msra.mxu1 %v1157_v49 }
 0x701   : > { %1866 = vmatprep.subr.bf16.mxu1 %v2073_v15 }
 0x7b7   : > { %v2347_v12 = vpop.f32.mrf.mxu1 }
 0x7b9   : > { %v1834_v13 = vpop.f32.mrf.mxu1 }
 0x7bb   : > { %v2349_v14 = vpop.f32.mrf.mxu1 }
 0x7bd   : > { %v1835_v16 = vpop.f32.mrf.mxu1 }
 0x7bf   : > { %v1070_v17 = vpop.f32.mrf.mxu1 }
 0x7c0   : > { %v1077_v18 = vmul.f32 0.35355338, %v1070_v17 }
 0x7c1   : > { %v1846_v19 = vpop.f32.mrf.mxu1 }
 0x7c2   : > { %v1079_v20 = vadd.f32 %v1077_v18, %v2279_v50 }
 0x7c3   : > { %v1073_v21 = vpop.f32.mrf.mxu1 }
 0x7c4   : > { %v1078_v22 = vmul.f32 0.35355338, %v1073_v21  ;;  %v1081_v23 = vsel %vm731_vm4, %v1079_v20, -inf }
 0x7c5   : > { %1082 = vmax.xlane.f32.xlu1 %v1081_v23  ;;  %v1847_v24 = vpop.f32.mrf.mxu1  ;;  %v1023_v23 = vadd.f32 %v2342_v8, %v2349_v14 }
 0x7c6   : > { %v1080_v25 = vadd.f32 %v1078_v22, %v2279_v50 }
 0x7c8   : > { %v1084_v26 = vsel %vm731_vm4, %v1080_v25, -inf }
 0x7c9   : > { %1085 = vmax.xlane.f32.xlu0 %v1084_v26 }
 0x7d6   : > { %1104 = vrot.lane.b32.xlu1 %v2290_v9, %s2077_s19  ;;  %s523_s19 = sand.u32 1, %s2063_s22  }
 0x7d7   : > { %s1709_s1 = sshll.u32 %s523_s19, 4 }
 0x7d8   : > { %s525_s26 = scalar_lea.vmem [#allocation2], %s1709_s1  ;;  %s2079_s1 = smov [#allocation2]  }
 0x7d9   : > { %s1634_s18 = sshll.u32 %s525_s26, 4  ;;  %s2015_s2 = sshll.u32 %s2079_s1, 4  ;;  %s2481_s18 = int_to_ptr.vmem [resolvable:$true] %s1634_s18  ;;  %s2016_s2 = int_to_ptr.vmem [resolvable:$false] %s2015_s2 }
 0x7da   : > { %1202 = vrot.lane.b32.xlu1 %v2269_v43, %s2078_s28  ;;  %s2011_s20 = scalar_lea.vmem %s2481_s18, 256  ;;  %p2018_p0 = scmp.lt.s32.totalorder %s2481_s18, %s2016_s2 }
 0x7db   : > { %p2012_p11 = scmp.ne.s32.totalorder %s2481_s18, %s2011_s20 }
 0x7dd   : > { %p2013_p12 = pnand %p2012_p11, %p2205_p5 }
 0x7df   : > { %p2014_p13 = pneg %p2013_p12 }
 0x84e   : > { %v1083_v27 = vpop.xlane.xlu1 %1082 }
 0x84f   : > { %v1087_v28 = vsub.f32 %v1079_v20, %v1083_v27 }
 0x851   : > { %v1089_v29 = vmul.f32 1.442695, %v1087_v28 }
 0x852   : > { %v1105_v30 = vpop.permute.xlu1 %1104  ;;  %v1086_v31 = vpop.xlane.xlu0 %1085 }
 0x853   : > { %1991 = vpow2.f32 %v1089_v29  ;;  %v1088_v32 = vsub.f32 %v1080_v25, %v1086_v31  ;;  %1849 = vmatpush3.bf16.msra.mxu0 %v1105_v30  ;;  %v1960_v25 = vld [vmem:[%s2533_s8 + $0xc] ss:$0 sps:$4 sm:$0xff]  }
 0x854   : > { %1860 = vmatprep.subr.bf16.mxu0 %v2073_v15  ;;  %v1333_v28 = vsel %vm934_vm5, %v1960_v25, 0 }
 0x855   : > { %v1091_v33 = vmul.f32 1.442695, %v1088_v32 }
 0x857   : > { %1993 = vpow2.f32 %v1091_v33 }
 0x860   : > { %v1992_v35 = vpop.eup %1991 }
 0x861   : > { %v1093_v36 = vsel %vm731_vm4, %v1992_v35, 0.0 }
 0x862   : > { %1094 = vadd.xlane.f32.xlu0 %v1093_v36 }
 0x864   : > { %v1994_v37 = vpop.eup %1993 }
 0x865   : > { %v1096_v38 = vsel %vm731_vm4, %v1994_v37, 0.0 }
 0x866   : > { %1097 = vadd.xlane.f32.xlu0 %v1096_v38 }
 0x87c   : > { %1204 = vrot.lane.b32.xlu0 %v2261_v34, %s2078_s28  ;;  %v1203_v34 = vpop.permute.xlu1 %1202 }
 0x8eb   : > { %v1095_v43 = vpop.xlane.xlu0 %1094 }
 0x8ec   : > { %1995 = vrcp.f32 %v1095_v43  ;;  %v1736_v43 = vld [vmem:[%s2534_s9] ss:$0 sm:$0xff] }
 0x8ef   : > { %v1098_v39 = vpop.xlane.xlu0 %1097 }
 0x8f0   : > { %1997 = vrcp.f32 %v1098_v39 }
 0x8f3   : > { %v1205_v42 = vpop.permute.xlu0 %1204 }
 0x8f4   : > { %v1210_v46 = vsel %vm673_vm2, %v1205_v42, 0 }
 0x8f9   : > { %v1996_v40 = vpop.eup %1995 }
 0x8fa   : > { %v1101_v44 = vmul.f32 %v1996_v40, %v1992_v35 }
 0x8fd   : > { %v1998_v41 = vpop.eup %1997 }
 0x8fe   : > { %v1102_v45 = vmul.f32 %v1998_v41, %v1994_v37 }
 0x900   : > { %v1103_v47 = vpack.c.bf16 %v1102_v45, %v1101_v44 }
 0x902   : > { %1851 = vmatmul.mubr.msk.bf16.vlgmr.msra.gmra.mxu0 %vm731_vm4, %v1103_v47 }
 0x903   : > { %1861 = vmatpush3.bf16.xpose.msra.mxu0 %v1210_v46  ;;  %1862 = vmatprep.mubr.msk.bf16.mxu0 %vm2074_vm1, %v2073_v15 }
 0x904   : > { %1872 = vmatprep.subr.bf16.mxu0 %v2073_v15 }
 0x90a   : > { %1863 = vmatmul.mubr.msk.bf16.vlgmr.msra.gmra.mxu0 %vm673_vm2, %v1203_v34 }
 0x90b   : > { %1874 = vmatprep.mubr.msk.bf16.mxu0 %vm2074_vm1, %v2073_v15  ;;  %1873 = vmatpush3.bf16.msra.mxu0 %v1333_v28  ;;  %v1970_v28 = vld [vmem:[%s2539_s14] sm:$0xff]  }
 0x90c   : > { %1886 = vmatprep.subr.bf16.mxu0 %v2073_v15 }
 0x9c2   : > { %v1144_v51 = vpop.f32.mrf.mxu0 }
 0x9c4   : > { %v1852_v52 = vpop.f32.mrf.mxu0 }
 0x9c6   : > { %v1147_v53 = vpop.f32.mrf.mxu0 }
 0x9c7   : > { %v1151_v54 = vpack.c.bf16 %v1147_v53, %v1144_v51 }
 0x9c8   : > { %v1853_v55 = vpop.f32.mrf.mxu0 }
 0x9c9   : > { %1857 = vmatmul.mubr.msk.bf16.vlgmr.msra.gmra.mxu1 %vm673_vm2, %v1151_v54 }
 0x9ca   : > { %v1246_v56 = vpop.f32.mrf.mxu0  ;;  %1868 = vmatprep.mubr.msk.bf16.mxu1 %vm2074_vm1, %v2073_v15 }
 0x9cb   : > { %v1253_v57 = vmul.f32 0.35355338, %v1246_v56 }
 0x9cc   : > { %v1864_v58 = vpop.f32.mrf.mxu0 }
 0x9cd   : > { %v1255_v59 = vadd.f32 %v1253_v57, %v2279_v50 }
 0x9ce   : > { %v1249_v60 = vpop.f32.mrf.mxu0 }
 0x9cf   : > { %v1254_v61 = vmul.f32 0.35355338, %v1249_v60  ;;  %v1257_v62 = vsel %vm731_vm4, %v1255_v59, -inf  ;;  %v1962_v60 = vld [vmem:[%s2537_s12] sm:$0xff]  }
 0x9d0   : > { %1258 = vmax.xlane.f32.xlu1 %v1257_v62  ;;  %v1865_v63 = vpop.f32.mrf.mxu0  ;;  %v1964_v62 = vld [vmem:[%s2539_s14 + $0x30] sm:$0xff]  }
 0x9d1   : > { %v1256_v2 = vadd.f32 %v1254_v61, %v2279_v50  ;;  %v1020_v50 = vadd.f32 %v2337_v6, %v2347_v12  ;;  %v1963_v61 = vld [vmem:[%s2539_s14 + $0x38] sm:$0xff]   ;;  %v1965_v63 = vld [vmem:[%s2539_s14 + $0x28] sm:$0xff]  }
 0x9d3   : > { %v1260_v3 = vsel %vm731_vm4, %v1256_v2, -inf }
 0x9d4   : > { %1261 = vmax.xlane.f32.xlu0 %v1260_v3  ;;  %v1967_v3 = vld [vmem:[%s2539_s14 + $0x18] sm:$0xff]  }
 0xa59   : > { %v1259_v4 = vpop.xlane.xlu1 %1258 }
 0xa5a   : > { %v1263_v5 = vsub.f32 %v1255_v59, %v1259_v4  ;;  %v1961_v59 = vld [vmem:[%s2537_s12 + $0x8] sm:$0xff]  }
 0xa5c   : > { %v1265_v7 = vmul.f32 1.442695, %v1263_v5 }
 0xa5d   : > { %v1262_v10 = vpop.xlane.xlu0 %1261 }
 0xa5e   : > { %1999 = vpow2.f32 %v1265_v7  ;;  %v1264_v11 = vsub.f32 %v1256_v2, %v1262_v10  ;;  %v1966_v2 = vld [vmem:[%s2539_s14 + $0x20] sm:$0xff]  }
 0xa60   : > { %v1267_v13 = vmul.f32 1.442695, %v1264_v11 }
 0xa62   : > { %2001 = vpow2.f32 %v1267_v13 }
 0xa6b   : > { %v2000_v16 = vpop.eup %1999 }
 0xa6c   : > { %v1269_v17 = vsel %vm731_vm4, %v2000_v16, 0.0 }
 0xa6d   : > { %1270 = vadd.xlane.f32.xlu0 %v1269_v17 }
 0xa6f   : > { %v2002_v18 = vpop.eup %2001 }
 0xa70   : > { %v1272_v19 = vsel %vm731_vm4, %v2002_v18, 0.0 }
 0xa71   : > { %1273 = vadd.xlane.f32.xlu1 %v1272_v19 }
 0xa83   : > { %1280 = vrot.lane.b32.xlu0 %v2290_v9, %s2078_s28  ;;  %s1758_s28 = sshll.u32 %s2188_s25, 8  ;;  %s2485_s25 = scalar_lea.sflag [#allocation3], %s523_s19 }
 0xa84   : > { %s2479_s6 = scalar_lea.hbm %s2541_s16, %s1758_s28  ;;  %s2017_s28 = scalar_lea.vmem %s2016_s2, 512 }
 0xa85   : > { %p2019_p1 = scmp.lt.s32.totalorder %s2017_s28, %s2011_s20 }
 0xa87   : > { %p2020_p2 = por %p2019_p1, %p2018_p0 }
 0xa89   : > { %v1193_v20 = vpop.f32.mrf.mxu1  ;;  %p2021_p3 = pnand %p2020_p2, %p2014_p13 }
 0xa8a   : > { %v1200_v21 = vadd.f32 %v1193_v20, %v1020_v50 }
 0xa8b   : > { %v1858_v22 = vpop.f32.mrf.mxu1 }
 0xa8d   : > { %v1196_v24 = vpop.f32.mrf.mxu1 }
 0xa8e   : > { %v1201_v26 = vadd.f32 %v1196_v24, %v1023_v23 }
 0xa8f   : > { %v1859_v27 = vpop.f32.mrf.mxu1 }
 0xa90   : > { %v1969_v27 = vld [vmem:[%s2539_s14 + $0x8] sm:$0xff]  }
 0xaf6   : > { %v1271_v9 = vpop.xlane.xlu0 %1270 }
 0xaf7   : > { %2003 = vrcp.f32 %v1271_v9  ;;  %v1739_v9 = vld [vmem:[%s2538_s13] ss:$0 sm:$0xff] }
 0xafa   : > { %v1274_v6 = vpop.xlane.xlu1 %1273  ;;  %v1281_v12 = vpop.permute.xlu0 %1280 }
 0xafb   : > { %2005 = vrcp.f32 %v1274_v6  ;;  %1867 = vmatpush3.bf16.msra.mxu1 %v1281_v12 }
 0xafc   : > { %1878 = vmatprep.subr.bf16.mxu1 %v2073_v15 }
 0xb04   : > { %v2004_v8 = vpop.eup %2003 }
 0xb05   : > { %v1277_v29 = vmul.f32 %v2004_v8, %v2000_v16 }
 0xb08   : > { %v2006_v14 = vpop.eup %2005 }
 0xb09   : > { %v1278_v30 = vmul.f32 %v2006_v14, %v2002_v18  ;;  %v1737_v18 = vld [vmem:[%s2535_s10] ss:$0 sm:$0xff] }
 0xb0b   : > { %v1279_v31 = vpack.c.bf16 %v1278_v30, %v1277_v29 }
 0xb0d   : > { %1869 = vmatmul.mubr.msk.bf16.vlgmr.msra.gmra.mxu1 %vm731_vm4, %v1279_v31 }
 0xb0e   : > { %1882 = vmatprep.mubr.msk.bf16.mxu1 %vm2074_vm1, %v2073_v15  ;;  %1879 = vmatpush3.bf16.msra.mxu1 %v1961_v59 }
 0xb0f   : > { %1880 = vmatprep.subr.bf16.mxu1 %v2073_v15 }
 0xb12   : > { %1881 = vmatpush3.bf16.msra.mxu1 %v1962_v60 }
 0xbcd   : > { %v1320_v32 = vpop.f32.mrf.mxu1 }
 0xbcf   : > { %v1870_v33 = vpop.f32.mrf.mxu1 }
 0xbd1   : > { %v1323_v35 = vpop.f32.mrf.mxu1 }
 0xbd2   : > { %v1327_v36 = vpack.c.bf16 %v1323_v35, %v1320_v32 }
 0xbd3   : > { %v1871_v37 = vpop.f32.mrf.mxu1 }
 0xbd4   : > { %1875 = vmatmul.mubr.msk.bf16.vlgmr.msra.gmra.mxu0 %vm673_vm2, %v1327_v36 }
 0xbd5   : > { %1902 = vmatprep.mubr.msk.bf16.mxu0 %vm2074_vm1, %v2073_v15  ;;  %1887 = vmatpush3.bf16.msra.mxu0 %v1963_v61 }
 0xbd6   : > { %1888 = vmatprep.subr.bf16.mxu0 %v2073_v15 }
 0xbd9   : > { %1889 = vmatpush3.bf16.msra.mxu0 %v1964_v62 }
 0xbda   : > { %1890 = vmatprep.subr.bf16.mxu0 %v2073_v15 }
 0xbdd   : > { %1891 = vmatpush3.bf16.msra.mxu0 %v1965_v63 }
 0xbde   : > { %1892 = vmatprep.subr.bf16.mxu0 %v2073_v15 }
 0xbe1   : > { %1893 = vmatpush3.bf16.msra.mxu0 %v1966_v2 }
 0xbe2   : > { %1894 = vmatprep.subr.bf16.mxu0 %v2073_v15 }
 0xbe5   : > { %1895 = vmatpush3.bf16.msra.mxu0 %v1967_v3 }
 0xbe6   : > { %1896 = vmatprep.subr.bf16.mxu0 %v2073_v15 }
 0xc94   : > { %v1369_v38 = vpop.f32.mrf.mxu0 }
 0xc95   : > { %v1376_v39 = vadd.f32 %v1369_v38, %v1200_v21  ;;  %v1738_v21 = vld [vmem:[%s2536_s11] ss:$0 sm:$0xff] }
 0xc96   : > { %v1876_v40 = vpop.f32.mrf.mxu0 }
 0xc97   : > { %v1385_v41 = vadd.f32 %v1736_v43, %v1376_v39 }
 0xc98   : > { %v1372_v42 = vpop.f32.mrf.mxu0 }
 0xc99   : > { %v2408_v44 = vadd.f32 %v1385_v41, %v2223_v0  ;;  %v1377_v45 = vadd.f32 %v1372_v42, %v1201_v26  ;;  %v1968_v26 = vld [vmem:[%s2539_s14 + $0x10] sm:$0xff]  }
 0xc9a   : > { %v1877_v46 = vpop.f32.mrf.mxu0  ;;  %1897 = vmatpush3.bf16.msra.mxu0 %v1968_v26 }
 0xc9b   : > { %v1386_v47 = vadd.f32 %v1736_v43, %v1377_v45  ;;  %v1391_v34 = vsel %vm539_vm0, %v2408_v44, 0.0  ;;  %1898 = vmatprep.subr.bf16.mxu0 %v2073_v15 }
 0xc9c   : > { %1392 = vadd.xlane.f32.xlu1 %v1391_v34 }
 0xc9d   : > { %v2413_v48 = vadd.f32 %v1386_v47, %v2225_v1 }
 0xc9e   : > { %1899 = vmatpush3.bf16.msra.mxu0 %v1969_v27 }
 0xc9f   : > { %v1394_v49 = vsel %vm539_vm0, %v2413_v48, 0.0  ;;  %1900 = vmatprep.subr.bf16.mxu0 %v2073_v15  ;;  %v1743_v15 = vld [vmem:[%s2540_s15] ss:$0 sm:$0xff] }
 0xca0   : > { %1395 = vadd.xlane.f32.xlu1 %v1394_v49 }
 0xca2   : > { %1901 = vmatpush3.bf16.msra.mxu0 %v1970_v28 }
 0xd25   : > { %v1393_v51 = vpop.xlane.xlu1 %1392 }
 0xd26   : > { %v1397_v52 = vmul.f32 0.03125, %v1393_v51 }
 0xd28   : > { %v1399_v53 = vsub.f32 %v2408_v44, %v1397_v52 }
 0xd29   : > { %v1396_v0 = vpop.xlane.xlu1 %1395 }
 0xd2a   : > { %v1398_v54 = vmul.f32 0.03125, %v1396_v0  ;;  %v1401_v55 = vmul.f32 %v1399_v53, %v1399_v53 }
 0xd2c   : > { %v1400_v56 = vsub.f32 %v2413_v48, %v1398_v54  ;;  %v1403_v57 = vsel %vm539_vm0, %v1401_v55, 0.0 }
 0xd2d   : > { %1404 = vadd.xlane.f32.xlu1 %v1403_v57 }
 0xd2e   : > { %v1402_v58 = vmul.f32 %v1400_v56, %v1400_v56 }
 0xd30   : > { %v1406_v1 = vsel %vm539_vm0, %v1402_v58, 0.0 }
 0xd31   : > { %1407 = vadd.xlane.f32.xlu1 %v1406_v1 }
 0xdb6   : > { %v1405_v4 = vpop.xlane.xlu1 %1404 }
 0xdb7   : > { %v1409_v5 = vmul.f32 0.03125, %v1405_v4 }
 0xdb9   : > { %v1411_v7 = vadd.f32 1e-05, %v1409_v5 }
 0xdba   : > { %v1408_v10 = vpop.xlane.xlu1 %1407 }
 0xdbb   : > { %2007 = vrsqrt.f32 %v1411_v7  ;;  %v1410_v11 = vmul.f32 0.03125, %v1408_v10 }
 0xdbd   : > { %v1412_v13 = vadd.f32 1e-05, %v1410_v11 }
 0xdbf   : > { %2009 = vrsqrt.f32 %v1412_v13 }
 0xdc8   : > { %v2008_v16 = vpop.eup %2007 }
 0xdc9   : > { %v1415_v17 = vmul.f32 %v2008_v16, %v1399_v53 }
 0xdcb   : > { %v1423_v20 = vmul.f32 %v1737_v18, %v1415_v17 }
 0xdcc   : > { %v2010_v19 = vpop.eup %2009 }
 0xdcd   : > { %v1416_v50 = vmul.f32 %v2010_v19, %v1400_v56  ;;  %v1431_v23 = vadd.f32 %v1738_v21, %v1423_v20 }
 0xdcf   : > { %v1424_v22 = vmul.f32 %v1737_v18, %v1416_v50 }
 0xdd1   : > { %v1432_v24 = vadd.f32 %v1738_v21, %v1424_v22 }
 0xdd3   : > { %v1437_v25 = vpack.c.bf16 %v1432_v24, %v1431_v23 }
 0xdd5   : > { %1883 = vmatmul.mubr.msk.bf16.vlgmr.msra.gmra.mxu1 %vm539_vm0, %v1437_v25 }
 0xe95   : > { %v1494_v6 = vpop.f32.mrf.mxu1 }
 0xe96   : > { %v1495_v8 = vadd.f32 %v1739_v9, %v1494_v6 }
 0xe97   : > { %v1884_v12 = vpop.f32.mrf.mxu1 }
 0xe98   : > { %v1501_v31 = vmax.f32 %v1495_v8, 0.0 }
 0xe99   : > { %v1497_v14 = vpop.f32.mrf.mxu1 }
 0xe9a   : > { %v1498_v29 = vadd.f32 %v1739_v9, %v1497_v14 }
 0xe9b   : > { %v1885_v30 = vpop.f32.mrf.mxu1 }
 0xe9c   : > { %v1502_v32 = vmax.f32 %v1498_v29, 0.0 }
 0xe9e   : > { %v1519_v33 = vpack.c.bf16 %v1502_v32, %v1501_v31 }
 0xea0   : > { %1903 = vmatmul.mubr.bf16.vlgmr.msra.gmra.mxu0 %v1519_v33 }
 0xf60   : > { %v1609_v35 = vpop.f32.mrf.mxu0 }
 0xf61   : > { %v1610_v36 = vadd.f32 %v1743_v15, %v1609_v35 }
 0xf62   : > { %v1904_v37 = vpop.f32.mrf.mxu0 }
 0xf63   : > { %v1616_v38 = vadd.f32 %v1610_v36, %v2408_v44 }
 0xf64   : > { %v1612_v43 = vpop.f32.mrf.mxu0 }
 0xf65   : > { %1618 = vst.msk [vmem:[%s525_s26] sm:$0xff] %vm539_vm0, %v1616_v38  ;;  %v1613_v39 = vadd.f32 %v1743_v15, %v1612_v43 }
 0xf66   : > { %v1905_v40 = vpop.f32.mrf.mxu0 }
 0xf67   : > { %v1617_v41 = vadd.f32 %v1613_v39, %v2413_v48 }
 0xf69   : > { %1619 = vst.msk [vmem:[%s525_s26 + $0x8] sm:$0xff] %vm539_vm0, %v1617_v41 }
 0xf6a   : > { %2024 = shalt.err (!%p2021_p3)
}
 0xf6b   : > { %s2025_s19 = scalar_lea.hbm %s2479_s6, 256  ;;  %s2029_s1 = scalar_lea.hbm %s2541_s16, 2048 }
 0xf6c   : > { %p2026_p4 = scmp.ne.s32.totalorder %s2479_s6, %s2025_s19  ;;  %p2030_p9 = scmp.lt.s32.totalorder %s2479_s6, %s2541_s16 }
 0xf6d   : > { %p2031_p10 = scmp.lt.s32.totalorder %s2029_s1, %s2025_s19 }
 0xf6e   : > { %p2027_p7 = pnand %p2026_p4, %p2205_p5 }
 0xf6f   : > { %p2032_p11 = por %p2031_p10, %p2030_p9 }
 0xf70   : > { %p2028_p8 = pneg %p2027_p7 }
 0xf72   : > { %p2033_p12 = pnand %p2032_p11, %p2028_p8 }
 0xf74   : > { %2036 = shalt.err (!%p2033_p12)
}
 0xf75   : > { %s2080_s20 = smov 128   ;;  %s2081_s2 = smov 8  }
 0xf76   : > { %1906 = dma.vmem_to_hbm [thread:$0]  (%p2205_p5), %s2481_s18, 256, %s2479_s6, %s2485_s25, %s2080_s20, %s2080_s20, %s2081_s2  }
 0xf77 PF: > { %p1912_p13 = scmp.ge.s32.totalorder %s2071_s24, 2  ;;  %s1649_s28 = sand.u32 1, %s2059_s21  }
 0xf78   : > { %s1650_s3 = scalar_lea.sflag [#allocation3], %s1649_s28 }
 0xf79   : > { %p1909_p0 = pnand %p1912_p13, %p2209_p6 }
 0xf7b   : > { %p1910_p1 = pneg %p1909_p0 }
 0xf7d   : > { %2054 = dma.done.wait (%p1910_p1), %s1650_s3, 256  }
 0xf7e   : > { %2056 = vsyncadd (%p1910_p1), %s1650_s3, 4294967040  ;;  %p26_p2 = scmp.ge.s32.totalorder %s2192_s27, 10   ;;  %s2556_s21 = smov %s2063_s22 }
 0xf7f   : > { %s2557_s22 = smov %s2067_s23  ;;  %s2558_s23 = smov %s2203_s30 }
 0xf80   : > { %s2559_s24 = smov %s2192_s27  ;;  %28 = sbr.rel (!%p26_p2) target bundleno = 10 (0xa), region = 122 }
 0xf85   :  { %1655 = vsyncpa [#allocation3], 1 }
 0xf86   :  { %1657 = vsyncpa [#allocation3 + $0x1], 1 }

</bundles_post_ra>
